<compile_context>
chip_gen: v7x
topology: tpu7x:2x2x1
jax: 0.10.0
libtpu: 0.0.40
codegen_flags: <defaults>
</compile_context>

<pallas_src>
import jax
import jax.numpy as jnp
from jax import lax
from jax.experimental import pallas as pl
from jax.experimental.pallas import tpu as pltpu

D_MODEL = 21
NHEAD = 3
NUM_LAYERS = 2
D = D_MODEL * 2              # 42 = encoder d_model
HEAD_DIM = D // NHEAD        # 14
D_FF = 2048                  # PyTorch TransformerEncoderLayer default
EPS = 1e-5                   # LayerNorm eps (PyTorch default)
OUT_PAD = 128                # lane-padded output width
QKV_PAD = 128                # lane-padded fused q|k|v projection width (3*D=126)
FF2_PAD = 128                # lane-padded linear2 output width

# packed "vecs" row layout (per layer)
IDX_OB, IDX_B2, IDX_N1W, IDX_N1B, IDX_N2W, IDX_N2B = range(6)
NVEC = 6

_SCALE = 1.0 / (HEAD_DIM ** 0.5)


def _layernorm(x, w, b):
    mu = jnp.mean(x, axis=-1, keepdims=True)
    xc = x - mu
    var = jnp.mean(xc * xc, axis=-1, keepdims=True)
    return xc * lax.rsqrt(var + EPS) * w + b


def _row(ref, i):
    """Static row i of a packed 2-D parameter array, as (1, width)."""
    return ref[i].reshape(1, -1)


def make_transformer_kernel(B, L):
    """Kernel over x of shape (B*L, D); attention is per-sequence (length L)."""

    def transformer_kernel(x_ref, w_qkv_ref, b_qkv_ref, w_out_ref,
                           w_ff1_ref, w_ff2_ref, b1_ref, vecs_ref,
                           lin_w_ref, lin_b_ref, out_ref):
        x = x_ref[...]                                   # (B*L, D) f32

        for layer in range(NUM_LAYERS):
            vbase = layer * NVEC
            xb = x.astype(jnp.bfloat16)                  # MXU-side cast only

            # ---- fused q|k|v projection: ONE dot + ONE bias add per layer ----
            # w_qkv_ref[layer]: (D, 128) bf16, cols = [q(42) | k(42) | v(42) | 0 pad]
            # b_qkv_ref[layer]: (1, 128) f32 with the k-bias columns zeroed
            # (q.b_k is constant over keys and cancels exactly under softmax).
            qkv = jnp.dot(xb, w_qkv_ref[layer],
                          preferred_element_type=jnp.float32) + b_qkv_ref[layer]

            # ---- per-sequence, per-head attention (post-norm; dropout = id) ----
            rows = []
            for b in range(B):
                r0 = b * L
                heads = []
                for h in range(NHEAD):
                    c = h * HEAD_DIM
                    qh = qkv[r0:r0 + L, c:c + HEAD_DIM]
                    kh = qkv[r0:r0 + L, D + c:D + c + HEAD_DIM]
                    vh = qkv[r0:r0 + L, 2 * D + c:2 * D + c + HEAD_DIM]

                    # scores: (q*scale) @ k^T via NT dot_general, bf16 operands
                    s = lax.dot_general((qh * _SCALE).astype(jnp.bfloat16),
                                        kh.astype(jnp.bfloat16),
                                        (((1,), (1,)), ((), ())),
                                        preferred_element_type=jnp.float32)
                    s = s - jnp.max(s, axis=-1, keepdims=True)
                    e = jnp.exp(s)
                    a = e * pl.reciprocal(jnp.sum(e, axis=-1, keepdims=True),
                                          approx=True)
                    heads.append(jnp.dot(a.astype(jnp.bfloat16),
                                         vh.astype(jnp.bfloat16),
                                         preferred_element_type=jnp.float32))
                # lane-concat the 3 (L,14) head outputs -> (L, 42)
                rows.append(jnp.concatenate(heads, axis=-1))
            heads_all = rows[0] if B == 1 else jnp.concatenate(rows, axis=0)

            # single (42,42) output projection for all heads / rows
            attn = jnp.dot(heads_all.astype(jnp.bfloat16), w_out_ref[layer],
                           preferred_element_type=jnp.float32)
            attn = attn + _row(vecs_ref, vbase + IDX_OB)
            x = _layernorm(x + attn,
                           _row(vecs_ref, vbase + IDX_N1W),
                           _row(vecs_ref, vbase + IDX_N1B))

            # ---- feedforward: linear2(relu(linear1(x))) ----
            h1 = jnp.dot(x.astype(jnp.bfloat16), w_ff1_ref[layer],
                         preferred_element_type=jnp.float32) + _row(b1_ref, layer)
            h1 = jnp.maximum(h1, 0.0)
            # w_ff2 is lane-padded to 128 (cols 42..127 are zero); slice back.
            ff = jnp.dot(h1.astype(jnp.bfloat16), w_ff2_ref[layer],
                         preferred_element_type=jnp.float32)[:, :D]
            ff = ff + _row(vecs_ref, vbase + IDX_B2)

            x = _layernorm(x + ff,
                           _row(vecs_ref, vbase + IDX_N2W),
                           _row(vecs_ref, vbase + IDX_N2B))

        # ---- final Linear(42 -> 21), lane-padded to 128 for an unmasked store ----
        out_ref[...] = jnp.dot(x.astype(jnp.bfloat16), lin_w_ref[...],
                               preferred_element_type=jnp.float32) + lin_b_ref[...]

    return transformer_kernel


# ----------------------------------------------------------------------------
# Host-side parameter handling
# ----------------------------------------------------------------------------

def init_params(key):
    """Deterministic synthetic parameters in PyTorch layout."""
    layers = []
    std = 0.05
    for li in range(NUM_LAYERS):
        k = jax.random.split(jax.random.fold_in(key, li), 8)
        layers.append([
            std * jax.random.normal(k[0], (3 * D, D), jnp.float32),   # in_proj_weight
            std * jax.random.normal(k[1], (3 * D,), jnp.float32),     # in_proj_bias
            std * jax.random.normal(k[2], (D, D), jnp.float32),       # out_proj.weight
            std * jax.random.normal(k[3], (D,), jnp.float32),         # out_proj.bias
            std * jax.random.normal(k[4], (D_FF, D), jnp.float32),    # linear1.weight
            std * jax.random.normal(k[5], (D_FF,), jnp.float32),      # linear1.bias
            std * jax.random.normal(k[6], (D, D_FF), jnp.float32),    # linear2.weight
            std * jax.random.normal(k[7], (D,), jnp.float32),         # linear2.bias
            jnp.ones((D,), jnp.float32), jnp.zeros((D,), jnp.float32),  # norm1 w,b
            jnp.ones((D,), jnp.float32), jnp.zeros((D,), jnp.float32),  # norm2 w,b
        ])
    kf = jax.random.split(jax.random.fold_in(key, 100), 2)
    lin_w = std * jax.random.normal(kf[0], (D_MODEL, D), jnp.float32)   # linear.weight
    lin_b = std * jax.random.normal(kf[1], (D_MODEL,), jnp.float32)     # linear.bias
    return {"layers": layers, "lin_w": lin_w, "lin_b": lin_b}


def prepare_params(params):
    """Pre-transpose, bf16-cast, lane-pad and pack PyTorch-layout params."""
    wdt = jnp.bfloat16
    w_qkv, b_qkv, w_out = [], [], []
    w_ff1, w_ff2, b1s, vecs = [], [], [], []
    for (in_w, in_b, op_w, op_b, w1, b1, w2, b2,
         n1w, n1b, n2w, n2b) in params["layers"]:
        # fused q|k|v projection weight, lane-padded: (D, 128) bf16
        wq = jnp.zeros((D, QKV_PAD), wdt).at[:, :3 * D].set(in_w.T.astype(wdt))
        w_qkv.append(wq)
        # fused bias: q bias | zeros (k bias dropped: exact under softmax) | v bias
        bq = jnp.zeros((1, QKV_PAD), jnp.float32)
        bq = bq.at[0, :D].set(in_b[:D])
        bq = bq.at[0, 2 * D:3 * D].set(in_b[2 * D:3 * D])
        b_qkv.append(bq)
        w_out.append(op_w.T.astype(wdt))                       # (D, D)
        w_ff1.append(w1.T.astype(wdt))                         # (D, D_FF)
        # linear2 weight lane-padded to 128 cols -> contiguous 4 KB HBM tiles
        w_ff2.append(jnp.zeros((D_FF, FF2_PAD), wdt).at[:, :D].set(w2.T.astype(wdt)))
        b1s.append(b1)                                         # (D_FF,)
        vecs.extend([op_b, b2, n1w, n1b, n2w, n2b])            # matches IDX_* order
    lin_w_p = jnp.zeros((D, OUT_PAD), wdt).at[:, :D_MODEL].set(
        params["lin_w"].T.astype(wdt))
    lin_b_p = jnp.zeros((1, OUT_PAD), jnp.float32).at[0, :D_MODEL].set(
        params["lin_b"])
    return {
        "w_qkv": jnp.stack(w_qkv),    # (NUM_LAYERS, D, 128)      bf16
        "b_qkv": jnp.stack(b_qkv),    # (NUM_LAYERS, 1, 128)      f32
        "w_out": jnp.stack(w_out),    # (NUM_LAYERS, D, D)        bf16
        "w_ff1": jnp.stack(w_ff1),    # (NUM_LAYERS, D, D_FF)     bf16
        "w_ff2": jnp.stack(w_ff2),    # (NUM_LAYERS, D_FF, 128)   bf16
        "b1":    jnp.stack(b1s),      # (NUM_LAYERS, D_FF)        f32
        "vecs":  jnp.stack(vecs),     # (NUM_LAYERS*NVEC, D)      f32
        "lin_w": lin_w_p,             # (D, OUT_PAD)              bf16
        "lin_b": lin_b_p,             # (1, OUT_PAD)              f32
    }


def transformer_forward_batched(x1, x2, prep):
    """x1, x2: (B, L, D_MODEL).  One kernel call for all B sequences."""
    B, L, _ = x1.shape
    x = jnp.concatenate([x1, x2], axis=-1).astype(jnp.float32).reshape(B * L, D)
    vspec = pl.BlockSpec(memory_space=pltpu.MemorySpace.VMEM)
    out = pl.pallas_call(
        make_transformer_kernel(B, L),
        out_shape=jax.ShapeDtypeStruct((B * L, OUT_PAD), jnp.float32),
        in_specs=[vspec] * 10,
        out_specs=vspec,
    )(x, prep["w_qkv"], prep["b_qkv"], prep["w_out"], prep["w_ff1"],
      prep["w_ff2"], prep["b1"], prep["vecs"], prep["lin_w"], prep["lin_b"])
    return out[:, :D_MODEL].reshape(B, L, D_MODEL)      # drop lane padding


def transformer_forward(x1, x2, prep):
    """Original module signature: single (L, D_MODEL) pair."""
    return transformer_forward_batched(x1[None], x2[None], prep)[0]


# ----------------------------------------------------------------------------
# Pure-JAX reference (same bf16 weight rounding) for a sanity check
# ----------------------------------------------------------------------------

def reference_forward(x1, x2, params):
    def mm(a, w_t):
        return jnp.dot(a.astype(jnp.bfloat16), w_t.astype(jnp.bfloat16),
                       preferred_element_type=jnp.float32)

    x = jnp.concatenate([x1, x2], axis=-1).astype(jnp.float32)
    for (in_w, in_b, op_w, op_b, w1, b1, w2, b2,
         n1w, n1b, n2w, n2b) in params["layers"]:
        qkv = mm(x, in_w.T) + in_b
        q, k, v = qkv[:, :D], qkv[:, D:2 * D], qkv[:, 2 * D:]
        heads = []
        for h in range(NHEAD):
            sl = slice(h * HEAD_DIM, (h + 1) * HEAD_DIM)
            s = (q[:, sl] * _SCALE) @ k[:, sl].T
            a = jax.nn.softmax(s, axis=-1)
            heads.append(a @ v[:, sl])
        attn = mm(jnp.concatenate(heads, axis=-1), op_w.T) + op_b
        x = _layernorm(x + attn, n1w, n1b)
        h1 = jax.nn.relu(mm(x, w1.T) + b1)
        ff = mm(h1, w2.T) + b2
        x = _layernorm(x + ff, n2w, n2b)
    return mm(x, params["lin_w"].T) + params["lin_b"]


if __name__ == "__main__":
    key = jax.random.PRNGKey(0)
    k1, k2, kp = jax.random.split(key, 3)
    L = 8  # sequence length
    x1 = jax.random.normal(k1, (L, D_MODEL), jnp.float32)
    x2 = jax.random.normal(k2, (L, D_MODEL), jnp.float32)
    params = init_params(kp)
    prep = prepare_params(params)

    # single-sequence path (original module signature)
    fwd = jax.jit(transformer_forward)
    out = jax.block_until_ready(fwd(x1, x2, prep))
    assert out.shape == (L, D_MODEL), out.shape
    assert bool(jnp.all(jnp.isfinite(out)))
    ref = reference_forward(x1, x2, params)
    err = float(jnp.max(jnp.abs(out - ref)))
    assert err < 5e-2, f"max abs err vs reference: {err}"

    # batched path: stack 4 (x1, x2) pairs into the M dim of one kernel call
    B = 4
    kb1, kb2 = jax.random.split(jax.random.fold_in(key, 7), 2)
    xb1 = jax.random.normal(kb1, (B, L, D_MODEL), jnp.float32)
    xb2 = jax.random.normal(kb2, (B, L, D_MODEL), jnp.float32)
    fwd_b = jax.jit(transformer_forward_batched)
    out_b = jax.block_until_ready(fwd_b(xb1, xb2, prep))
    assert out_b.shape == (B, L, D_MODEL), out_b.shape
    ref_b = jnp.stack([reference_forward(xb1[i], xb2[i], params)
                       for i in range(B)])
    err_b = float(jnp.max(jnp.abs(out_b - ref_b)))
    assert err_b < 5e-2, f"batched max abs err vs reference: {err_b}"

    print("KERNEL_OK")
</pallas_src>

<mosaic_0001>
module attributes {stable_mosaic.version = 11 : i64} {
  func.func @transformer_kernel(%arg0: memref<8x42xf32, #tpu.memory_space<vmem>>, %arg1: memref<2x42x128xbf16, #tpu.memory_space<vmem>>, %arg2: memref<2x1x128xf32, #tpu.memory_space<vmem>>, %arg3: memref<2x42x42xbf16, #tpu.memory_space<vmem>>, %arg4: memref<2x42x2048xbf16, #tpu.memory_space<vmem>>, %arg5: memref<2x2048x128xbf16, #tpu.memory_space<vmem>>, %arg6: memref<2x2048xf32, #tpu.memory_space<vmem>>, %arg7: memref<12x42xf32, #tpu.memory_space<vmem>>, %arg8: memref<42x128xbf16, #tpu.memory_space<vmem>>, %arg9: memref<1x128xf32, #tpu.memory_space<vmem>>, %arg10: memref<8x128xf32, #tpu.memory_space<vmem>>) attributes {dimension_semantics = [], scalar_prefetch = 0 : i64, scratch_operands = 0 : i64, tpu.core_type = #tpu.core_type<tc>} {
    %c0 = arith.constant 0 : index
    %c0_0 = arith.constant 0 : index
    %0 = vector.load %arg0[%c0, %c0_0] : memref<8x42xf32, #tpu.memory_space<vmem>>, vector<8x42xf32>
    %1 = arith.truncf %0 : vector<8x42xf32> to vector<8x42xbf16>
    %c0_1 = arith.constant 0 : index
    %c0_2 = arith.constant 0 : index
    %c0_3 = arith.constant 0 : index
    %2 = vector.load %arg1[%c0_1, %c0_2, %c0_3] : memref<2x42x128xbf16, #tpu.memory_space<vmem>>, vector<1x42x128xbf16>
    %3 = vector.shape_cast %2 : vector<1x42x128xbf16> to vector<42x128xbf16>
    %cst = arith.constant dense<0.000000e+00> : vector<8x128xf32>
    %4 = tpu.matmul %1, %3, %cst {dimension_numbers = #tpu.dot_dimension_numbers<[1], [0], [0], [1], [0, 0, 1, 1], [], []>} : vector<8x42xbf16>, vector<42x128xbf16>, vector<8x128xf32> -> vector<8x128xf32>
    %c0_4 = arith.constant 0 : index
    %c0_5 = arith.constant 0 : index
    %c0_6 = arith.constant 0 : index
    %5 = vector.load %arg2[%c0_4, %c0_5, %c0_6] : memref<2x1x128xf32, #tpu.memory_space<vmem>>, vector<1x1x128xf32>
    %6 = vector.shape_cast %5 : vector<1x1x128xf32> to vector<1x128xf32>
    %7 = vector.broadcast %6 : vector<1x128xf32> to vector<8x128xf32>
    %8 = arith.addf %4, %7 : vector<8x128xf32>
    %9 = vector.extract_strided_slice %8 {offsets = [0, 0], sizes = [8, 14], strides = [1, 1]} : vector<8x128xf32> to vector<8x14xf32>
    %10 = vector.extract_strided_slice %8 {offsets = [0, 42], sizes = [8, 14], strides = [1, 1]} : vector<8x128xf32> to vector<8x14xf32>
    %11 = vector.extract_strided_slice %8 {offsets = [0, 84], sizes = [8, 14], strides = [1, 1]} : vector<8x128xf32> to vector<8x14xf32>
    %cst_7 = arith.constant 0.267261237 : f32
    %12 = vector.broadcast %cst_7 : f32 to vector<8x14xf32>
    %13 = arith.mulf %9, %12 : vector<8x14xf32>
    %14 = arith.truncf %13 : vector<8x14xf32> to vector<8x14xbf16>
    %15 = arith.truncf %10 : vector<8x14xf32> to vector<8x14xbf16>
    %cst_8 = arith.constant dense<0.000000e+00> : vector<8x8xf32>
    %16 = tpu.matmul %14, %15, %cst_8 {dimension_numbers = #tpu.dot_dimension_numbers<[1], [1], [0], [0], [0, 0, 1, 0], [], []>} : vector<8x14xbf16>, vector<8x14xbf16>, vector<8x8xf32> -> vector<8x8xf32>
    %cst_9 = arith.constant dense<0xFF800000> : vector<8xf32>
    %17 = vector.multi_reduction <maximumf>, %16, %cst_9 [1] : vector<8x8xf32> to vector<8xf32>
    %18 = vector.shape_cast %17 : vector<8xf32> to vector<8x1xf32>
    %19 = vector.broadcast %18 : vector<8x1xf32> to vector<8x8xf32>
    %20 = arith.subf %16, %19 : vector<8x8xf32>
    %21 = math.exp %20 : vector<8x8xf32>
    %cst_10 = arith.constant dense<0.000000e+00> : vector<8xf32>
    %22 = vector.multi_reduction <add>, %21, %cst_10 [1] : vector<8x8xf32> to vector<8xf32>
    %23 = vector.shape_cast %22 : vector<8xf32> to vector<8x1xf32>
    %24 = tpu.reciprocal %23 {approx = true} : vector<8x1xf32> -> vector<8x1xf32>
    %25 = vector.broadcast %24 : vector<8x1xf32> to vector<8x8xf32>
    %26 = arith.mulf %21, %25 : vector<8x8xf32>
    %27 = arith.truncf %26 : vector<8x8xf32> to vector<8x8xbf16>
    %28 = arith.truncf %11 : vector<8x14xf32> to vector<8x14xbf16>
    %cst_11 = arith.constant dense<0.000000e+00> : vector<8x14xf32>
    %29 = tpu.matmul %27, %28, %cst_11 {dimension_numbers = #tpu.dot_dimension_numbers<[1], [0], [0], [1], [0, 0, 1, 1], [], []>} : vector<8x8xbf16>, vector<8x14xbf16>, vector<8x14xf32> -> vector<8x14xf32>
    %30 = vector.extract_strided_slice %8 {offsets = [0, 14], sizes = [8, 14], strides = [1, 1]} : vector<8x128xf32> to vector<8x14xf32>
    %31 = vector.extract_strided_slice %8 {offsets = [0, 56], sizes = [8, 14], strides = [1, 1]} : vector<8x128xf32> to vector<8x14xf32>
    %32 = vector.extract_strided_slice %8 {offsets = [0, 98], sizes = [8, 14], strides = [1, 1]} : vector<8x128xf32> to vector<8x14xf32>
    %cst_12 = arith.constant 0.267261237 : f32
    %33 = vector.broadcast %cst_12 : f32 to vector<8x14xf32>
    %34 = arith.mulf %30, %33 : vector<8x14xf32>
    %35 = arith.truncf %34 : vector<8x14xf32> to vector<8x14xbf16>
    %36 = arith.truncf %31 : vector<8x14xf32> to vector<8x14xbf16>
    %cst_13 = arith.constant dense<0.000000e+00> : vector<8x8xf32>
    %37 = tpu.matmul %35, %36, %cst_13 {dimension_numbers = #tpu.dot_dimension_numbers<[1], [1], [0], [0], [0, 0, 1, 0], [], []>} : vector<8x14xbf16>, vector<8x14xbf16>, vector<8x8xf32> -> vector<8x8xf32>
    %cst_14 = arith.constant dense<0xFF800000> : vector<8xf32>
    %38 = vector.multi_reduction <maximumf>, %37, %cst_14 [1] : vector<8x8xf32> to vector<8xf32>
    %39 = vector.shape_cast %38 : vector<8xf32> to vector<8x1xf32>
    %40 = vector.broadcast %39 : vector<8x1xf32> to vector<8x8xf32>
    %41 = arith.subf %37, %40 : vector<8x8xf32>
    %42 = math.exp %41 : vector<8x8xf32>
    %cst_15 = arith.constant dense<0.000000e+00> : vector<8xf32>
    %43 = vector.multi_reduction <add>, %42, %cst_15 [1] : vector<8x8xf32> to vector<8xf32>
    %44 = vector.shape_cast %43 : vector<8xf32> to vector<8x1xf32>
    %45 = tpu.reciprocal %44 {approx = true} : vector<8x1xf32> -> vector<8x1xf32>
    %46 = vector.broadcast %45 : vector<8x1xf32> to vector<8x8xf32>
    %47 = arith.mulf %42, %46 : vector<8x8xf32>
    %48 = arith.truncf %47 : vector<8x8xf32> to vector<8x8xbf16>
    %49 = arith.truncf %32 : vector<8x14xf32> to vector<8x14xbf16>
    %cst_16 = arith.constant dense<0.000000e+00> : vector<8x14xf32>
    %50 = tpu.matmul %48, %49, %cst_16 {dimension_numbers = #tpu.dot_dimension_numbers<[1], [0], [0], [1], [0, 0, 1, 1], [], []>} : vector<8x8xbf16>, vector<8x14xbf16>, vector<8x14xf32> -> vector<8x14xf32>
    %51 = vector.extract_strided_slice %8 {offsets = [0, 28], sizes = [8, 14], strides = [1, 1]} : vector<8x128xf32> to vector<8x14xf32>
    %52 = vector.extract_strided_slice %8 {offsets = [0, 70], sizes = [8, 14], strides = [1, 1]} : vector<8x128xf32> to vector<8x14xf32>
    %53 = vector.extract_strided_slice %8 {offsets = [0, 112], sizes = [8, 14], strides = [1, 1]} : vector<8x128xf32> to vector<8x14xf32>
    %cst_17 = arith.constant 0.267261237 : f32
    %54 = vector.broadcast %cst_17 : f32 to vector<8x14xf32>
    %55 = arith.mulf %51, %54 : vector<8x14xf32>
    %56 = arith.truncf %55 : vector<8x14xf32> to vector<8x14xbf16>
    %57 = arith.truncf %52 : vector<8x14xf32> to vector<8x14xbf16>
    %cst_18 = arith.constant dense<0.000000e+00> : vector<8x8xf32>
    %58 = tpu.matmul %56, %57, %cst_18 {dimension_numbers = #tpu.dot_dimension_numbers<[1], [1], [0], [0], [0, 0, 1, 0], [], []>} : vector<8x14xbf16>, vector<8x14xbf16>, vector<8x8xf32> -> vector<8x8xf32>
    %cst_19 = arith.constant dense<0xFF800000> : vector<8xf32>
    %59 = vector.multi_reduction <maximumf>, %58, %cst_19 [1] : vector<8x8xf32> to vector<8xf32>
    %60 = vector.shape_cast %59 : vector<8xf32> to vector<8x1xf32>
    %61 = vector.broadcast %60 : vector<8x1xf32> to vector<8x8xf32>
    %62 = arith.subf %58, %61 : vector<8x8xf32>
    %63 = math.exp %62 : vector<8x8xf32>
    %cst_20 = arith.constant dense<0.000000e+00> : vector<8xf32>
    %64 = vector.multi_reduction <add>, %63, %cst_20 [1] : vector<8x8xf32> to vector<8xf32>
    %65 = vector.shape_cast %64 : vector<8xf32> to vector<8x1xf32>
    %66 = tpu.reciprocal %65 {approx = true} : vector<8x1xf32> -> vector<8x1xf32>
    %67 = vector.broadcast %66 : vector<8x1xf32> to vector<8x8xf32>
    %68 = arith.mulf %63, %67 : vector<8x8xf32>
    %69 = arith.truncf %68 : vector<8x8xf32> to vector<8x8xbf16>
    %70 = arith.truncf %53 : vector<8x14xf32> to vector<8x14xbf16>
    %cst_21 = arith.constant dense<0.000000e+00> : vector<8x14xf32>
    %71 = tpu.matmul %69, %70, %cst_21 {dimension_numbers = #tpu.dot_dimension_numbers<[1], [0], [0], [1], [0, 0, 1, 1], [], []>} : vector<8x8xbf16>, vector<8x14xbf16>, vector<8x14xf32> -> vector<8x14xf32>
    %72 = tpu.concatenate %29, %50, %71 in 1 : vector<8x14xf32>, vector<8x14xf32>, vector<8x14xf32> -> vector<8x42xf32>
    %73 = arith.truncf %72 : vector<8x42xf32> to vector<8x42xbf16>
    %c0_22 = arith.constant 0 : index
    %c0_23 = arith.constant 0 : index
    %c0_24 = arith.constant 0 : index
    %74 = vector.load %arg3[%c0_22, %c0_23, %c0_24] : memref<2x42x42xbf16, #tpu.memory_space<vmem>>, vector<1x42x42xbf16>
    %75 = vector.shape_cast %74 : vector<1x42x42xbf16> to vector<42x42xbf16>
    %cst_25 = arith.constant dense<0.000000e+00> : vector<8x42xf32>
    %76 = tpu.matmul %73, %75, %cst_25 {dimension_numbers = #tpu.dot_dimension_numbers<[1], [0], [0], [1], [0, 0, 1, 1], [], []>} : vector<8x42xbf16>, vector<42x42xbf16>, vector<8x42xf32> -> vector<8x42xf32>
    %c0_26 = arith.constant 0 : index
    %c0_27 = arith.constant 0 : index
    %77 = vector.load %arg7[%c0_26, %c0_27] : memref<12x42xf32, #tpu.memory_space<vmem>>, vector<1x42xf32>
    %78 = vector.shape_cast %77 : vector<1x42xf32> to vector<42xf32>
    %79 = vector.shape_cast %78 : vector<42xf32> to vector<1x42xf32>
    %80 = vector.broadcast %79 : vector<1x42xf32> to vector<8x42xf32>
    %81 = arith.addf %76, %80 : vector<8x42xf32>
    %82 = arith.addf %0, %81 : vector<8x42xf32>
    %c2 = arith.constant 2 : index
    %c0_28 = arith.constant 0 : index
    %83 = vector.load %arg7[%c2, %c0_28] : memref<12x42xf32, #tpu.memory_space<vmem>>, vector<1x42xf32>
    %84 = vector.shape_cast %83 : vector<1x42xf32> to vector<42xf32>
    %85 = vector.shape_cast %84 : vector<42xf32> to vector<1x42xf32>
    %c3 = arith.constant 3 : index
    %c0_29 = arith.constant 0 : index
    %86 = vector.load %arg7[%c3, %c0_29] : memref<12x42xf32, #tpu.memory_space<vmem>>, vector<1x42xf32>
    %87 = vector.shape_cast %86 : vector<1x42xf32> to vector<42xf32>
    %88 = vector.shape_cast %87 : vector<42xf32> to vector<1x42xf32>
    %cst_30 = arith.constant dense<0.000000e+00> : vector<8xf32>
    %89 = vector.multi_reduction <add>, %82, %cst_30 [1] : vector<8x42xf32> to vector<8xf32>
    %90 = vector.shape_cast %89 : vector<8xf32> to vector<8x1xf32>
    %cst_31 = arith.constant 4.200000e+01 : f32
    %91 = vector.broadcast %cst_31 : f32 to vector<8x1xf32>
    %92 = arith.divf %90, %91 : vector<8x1xf32>
    %93 = vector.broadcast %92 : vector<8x1xf32> to vector<8x42xf32>
    %94 = arith.subf %82, %93 : vector<8x42xf32>
    %95 = arith.mulf %94, %94 : vector<8x42xf32>
    %cst_32 = arith.constant dense<0.000000e+00> : vector<8xf32>
    %96 = vector.multi_reduction <add>, %95, %cst_32 [1] : vector<8x42xf32> to vector<8xf32>
    %97 = vector.shape_cast %96 : vector<8xf32> to vector<8x1xf32>
    %cst_33 = arith.constant 4.200000e+01 : f32
    %98 = vector.broadcast %cst_33 : f32 to vector<8x1xf32>
    %99 = arith.divf %97, %98 : vector<8x1xf32>
    %cst_34 = arith.constant 9.99999974E-6 : f32
    %100 = vector.broadcast %cst_34 : f32 to vector<8x1xf32>
    %101 = arith.addf %99, %100 : vector<8x1xf32>
    %102 = math.rsqrt %101 : vector<8x1xf32>
    %103 = vector.broadcast %102 : vector<8x1xf32> to vector<8x42xf32>
    %104 = arith.mulf %94, %103 : vector<8x42xf32>
    %105 = vector.broadcast %85 : vector<1x42xf32> to vector<8x42xf32>
    %106 = arith.mulf %104, %105 : vector<8x42xf32>
    %107 = vector.broadcast %88 : vector<1x42xf32> to vector<8x42xf32>
    %108 = arith.addf %106, %107 : vector<8x42xf32>
    %109 = arith.truncf %108 : vector<8x42xf32> to vector<8x42xbf16>
    %c0_35 = arith.constant 0 : index
    %c0_36 = arith.constant 0 : index
    %c0_37 = arith.constant 0 : index
    %110 = vector.load %arg4[%c0_35, %c0_36, %c0_37] : memref<2x42x2048xbf16, #tpu.memory_space<vmem>>, vector<1x42x2048xbf16>
    %111 = vector.shape_cast %110 : vector<1x42x2048xbf16> to vector<42x2048xbf16>
    %cst_38 = arith.constant dense<0.000000e+00> : vector<8x2048xf32>
    %112 = tpu.matmul %109, %111, %cst_38 {dimension_numbers = #tpu.dot_dimension_numbers<[1], [0], [0], [1], [0, 0, 1, 1], [], []>} : vector<8x42xbf16>, vector<42x2048xbf16>, vector<8x2048xf32> -> vector<8x2048xf32>
    %c0_39 = arith.constant 0 : index
    %c0_40 = arith.constant 0 : index
    %113 = vector.load %arg6[%c0_39, %c0_40] : memref<2x2048xf32, #tpu.memory_space<vmem>>, vector<1x2048xf32>
    %114 = vector.shape_cast %113 : vector<1x2048xf32> to vector<2048xf32>
    %115 = vector.shape_cast %114 : vector<2048xf32> to vector<1x2048xf32>
    %116 = vector.broadcast %115 : vector<1x2048xf32> to vector<8x2048xf32>
    %117 = arith.addf %112, %116 : vector<8x2048xf32>
    %cst_41 = arith.constant 0.000000e+00 : f32
    %118 = vector.broadcast %cst_41 : f32 to vector<8x2048xf32>
    %119 = arith.maximumf %117, %118 : vector<8x2048xf32>
    %120 = arith.truncf %119 : vector<8x2048xf32> to vector<8x2048xbf16>
    %c0_42 = arith.constant 0 : index
    %c0_43 = arith.constant 0 : index
    %c0_44 = arith.constant 0 : index
    %121 = vector.load %arg5[%c0_42, %c0_43, %c0_44] : memref<2x2048x128xbf16, #tpu.memory_space<vmem>>, vector<1x2048x128xbf16>
    %122 = vector.shape_cast %121 : vector<1x2048x128xbf16> to vector<2048x128xbf16>
    %cst_45 = arith.constant dense<0.000000e+00> : vector<8x128xf32>
    %123 = tpu.matmul %120, %122, %cst_45 {dimension_numbers = #tpu.dot_dimension_numbers<[1], [0], [0], [1], [0, 0, 1, 1], [], []>} : vector<8x2048xbf16>, vector<2048x128xbf16>, vector<8x128xf32> -> vector<8x128xf32>
    %124 = vector.extract_strided_slice %123 {offsets = [0, 0], sizes = [8, 42], strides = [1, 1]} : vector<8x128xf32> to vector<8x42xf32>
    %c1 = arith.constant 1 : index
    %c0_46 = arith.constant 0 : index
    %125 = vector.load %arg7[%c1, %c0_46] : memref<12x42xf32, #tpu.memory_space<vmem>>, vector<1x42xf32>
    %126 = vector.shape_cast %125 : vector<1x42xf32> to vector<42xf32>
    %127 = vector.shape_cast %126 : vector<42xf32> to vector<1x42xf32>
    %128 = vector.broadcast %127 : vector<1x42xf32> to vector<8x42xf32>
    %129 = arith.addf %124, %128 : vector<8x42xf32>
    %130 = arith.addf %108, %129 : vector<8x42xf32>
    %c4 = arith.constant 4 : index
    %c0_47 = arith.constant 0 : index
    %131 = vector.load %arg7[%c4, %c0_47] : memref<12x42xf32, #tpu.memory_space<vmem>>, vector<1x42xf32>
    %132 = vector.shape_cast %131 : vector<1x42xf32> to vector<42xf32>
    %133 = vector.shape_cast %132 : vector<42xf32> to vector<1x42xf32>
    %c5 = arith.constant 5 : index
    %c0_48 = arith.constant 0 : index
    %134 = vector.load %arg7[%c5, %c0_48] : memref<12x42xf32, #tpu.memory_space<vmem>>, vector<1x42xf32>
    %135 = vector.shape_cast %134 : vector<1x42xf32> to vector<42xf32>
    %136 = vector.shape_cast %135 : vector<42xf32> to vector<1x42xf32>
    %cst_49 = arith.constant dense<0.000000e+00> : vector<8xf32>
    %137 = vector.multi_reduction <add>, %130, %cst_49 [1] : vector<8x42xf32> to vector<8xf32>
    %138 = vector.shape_cast %137 : vector<8xf32> to vector<8x1xf32>
    %cst_50 = arith.constant 4.200000e+01 : f32
    %139 = vector.broadcast %cst_50 : f32 to vector<8x1xf32>
    %140 = arith.divf %138, %139 : vector<8x1xf32>
    %141 = vector.broadcast %140 : vector<8x1xf32> to vector<8x42xf32>
    %142 = arith.subf %130, %141 : vector<8x42xf32>
    %143 = arith.mulf %142, %142 : vector<8x42xf32>
    %cst_51 = arith.constant dense<0.000000e+00> : vector<8xf32>
    %144 = vector.multi_reduction <add>, %143, %cst_51 [1] : vector<8x42xf32> to vector<8xf32>
    %145 = vector.shape_cast %144 : vector<8xf32> to vector<8x1xf32>
    %cst_52 = arith.constant 4.200000e+01 : f32
    %146 = vector.broadcast %cst_52 : f32 to vector<8x1xf32>
    %147 = arith.divf %145, %146 : vector<8x1xf32>
    %cst_53 = arith.constant 9.99999974E-6 : f32
    %148 = vector.broadcast %cst_53 : f32 to vector<8x1xf32>
    %149 = arith.addf %147, %148 : vector<8x1xf32>
    %150 = math.rsqrt %149 : vector<8x1xf32>
    %151 = vector.broadcast %150 : vector<8x1xf32> to vector<8x42xf32>
    %152 = arith.mulf %142, %151 : vector<8x42xf32>
    %153 = vector.broadcast %133 : vector<1x42xf32> to vector<8x42xf32>
    %154 = arith.mulf %152, %153 : vector<8x42xf32>
    %155 = vector.broadcast %136 : vector<1x42xf32> to vector<8x42xf32>
    %156 = arith.addf %154, %155 : vector<8x42xf32>
    %157 = arith.truncf %156 : vector<8x42xf32> to vector<8x42xbf16>
    %c1_54 = arith.constant 1 : index
    %c0_55 = arith.constant 0 : index
    %c0_56 = arith.constant 0 : index
    %158 = vector.load %arg1[%c1_54, %c0_55, %c0_56] : memref<2x42x128xbf16, #tpu.memory_space<vmem>>, vector<1x42x128xbf16>
    %159 = vector.shape_cast %158 : vector<1x42x128xbf16> to vector<42x128xbf16>
    %cst_57 = arith.constant dense<0.000000e+00> : vector<8x128xf32>
    %160 = tpu.matmul %157, %159, %cst_57 {dimension_numbers = #tpu.dot_dimension_numbers<[1], [0], [0], [1], [0, 0, 1, 1], [], []>} : vector<8x42xbf16>, vector<42x128xbf16>, vector<8x128xf32> -> vector<8x128xf32>
    %c1_58 = arith.constant 1 : index
    %c0_59 = arith.constant 0 : index
    %c0_60 = arith.constant 0 : index
    %161 = vector.load %arg2[%c1_58, %c0_59, %c0_60] : memref<2x1x128xf32, #tpu.memory_space<vmem>>, vector<1x1x128xf32>
    %162 = vector.shape_cast %161 : vector<1x1x128xf32> to vector<1x128xf32>
    %163 = vector.broadcast %162 : vector<1x128xf32> to vector<8x128xf32>
    %164 = arith.addf %160, %163 : vector<8x128xf32>
    %165 = vector.extract_strided_slice %164 {offsets = [0, 0], sizes = [8, 14], strides = [1, 1]} : vector<8x128xf32> to vector<8x14xf32>
    %166 = vector.extract_strided_slice %164 {offsets = [0, 42], sizes = [8, 14], strides = [1, 1]} : vector<8x128xf32> to vector<8x14xf32>
    %167 = vector.extract_strided_slice %164 {offsets = [0, 84], sizes = [8, 14], strides = [1, 1]} : vector<8x128xf32> to vector<8x14xf32>
    %cst_61 = arith.constant 0.267261237 : f32
    %168 = vector.broadcast %cst_61 : f32 to vector<8x14xf32>
    %169 = arith.mulf %165, %168 : vector<8x14xf32>
    %170 = arith.truncf %169 : vector<8x14xf32> to vector<8x14xbf16>
    %171 = arith.truncf %166 : vector<8x14xf32> to vector<8x14xbf16>
    %cst_62 = arith.constant dense<0.000000e+00> : vector<8x8xf32>
    %172 = tpu.matmul %170, %171, %cst_62 {dimension_numbers = #tpu.dot_dimension_numbers<[1], [1], [0], [0], [0, 0, 1, 0], [], []>} : vector<8x14xbf16>, vector<8x14xbf16>, vector<8x8xf32> -> vector<8x8xf32>
    %cst_63 = arith.constant dense<0xFF800000> : vector<8xf32>
    %173 = vector.multi_reduction <maximumf>, %172, %cst_63 [1] : vector<8x8xf32> to vector<8xf32>
    %174 = vector.shape_cast %173 : vector<8xf32> to vector<8x1xf32>
    %175 = vector.broadcast %174 : vector<8x1xf32> to vector<8x8xf32>
    %176 = arith.subf %172, %175 : vector<8x8xf32>
    %177 = math.exp %176 : vector<8x8xf32>
    %cst_64 = arith.constant dense<0.000000e+00> : vector<8xf32>
    %178 = vector.multi_reduction <add>, %177, %cst_64 [1] : vector<8x8xf32> to vector<8xf32>
    %179 = vector.shape_cast %178 : vector<8xf32> to vector<8x1xf32>
    %180 = tpu.reciprocal %179 {approx = true} : vector<8x1xf32> -> vector<8x1xf32>
    %181 = vector.broadcast %180 : vector<8x1xf32> to vector<8x8xf32>
    %182 = arith.mulf %177, %181 : vector<8x8xf32>
    %183 = arith.truncf %182 : vector<8x8xf32> to vector<8x8xbf16>
    %184 = arith.truncf %167 : vector<8x14xf32> to vector<8x14xbf16>
    %cst_65 = arith.constant dense<0.000000e+00> : vector<8x14xf32>
    %185 = tpu.matmul %183, %184, %cst_65 {dimension_numbers = #tpu.dot_dimension_numbers<[1], [0], [0], [1], [0, 0, 1, 1], [], []>} : vector<8x8xbf16>, vector<8x14xbf16>, vector<8x14xf32> -> vector<8x14xf32>
    %186 = vector.extract_strided_slice %164 {offsets = [0, 14], sizes = [8, 14], strides = [1, 1]} : vector<8x128xf32> to vector<8x14xf32>
    %187 = vector.extract_strided_slice %164 {offsets = [0, 56], sizes = [8, 14], strides = [1, 1]} : vector<8x128xf32> to vector<8x14xf32>
    %188 = vector.extract_strided_slice %164 {offsets = [0, 98], sizes = [8, 14], strides = [1, 1]} : vector<8x128xf32> to vector<8x14xf32>
    %cst_66 = arith.constant 0.267261237 : f32
    %189 = vector.broadcast %cst_66 : f32 to vector<8x14xf32>
    %190 = arith.mulf %186, %189 : vector<8x14xf32>
    %191 = arith.truncf %190 : vector<8x14xf32> to vector<8x14xbf16>
    %192 = arith.truncf %187 : vector<8x14xf32> to vector<8x14xbf16>
    %cst_67 = arith.constant dense<0.000000e+00> : vector<8x8xf32>
    %193 = tpu.matmul %191, %192, %cst_67 {dimension_numbers = #tpu.dot_dimension_numbers<[1], [1], [0], [0], [0, 0, 1, 0], [], []>} : vector<8x14xbf16>, vector<8x14xbf16>, vector<8x8xf32> -> vector<8x8xf32>
    %cst_68 = arith.constant dense<0xFF800000> : vector<8xf32>
    %194 = vector.multi_reduction <maximumf>, %193, %cst_68 [1] : vector<8x8xf32> to vector<8xf32>
    %195 = vector.shape_cast %194 : vector<8xf32> to vector<8x1xf32>
    %196 = vector.broadcast %195 : vector<8x1xf32> to vector<8x8xf32>
    %197 = arith.subf %193, %196 : vector<8x8xf32>
    %198 = math.exp %197 : vector<8x8xf32>
    %cst_69 = arith.constant dense<0.000000e+00> : vector<8xf32>
    %199 = vector.multi_reduction <add>, %198, %cst_69 [1] : vector<8x8xf32> to vector<8xf32>
    %200 = vector.shape_cast %199 : vector<8xf32> to vector<8x1xf32>
    %201 = tpu.reciprocal %200 {approx = true} : vector<8x1xf32> -> vector<8x1xf32>
    %202 = vector.broadcast %201 : vector<8x1xf32> to vector<8x8xf32>
    %203 = arith.mulf %198, %202 : vector<8x8xf32>
    %204 = arith.truncf %203 : vector<8x8xf32> to vector<8x8xbf16>
    %205 = arith.truncf %188 : vector<8x14xf32> to vector<8x14xbf16>
    %cst_70 = arith.constant dense<0.000000e+00> : vector<8x14xf32>
    %206 = tpu.matmul %204, %205, %cst_70 {dimension_numbers = #tpu.dot_dimension_numbers<[1], [0], [0], [1], [0, 0, 1, 1], [], []>} : vector<8x8xbf16>, vector<8x14xbf16>, vector<8x14xf32> -> vector<8x14xf32>
    %207 = vector.extract_strided_slice %164 {offsets = [0, 28], sizes = [8, 14], strides = [1, 1]} : vector<8x128xf32> to vector<8x14xf32>
    %208 = vector.extract_strided_slice %164 {offsets = [0, 70], sizes = [8, 14], strides = [1, 1]} : vector<8x128xf32> to vector<8x14xf32>
    %209 = vector.extract_strided_slice %164 {offsets = [0, 112], sizes = [8, 14], strides = [1, 1]} : vector<8x128xf32> to vector<8x14xf32>
    %cst_71 = arith.constant 0.267261237 : f32
    %210 = vector.broadcast %cst_71 : f32 to vector<8x14xf32>
    %211 = arith.mulf %207, %210 : vector<8x14xf32>
    %212 = arith.truncf %211 : vector<8x14xf32> to vector<8x14xbf16>
    %213 = arith.truncf %208 : vector<8x14xf32> to vector<8x14xbf16>
    %cst_72 = arith.constant dense<0.000000e+00> : vector<8x8xf32>
    %214 = tpu.matmul %212, %213, %cst_72 {dimension_numbers = #tpu.dot_dimension_numbers<[1], [1], [0], [0], [0, 0, 1, 0], [], []>} : vector<8x14xbf16>, vector<8x14xbf16>, vector<8x8xf32> -> vector<8x8xf32>
    %cst_73 = arith.constant dense<0xFF800000> : vector<8xf32>
    %215 = vector.multi_reduction <maximumf>, %214, %cst_73 [1] : vector<8x8xf32> to vector<8xf32>
    %216 = vector.shape_cast %215 : vector<8xf32> to vector<8x1xf32>
    %217 = vector.broadcast %216 : vector<8x1xf32> to vector<8x8xf32>
    %218 = arith.subf %214, %217 : vector<8x8xf32>
    %219 = math.exp %218 : vector<8x8xf32>
    %cst_74 = arith.constant dense<0.000000e+00> : vector<8xf32>
    %220 = vector.multi_reduction <add>, %219, %cst_74 [1] : vector<8x8xf32> to vector<8xf32>
    %221 = vector.shape_cast %220 : vector<8xf32> to vector<8x1xf32>
    %222 = tpu.reciprocal %221 {approx = true} : vector<8x1xf32> -> vector<8x1xf32>
    %223 = vector.broadcast %222 : vector<8x1xf32> to vector<8x8xf32>
    %224 = arith.mulf %219, %223 : vector<8x8xf32>
    %225 = arith.truncf %224 : vector<8x8xf32> to vector<8x8xbf16>
    %226 = arith.truncf %209 : vector<8x14xf32> to vector<8x14xbf16>
    %cst_75 = arith.constant dense<0.000000e+00> : vector<8x14xf32>
    %227 = tpu.matmul %225, %226, %cst_75 {dimension_numbers = #tpu.dot_dimension_numbers<[1], [0], [0], [1], [0, 0, 1, 1], [], []>} : vector<8x8xbf16>, vector<8x14xbf16>, vector<8x14xf32> -> vector<8x14xf32>
    %228 = tpu.concatenate %185, %206, %227 in 1 : vector<8x14xf32>, vector<8x14xf32>, vector<8x14xf32> -> vector<8x42xf32>
    %229 = arith.truncf %228 : vector<8x42xf32> to vector<8x42xbf16>
    %c1_76 = arith.constant 1 : index
    %c0_77 = arith.constant 0 : index
    %c0_78 = arith.constant 0 : index
    %230 = vector.load %arg3[%c1_76, %c0_77, %c0_78] : memref<2x42x42xbf16, #tpu.memory_space<vmem>>, vector<1x42x42xbf16>
    %231 = vector.shape_cast %230 : vector<1x42x42xbf16> to vector<42x42xbf16>
    %cst_79 = arith.constant dense<0.000000e+00> : vector<8x42xf32>
    %232 = tpu.matmul %229, %231, %cst_79 {dimension_numbers = #tpu.dot_dimension_numbers<[1], [0], [0], [1], [0, 0, 1, 1], [], []>} : vector<8x42xbf16>, vector<42x42xbf16>, vector<8x42xf32> -> vector<8x42xf32>
    %c6 = arith.constant 6 : index
    %c0_80 = arith.constant 0 : index
    %233 = vector.load %arg7[%c6, %c0_80] : memref<12x42xf32, #tpu.memory_space<vmem>>, vector<1x42xf32>
    %234 = vector.shape_cast %233 : vector<1x42xf32> to vector<42xf32>
    %235 = vector.shape_cast %234 : vector<42xf32> to vector<1x42xf32>
    %236 = vector.broadcast %235 : vector<1x42xf32> to vector<8x42xf32>
    %237 = arith.addf %232, %236 : vector<8x42xf32>
    %238 = arith.addf %156, %237 : vector<8x42xf32>
    %c8 = arith.constant 8 : index
    %c0_81 = arith.constant 0 : index
    %239 = vector.load %arg7[%c8, %c0_81] : memref<12x42xf32, #tpu.memory_space<vmem>>, vector<1x42xf32>
    %240 = vector.shape_cast %239 : vector<1x42xf32> to vector<42xf32>
    %241 = vector.shape_cast %240 : vector<42xf32> to vector<1x42xf32>
    %c9 = arith.constant 9 : index
    %c0_82 = arith.constant 0 : index
    %242 = vector.load %arg7[%c9, %c0_82] : memref<12x42xf32, #tpu.memory_space<vmem>>, vector<1x42xf32>
    %243 = vector.shape_cast %242 : vector<1x42xf32> to vector<42xf32>
    %244 = vector.shape_cast %243 : vector<42xf32> to vector<1x42xf32>
    %cst_83 = arith.constant dense<0.000000e+00> : vector<8xf32>
    %245 = vector.multi_reduction <add>, %238, %cst_83 [1] : vector<8x42xf32> to vector<8xf32>
    %246 = vector.shape_cast %245 : vector<8xf32> to vector<8x1xf32>
    %cst_84 = arith.constant 4.200000e+01 : f32
    %247 = vector.broadcast %cst_84 : f32 to vector<8x1xf32>
    %248 = arith.divf %246, %247 : vector<8x1xf32>
    %249 = vector.broadcast %248 : vector<8x1xf32> to vector<8x42xf32>
    %250 = arith.subf %238, %249 : vector<8x42xf32>
    %251 = arith.mulf %250, %250 : vector<8x42xf32>
    %cst_85 = arith.constant dense<0.000000e+00> : vector<8xf32>
    %252 = vector.multi_reduction <add>, %251, %cst_85 [1] : vector<8x42xf32> to vector<8xf32>
    %253 = vector.shape_cast %252 : vector<8xf32> to vector<8x1xf32>
    %cst_86 = arith.constant 4.200000e+01 : f32
    %254 = vector.broadcast %cst_86 : f32 to vector<8x1xf32>
    %255 = arith.divf %253, %254 : vector<8x1xf32>
    %cst_87 = arith.constant 9.99999974E-6 : f32
    %256 = vector.broadcast %cst_87 : f32 to vector<8x1xf32>
    %257 = arith.addf %255, %256 : vector<8x1xf32>
    %258 = math.rsqrt %257 : vector<8x1xf32>
    %259 = vector.broadcast %258 : vector<8x1xf32> to vector<8x42xf32>
    %260 = arith.mulf %250, %259 : vector<8x42xf32>
    %261 = vector.broadcast %241 : vector<1x42xf32> to vector<8x42xf32>
    %262 = arith.mulf %260, %261 : vector<8x42xf32>
    %263 = vector.broadcast %244 : vector<1x42xf32> to vector<8x42xf32>
    %264 = arith.addf %262, %263 : vector<8x42xf32>
    %265 = arith.truncf %264 : vector<8x42xf32> to vector<8x42xbf16>
    %c1_88 = arith.constant 1 : index
    %c0_89 = arith.constant 0 : index
    %c0_90 = arith.constant 0 : index
    %266 = vector.load %arg4[%c1_88, %c0_89, %c0_90] : memref<2x42x2048xbf16, #tpu.memory_space<vmem>>, vector<1x42x2048xbf16>
    %267 = vector.shape_cast %266 : vector<1x42x2048xbf16> to vector<42x2048xbf16>
    %cst_91 = arith.constant dense<0.000000e+00> : vector<8x2048xf32>
    %268 = tpu.matmul %265, %267, %cst_91 {dimension_numbers = #tpu.dot_dimension_numbers<[1], [0], [0], [1], [0, 0, 1, 1], [], []>} : vector<8x42xbf16>, vector<42x2048xbf16>, vector<8x2048xf32> -> vector<8x2048xf32>
    %c1_92 = arith.constant 1 : index
    %c0_93 = arith.constant 0 : index
    %269 = vector.load %arg6[%c1_92, %c0_93] : memref<2x2048xf32, #tpu.memory_space<vmem>>, vector<1x2048xf32>
    %270 = vector.shape_cast %269 : vector<1x2048xf32> to vector<2048xf32>
    %271 = vector.shape_cast %270 : vector<2048xf32> to vector<1x2048xf32>
    %272 = vector.broadcast %271 : vector<1x2048xf32> to vector<8x2048xf32>
    %273 = arith.addf %268, %272 : vector<8x2048xf32>
    %cst_94 = arith.constant 0.000000e+00 : f32
    %274 = vector.broadcast %cst_94 : f32 to vector<8x2048xf32>
    %275 = arith.maximumf %273, %274 : vector<8x2048xf32>
    %276 = arith.truncf %275 : vector<8x2048xf32> to vector<8x2048xbf16>
    %c1_95 = arith.constant 1 : index
    %c0_96 = arith.constant 0 : index
    %c0_97 = arith.constant 0 : index
    %277 = vector.load %arg5[%c1_95, %c0_96, %c0_97] : memref<2x2048x128xbf16, #tpu.memory_space<vmem>>, vector<1x2048x128xbf16>
    %278 = vector.shape_cast %277 : vector<1x2048x128xbf16> to vector<2048x128xbf16>
    %cst_98 = arith.constant dense<0.000000e+00> : vector<8x128xf32>
    %279 = tpu.matmul %276, %278, %cst_98 {dimension_numbers = #tpu.dot_dimension_numbers<[1], [0], [0], [1], [0, 0, 1, 1], [], []>} : vector<8x2048xbf16>, vector<2048x128xbf16>, vector<8x128xf32> -> vector<8x128xf32>
    %280 = vector.extract_strided_slice %279 {offsets = [0, 0], sizes = [8, 42], strides = [1, 1]} : vector<8x128xf32> to vector<8x42xf32>
    %c7 = arith.constant 7 : index
    %c0_99 = arith.constant 0 : index
    %281 = vector.load %arg7[%c7, %c0_99] : memref<12x42xf32, #tpu.memory_space<vmem>>, vector<1x42xf32>
    %282 = vector.shape_cast %281 : vector<1x42xf32> to vector<42xf32>
    %283 = vector.shape_cast %282 : vector<42xf32> to vector<1x42xf32>
    %284 = vector.broadcast %283 : vector<1x42xf32> to vector<8x42xf32>
    %285 = arith.addf %280, %284 : vector<8x42xf32>
    %286 = arith.addf %264, %285 : vector<8x42xf32>
    %c10 = arith.constant 10 : index
    %c0_100 = arith.constant 0 : index
    %287 = vector.load %arg7[%c10, %c0_100] : memref<12x42xf32, #tpu.memory_space<vmem>>, vector<1x42xf32>
    %288 = vector.shape_cast %287 : vector<1x42xf32> to vector<42xf32>
    %289 = vector.shape_cast %288 : vector<42xf32> to vector<1x42xf32>
    %c11 = arith.constant 11 : index
    %c0_101 = arith.constant 0 : index
    %290 = vector.load %arg7[%c11, %c0_101] : memref<12x42xf32, #tpu.memory_space<vmem>>, vector<1x42xf32>
    %291 = vector.shape_cast %290 : vector<1x42xf32> to vector<42xf32>
    %292 = vector.shape_cast %291 : vector<42xf32> to vector<1x42xf32>
    %cst_102 = arith.constant dense<0.000000e+00> : vector<8xf32>
    %293 = vector.multi_reduction <add>, %286, %cst_102 [1] : vector<8x42xf32> to vector<8xf32>
    %294 = vector.shape_cast %293 : vector<8xf32> to vector<8x1xf32>
    %cst_103 = arith.constant 4.200000e+01 : f32
    %295 = vector.broadcast %cst_103 : f32 to vector<8x1xf32>
    %296 = arith.divf %294, %295 : vector<8x1xf32>
    %297 = vector.broadcast %296 : vector<8x1xf32> to vector<8x42xf32>
    %298 = arith.subf %286, %297 : vector<8x42xf32>
    %299 = arith.mulf %298, %298 : vector<8x42xf32>
    %cst_104 = arith.constant dense<0.000000e+00> : vector<8xf32>
    %300 = vector.multi_reduction <add>, %299, %cst_104 [1] : vector<8x42xf32> to vector<8xf32>
    %301 = vector.shape_cast %300 : vector<8xf32> to vector<8x1xf32>
    %cst_105 = arith.constant 4.200000e+01 : f32
    %302 = vector.broadcast %cst_105 : f32 to vector<8x1xf32>
    %303 = arith.divf %301, %302 : vector<8x1xf32>
    %cst_106 = arith.constant 9.99999974E-6 : f32
    %304 = vector.broadcast %cst_106 : f32 to vector<8x1xf32>
    %305 = arith.addf %303, %304 : vector<8x1xf32>
    %306 = math.rsqrt %305 : vector<8x1xf32>
    %307 = vector.broadcast %306 : vector<8x1xf32> to vector<8x42xf32>
    %308 = arith.mulf %298, %307 : vector<8x42xf32>
    %309 = vector.broadcast %289 : vector<1x42xf32> to vector<8x42xf32>
    %310 = arith.mulf %308, %309 : vector<8x42xf32>
    %311 = vector.broadcast %292 : vector<1x42xf32> to vector<8x42xf32>
    %312 = arith.addf %310, %311 : vector<8x42xf32>
    %313 = arith.truncf %312 : vector<8x42xf32> to vector<8x42xbf16>
    %c0_107 = arith.constant 0 : index
    %c0_108 = arith.constant 0 : index
    %314 = vector.load %arg8[%c0_107, %c0_108] : memref<42x128xbf16, #tpu.memory_space<vmem>>, vector<42x128xbf16>
    %cst_109 = arith.constant dense<0.000000e+00> : vector<8x128xf32>
    %315 = tpu.matmul %313, %314, %cst_109 {dimension_numbers = #tpu.dot_dimension_numbers<[1], [0], [0], [1], [0, 0, 1, 1], [], []>} : vector<8x42xbf16>, vector<42x128xbf16>, vector<8x128xf32> -> vector<8x128xf32>
    %c0_110 = arith.constant 0 : index
    %c0_111 = arith.constant 0 : index
    %316 = vector.load %arg9[%c0_110, %c0_111] : memref<1x128xf32, #tpu.memory_space<vmem>>, vector<1x128xf32>
    %317 = vector.broadcast %316 : vector<1x128xf32> to vector<8x128xf32>
    %318 = arith.addf %315, %317 : vector<8x128xf32>
    %c0_112 = arith.constant 0 : index
    %c0_113 = arith.constant 0 : index
    %319 = vector.load %arg10[%c0_112, %c0_113] : memref<8x128xf32, #tpu.memory_space<vmem>>, vector<8x128xf32>
    tpu.vector_store %arg10[%c0_112, %c0_113], %318 {strides = array<i32>} : memref<8x128xf32, #tpu.memory_space<vmem>>, vector<8x128xf32>,
    return
  }
}

</mosaic_0001>

<bundles_post_ra>
// kernel: transformer_forward.1
= control target key start
LH: loop header
LB: loop body
LE: loop exit
PB: predicated region body
PF: predicated region fallthrough
CT: control target
= control target key end

     0   :  { %15 = vsyncpa [#allocation3], 0  ;;  %s7764_s0 = inlined_call_operand.vmem [shape: f32[8,42], index: 0, kind: input, shape index: {}]   ;;  %s7765_s1 = inlined_call_operand.vmem [shape: bf16[2,42,128], index: 1, kind: input, shape index: {}]   ;;  %s7766_s2 = inlined_call_operand.vmem [shape: f32[2,1,128], index: 2, kind: input, shape index: {}]   ;;  %s7767_s3 = inlined_call_operand.vmem [shape: bf16[2,42,42], index: 3, kind: input, shape index: {}]   ;;  %s7768_s4 = inlined_call_operand.vmem [shape: bf16[2,42,2048], index: 4, kind: input, shape index: {}]   ;;  %s7769_s5 = inlined_call_operand.hbm [shape: bf16[2,2048,128], index: 5, kind: input, shape index: {}]   ;;  %s7770_s6 = inlined_call_operand.vmem [shape: f32[2,2048], index: 6, kind: input, shape index: {}]   ;;  %s7771_s7 = inlined_call_operand.vmem [shape: f32[12,42], index: 7, kind: input, shape index: {}]   ;;  %s7772_s8 = inlined_call_operand.vmem [shape: bf16[42,128], index: 8, kind: input, shape index: {}]   ;;  %s7773_s9 = inlined_call_operand.vmem [shape: f32[1,128], index: 9, kind: input, shape index: {}]   ;;  %s7774_s10 = inlined_call_operand.hbm [shape: f32[8,128], index: 10, kind: output, shape index: {}]  }
   0x1   :  { %16 = vsyncpa [#allocation4], 0  ;;  %s6872_s13 = smov [#allocation2]   ;;  %s6824_s17 = scalar_lea.hbm %s7769_s5, 32768 }
   0x2   :  { %s32_s14 = sshll.u32 %s6872_s13, 4  ;;  %p6825_p0 = scmp.ne.s32.totalorder %s7769_s5, %s6824_s17  ;;  %s33_s14 = int_to_ptr.vmem [resolvable:$true] %s32_s14 }
   0x3   :  { %p6828_p1 = scmp.lt.u32.totalorder %s6824_s17, %s7769_s5 }
   0x5   :  { %p6830_p2 = pnand %p6828_p1, %p6825_p0 }
   0x7   :  { %6833 = shalt.err (!%p6830_p2)
}
   0x8   :  { %s6834_s22 = scalar_lea.vmem %s33_s14, 32768  ;;  %p6839_p4 = scmp.lt.s32.totalorder %s33_s14, %s33_s14 }
   0x9   :  { %p6835_p3 = scmp.ne.s32.totalorder %s33_s14, %s6834_s22  ;;  %p6840_p5 = scmp.lt.s32.totalorder %s6834_s22, %s6834_s22 }
   0xb   :  { %p6841_p6 = por %p6840_p5, %p6839_p4 }
   0xd   :  { %p6842_p7 = pnand %p6841_p6, %p6835_p3 }
   0xf   :  { %6845 = shalt.err (!%p6842_p7)
}
  0x10   :  { %s6873_s23 = smov 64   ;;  %s6874_s24 = smov 4  }
  0x11   :  { %38 = dma.hbm_to_vmem [thread:$0]  %s7769_s5, 32768, %s33_s14, [#allocation3], %s6873_s23, %s6873_s23, %s6874_s24  }
  0x12   :  { %6868 = dma.done.wait [#allocation3], 32768  }
  0x13   :  { %6869 = vsyncadd [#allocation3], 4294934528  ;;  %v6875_v0 = vmov 0.0   ;;  %vm6876_vm0 = vmmov 0   ;;  %v6520_v1 = vld [vmem:[%s7765_s1] sm:$0xff]   ;;  %v6521_v2 = vld [vmem:[%s7765_s1 + $0x8] sm:$0xff]  }
  0x14   :  { %6381 = vmatprep.subr.bf16.mxu0 %v6875_v0  ;;  %6387 = vmatprep.mubr.msk.bf16.mxu0 %vm6876_vm0, %v6875_v0  ;;  %vm87_vm1 = vcmask 1044480   ;;  %v6522_v3 = vld [vmem:[%s7765_s1 + $0x10] sm:$0x1f]   ;;  %vm83_vm2 = vcmask 343040   ;;  %v51_v5 = vld [vmem:[%s7764_s0] sm:$0xff]  ;;  %s6877_s16 = smov 86  }
  0x15   :  { %6391 = vmatprep.subr.bf16.mxu1 %v6875_v0  ;;  %6393 = vmatprep.mubr.msk.bf16.mxu1 %vm6876_vm0, %v6875_v0  ;;  %v89_v4 = vsel %vm87_vm1, %v6522_v3, 0  ;;  %v52_v6 = vpack.c.bf16 %v51_v5, %v51_v5  ;;  %v5490_v7 = vld [vmem:[%s7766_s2] ss:$0 sm:$0xff]  ;;  %s6878_s17 = smov 114   ;;  %s6879_s18 = smov 72   ;;  %vm137_vm3 = vcmask 113664  }
  0x16   :  { %6382 = vmatpush3.bf16.msra.mxu0 %v6520_v1  ;;  %s6880_s19 = smov 58   ;;  %s6881_s20 = smov 100   ;;  %vm184_vm4 = vcmask 64512   ;;  %vm202_vm5 = vcmask 1043456   ;;  %vm476_vm6 = vcmask 228352  }
  0x17   :  { %6383 = vmatprep.subr.bf16.mxu0 %v6875_v0  ;;  %s6882_s21 = smov 30   ;;  %s6883_s22 = smov 44  }
  0x18   :  { %s6884_s23 = smov 16   ;;  %s6885_s28 = smov 14  }
  0x19   :  { %s6886_s30 = smov 28   ;;  %s6888_s5 = smov [#allocation5]  }
  0x1a   :  { %6384 = vmatpush3.bf16.msra.mxu0 %v6521_v2  ;;  %s5481_s11 = sshll.u32 %s6888_s5, 4  ;;  %s5482_s11 = int_to_ptr.vmem [resolvable:$true] %s5481_s11 }
  0x1b   :  { %6385 = vmatprep.subr.bf16.mxu0 %v6875_v0  ;;  %p6851_p9 = scmp.lt.s32.totalorder %s5482_s11, %s5482_s11 }
  0x1e   :  { %6386 = vmatpush3.bf16.msra.mxu0 %v89_v4 }
  0x1f   :  { %6403 = vmatprep.subr.bf16.mxu0 %v6875_v0 }
  0x21   :  { %6388 = vmatmul.mubr.msk.bf16.vlgmr.msra.gmra.mrb[0].mxu0 %vm83_vm2, %v52_v6 }
  0x22   :  { %6405 = vmatprep.mubr.msk.bf16.mxu0 %vm6876_vm0, %v6875_v0 }
  0xf4   :  { %v125_v8 = vpop.f32.mrb[0].mxu0 }
  0xf5   :  { %v126_v9 = vadd.f32 %v5490_v7, %v125_v8  ;;  %v6389_v10 = vpop.f32.mrb[1].mxu0 }
  0xf6   :  { %v128_v11 = vpop.f32.mrb[2].mxu0  ;;  %v6524_v10 = vld [vmem:[%s7767_s3 + $0x8] sm:$0xff]  }
  0xf7   :  { %v131_v12 = vmul.f32 0.26726124, %v126_v9  ;;  %v6984_v13 = vpack.c.bf16 %v126_v9, %v126_v9  ;;  %v6390_v14 = vpop.f32.mrb[3].mxu0  ;;  %v6523_v9 = vld [vmem:[%s7767_s3] sm:$0xff]  }
  0xf9   :  { %v132_v15 = vpack.c.bf16 %v131_v12, %v131_v12  ;;  %135 = vrot.lane.b32.xlu0 %v6984_v13, %s6877_s16 }
  0xfb   :  { %247 = vrot.lane.b32.xlu1 %v132_v15, %s6878_s17 }
  0xfd   :  { %249 = vrot.lane.b32.xlu0 %v6984_v13, %s6879_s18 }
  0xff   :  { %359 = vrot.lane.b32.xlu1 %v6984_v13, %s6880_s19 }
 0x101   :  { %357 = vrot.lane.b32.xlu0 %v132_v15, %s6881_s20 }
 0x16b   :  { %v136_v16 = vpop.permute.xlu0 %135 }
 0x16c   :  { %v142_v17 = vsel %vm137_vm3, %v136_v16, 0 }
 0x16d   :  { %6392 = vmatpush3.bf16.xpose.msra.mxu1 %v142_v17  ;;  %v248_v18 = vpop.permute.xlu1 %247 }
 0x16e   :  { %6397 = vmatprep.subr.bf16.mxu1 %v6875_v0 }
 0x16f   :  { %v250_v19 = vpop.permute.xlu0 %249 }
 0x170   :  { %v255_v20 = vsel %vm137_vm3, %v250_v19, 0  ;;  %v6525_v19 = vld [vmem:[%s7767_s3 + $0x10] sm:$0x1f]  }
 0x171   :  { %6404 = vmatpush3.bf16.xpose.msra.mxu0 %v255_v20  ;;  %v360_v21 = vpop.permute.xlu1 %359  ;;  %v511_v20 = vsel %vm87_vm1, %v6525_v19, 0 }
 0x172   :  { %6415 = vmatprep.subr.bf16.mxu0 %v6875_v0  ;;  %v365_v22 = vsel %vm137_vm3, %v360_v21, 0 }
 0x173   :  { %v358_v23 = vpop.permute.xlu0 %357 }
 0x174   :  { %6394 = vmatmul.mubr.msk.bf16.vlgmr.msra.gmra.mrb[0].mxu1 %vm137_vm3, %v132_v15 }
 0x175   :  { %6399 = vmatprep.mubr.msk.bf16.mxu1 %vm6876_vm0, %v6875_v0 }
 0x178   :  { %6406 = vmatmul.mubr.msk.bf16.vlgmr.msra.gmra.mrb[4].mxu0 %vm137_vm3, %v248_v18 }
 0x179   :  { %6416 = vmatpush3.bf16.xpose.msra.mxu0 %v365_v22  ;;  %6417 = vmatprep.mubr.msk.bf16.mxu0 %vm6876_vm0, %v6875_v0 }
 0x17a   :  { %6427 = vmatprep.subr.bf16.mxu0 %v6875_v0 }
 0x180   :  { %6418 = vmatmul.mubr.msk.bf16.vlgmr.msra.gmra.mrb[8].mxu0 %vm137_vm3, %v358_v23 }
 0x181   :  { %6433 = vmatprep.mubr.msk.bf16.mxu0 %vm6876_vm0, %v6875_v0  ;;  %6428 = vmatpush3.bf16.msra.mxu0 %v6523_v9  ;;  %v584_v9 = vld [vmem:[%s7768_s4 + $0x18] sm:$0xff] }
 0x182   :  { %6429 = vmatprep.subr.bf16.mxu0 %v6875_v0 }
 0x185   :  { %6430 = vmatpush3.bf16.msra.mxu0 %v6524_v10 }
 0x186   :  { %6431 = vmatprep.subr.bf16.mxu0 %v6875_v0 }
 0x189   :  { %6432 = vmatpush3.bf16.msra.mxu0 %v511_v20  ;;  %v5506_v20 = vld [vmem:[%s7771_s7 + $0x2] ss:$0 sm:$0xff] }
 0x247   :  { %v178_v24 = vpop.f32.mrb[0].mxu1 }
 0x248   :  { %v6395_v25 = vpop.f32.mrb[1].mxu1  ;;  %v185_v26 = vsel %vm184_vm4, %v178_v24, -inf }
 0x249   :  { %186 = vmax.xlane.f32.xlu1 %v185_v26  ;;  %v181_v27 = vpop.f32.mrb[2].mxu1 }
 0x24a   :  { %v6396_v28 = vpop.f32.mrb[3].mxu1 }
 0x24b   :  { %v291_v29 = vpop.f32.mrb[4].mxu0 }
 0x24c   :  { %v6407_v30 = vpop.f32.mrb[5].mxu0  ;;  %v297_v31 = vsel %vm184_vm4, %v291_v29, -inf }
 0x24d   :  { %298 = vmax.xlane.f32.xlu0 %v297_v31  ;;  %v294_v32 = vpop.f32.mrb[6].mxu0  ;;  %v5501_v30 = vld [vmem:[%s7771_s7] ss:$0 sm:$0xff] }
 0x24e   :  { %v6408_v33 = vpop.f32.mrb[7].mxu0 }
 0x253   :  { %v401_v34 = vpop.f32.mrb[8].mxu0 }
 0x254   :  { %v6419_v35 = vpop.f32.mrb[9].mxu0  ;;  %v407_v36 = vsel %vm184_vm4, %v401_v34, -inf }
 0x255   :  { %408 = vmax.xlane.f32.xlu0 %v407_v36  ;;  %v404_v37 = vpop.f32.mrb[10].mxu0  ;;  %v6823_v36 = vld [vmem:[%s7764_s0] sm:$0xff] }
 0x256   :  { %v6420_v38 = vpop.f32.mrb[11].mxu0 }
 0x2d6   :  { %v187_v39 = vpop.xlane.xlu1 %186 }
 0x2d7   :  { %v188_v40 = vsub.f32 %v178_v24, %v187_v39 }
 0x2d9   :  { %v189_v41 = vmul.f32 1.442695, %v188_v40 }
 0x2da   :  { %v299_v42 = vpop.xlane.xlu0 %298 }
 0x2db   :  { %6791 = vpow2.f32 %v189_v41  ;;  %v300_v43 = vsub.f32 %v291_v29, %v299_v42 }
 0x2dd   :  { %v301_v44 = vmul.f32 1.442695, %v300_v43 }
 0x2df   :  { %6793 = vpow2.f32 %v301_v44  ;;  %v581_v44 = vld [vmem:[%s7768_s4] sm:$0xff] }
 0x2e2   :  { %v409_v49 = vpop.xlane.xlu0 %408 }
 0x2e3   :  { %v410_v50 = vsub.f32 %v401_v34, %v409_v49 }
 0x2e5   :  { %v6792_v45 = vpop.eup %6791  ;;  %v411_v51 = vmul.f32 1.442695, %v410_v50 }
 0x2e6   :  { %v191_v46 = vsel %vm184_vm4, %v6792_v45, 0.0 }
 0x2e7   :  { %192 = vadd.xlane.f32.xlu1 %v191_v46  ;;  %6795 = vpow2.f32 %v411_v51  ;;  %v582_v46 = vld [vmem:[%s7768_s4 + $0x8] sm:$0xff] }
 0x2e9   :  { %v6794_v47 = vpop.eup %6793 }
 0x2ea   :  { %v303_v48 = vsel %vm184_vm4, %v6794_v47, 0.0 }
 0x2eb   :  { %304 = vadd.xlane.f32.xlu0 %v303_v48  ;;  %v590_v48 = vld [vmem:[%s7768_s4 + $0x48] sm:$0xff] }
 0x2ec   :  { %v5511_v50 = vcombine.low %v582_v46, %v590_v48  ;;  %v5512_v51 = vcombine.high %v582_v46, %v590_v48 }
 0x2ee   :  { %1030 = vmatprep.subr.bf16.mxu0 %v5512_v51  ;;  %v609_v51 = vld [vmem:[%s7768_s4 + $0xe0] sm:$0xff] }
 0x2f1   :  { %v6796_v52 = vpop.eup %6795 }
 0x2f2   :  { %v413_v53 = vsel %vm184_vm4, %v6796_v52, 0.0 }
 0x2f8   :  { %309 = vrot.lane.b32.xlu1 %v6984_v13, %s6882_s21 }
 0x301   :  { %197 = vrot.lane.b32.xlu0 %v6984_v13, %s6883_s22 }
 0x31c   :  { %414 = vadd.xlane.f32.xlu1 %v413_v53  ;;  %v605_v53 = vld [vmem:[%s7768_s4 + $0xc0] sm:$0xff] }
 0x32d   :  { %419 = vrot.lane.b32.xlu1 %v6984_v13, %s6884_s23 }
 0x374   :  { %v193_v54 = vpop.xlane.xlu1 %192 }
 0x375   :  { %6797 = vrcp.f32 %v193_v54  ;;  %v598_v54 = vld [vmem:[%s7768_s4 + $0x88] sm:$0xff] }
 0x378   :  { %v305_v55 = vpop.xlane.xlu0 %304  ;;  %v310_v60 = vpop.permute.xlu1 %309 }
 0x379   :  { %6799 = vrcp.f32 %v305_v55  ;;  %v315_v63 = vsel %vm202_vm5, %v310_v60, 0  ;;  %v613_v60 = vld [vmem:[%s7768_s4 + $0x100] sm:$0xff] }
 0x37c   :  { %v198_v56 = vpop.permute.xlu0 %197 }
 0x37d   :  { %v204_v57 = vsel %vm202_vm5, %v198_v56, 0  ;;  %v606_v56 = vld [vmem:[%s7768_s4 + $0xc8] sm:$0xff] }
 0x37e   :  { %6398 = vmatpush3.bf16.msra.mxu1 %v204_v57 }
 0x37f   :  { %v6798_v58 = vpop.eup %6797  ;;  %6409 = vmatprep.subr.bf16.mxu1 %v6875_v0 }
 0x380   :  { %v195_v59 = vmul.f32 %v6798_v58, %v6792_v45  ;;  %v589_v45 = vld [vmem:[%s7768_s4 + $0x40] sm:$0xff]  ;;  %v5527_v58 = vcombine.low %v598_v54, %v606_v56 }
 0x381   :  { %v5509_v49 = vcombine.low %v581_v44, %v589_v45 }
 0x382   :  { %v196_v61 = vpack.c.bf16 %v195_v59, %v195_v59  ;;  %v5528_v59 = vcombine.high %v598_v54, %v606_v56 }
 0x383   :  { %v6800_v62 = vpop.eup %6799 }
 0x384   :  { %6400 = vmatmul.mubr.msk.bf16.vlgmr.msra.gmra.mrb[4].mxu1 %vm184_vm4, %v196_v61  ;;  %v307_v1 = vmul.f32 %v6800_v62, %v6794_v47  ;;  %v5510_v47 = vcombine.high %v581_v44, %v589_v45  ;;  %v621_v61 = vld [vmem:[%s7768_s4 + $0x140] sm:$0x11]  ;;  %v614_v62 = vld [vmem:[%s7768_s4 + $0x108] sm:$0xff] }
 0x385   :  { %6410 = vmatpush3.bf16.msra.mxu1 %v315_v63  ;;  %6411 = vmatprep.mubr.msk.bf16.mxu1 %vm6876_vm0, %v6875_v0  ;;  %v5542_v63 = vcombine.high %v613_v60, %v621_v61  ;;  %v586_v44 = vld [vmem:[%s7768_s4 + $0x28] sm:$0xff] }
 0x386   :  { %6421 = vmatprep.subr.bf16.mxu1 %v6875_v0  ;;  %v308_v2 = vpack.c.bf16 %v307_v1, %v307_v1  ;;  %v622_v1 = vld [vmem:[%s7768_s4 + $0x148] sm:$0x11] }
 0x387   :  { %v594_v45 = vld [vmem:[%s7768_s4 + $0x68] sm:$0xff] }
 0x38c   :  { %6412 = vmatmul.mubr.msk.bf16.vlgmr.msra.gmra.mrb[8].mxu1 %vm184_vm4, %v308_v2  ;;  %v5541_v2 = vcombine.low %v613_v60, %v621_v61  ;;  %v618_v60 = vld [vmem:[%s7768_s4 + $0x128] sm:$0xff] }
 0x38d   :  { %6423 = vmatprep.mubr.msk.bf16.mxu1 %vm6876_vm0, %v6875_v0  ;;  %v626_v61 = vld [vmem:[%s7768_s4 + $0x168] sm:$0x11] }
 0x3a9   :  { %v415_v3 = vpop.xlane.xlu1 %414 }
 0x3aa   :  { %6801 = vrcp.f32 %v415_v3  ;;  %v5544_v3 = vcombine.high %v614_v62, %v622_v1 }
 0x3ad   :  { %v420_v4 = vpop.permute.xlu1 %419 }
 0x3ae   :  { %v425_v5 = vsel %vm202_vm5, %v420_v4, 0  ;;  %v5543_v4 = vcombine.low %v614_v62, %v622_v1 }
 0x3af   :  { %6422 = vmatpush3.bf16.msra.mxu1 %v425_v5  ;;  %v942_v5 = vsel %vm87_vm1, %v5541_v2, 0  ;;  %v5552_v2 = vcombine.high %v618_v60, %v626_v61 }
 0x3b0   :  { %989 = vmatprep.subr.bf16.mxu1 %v5510_v47 }
 0x3b4   :  { %v6802_v6 = vpop.eup %6801 }
 0x3b5   :  { %v417_v7 = vmul.f32 %v6802_v6, %v6796_v52  ;;  %v597_v52 = vld [vmem:[%s7768_s4 + $0x80] sm:$0xff]  ;;  %v948_v6 = vsel %vm87_vm1, %v5543_v4, 0  ;;  %v5551_v4 = vcombine.low %v618_v60, %v626_v61  ;;  %v6551_v60 = vld [vmem:[#allocation2 + $0xf0] sm:$0xff]  }
 0x3b6   :  { %v5526_v55 = vcombine.high %v597_v52, %v605_v53  ;;  %v5525_v57 = vcombine.low %v597_v52, %v605_v53  ;;  %v602_v52 = vld [vmem:[%s7768_s4 + $0xa8] sm:$0xff]  ;;  %v6552_v61 = vld [vmem:[#allocation2 + $0x30] sm:$0xff]  }
 0x3b7   :  { %v418_v8 = vpack.c.bf16 %v417_v7, %v417_v7  ;;  %v583_v7 = vld [vmem:[%s7768_s4 + $0x10] sm:$0xff]  ;;  %v610_v53 = vld [vmem:[%s7768_s4 + $0xe8] sm:$0xff] }
 0x3b9   :  { %6424 = vmatmul.mubr.msk.bf16.vlgmr.msra.gmra.mrb[12].mxu1 %vm184_vm4, %v418_v8  ;;  %v591_v8 = vld [vmem:[%s7768_s4 + $0x50] sm:$0xff] }
 0x3ba   :  { %990 = vmatpush1.bf16.msra.mxu1 %v5509_v49  ;;  %v5513_v10 = vcombine.low %v583_v7, %v591_v8  ;;  %v5520_v49 = vcombine.high %v586_v44, %v594_v45 }
 0x3bb   :  { %991 = vmatprep.subr.bf16.mxu1 %v5526_v55  ;;  %v5519_v55 = vcombine.low %v586_v44, %v594_v45  ;;  %v6534_v44 = vld [vmem:[#allocation2 + $0x50] sm:$0xff]  }
 0x3bc   :  { %v6535_v45 = vld [vmem:[#allocation2 + $0xd0] sm:$0xff]  }
 0x3be   :  { %992 = vmatpush1.bf16.msra.mxu1 %v5525_v57  ;;  %v5536_v57 = vcombine.high %v602_v52, %v610_v53 }
 0x3bf   :  { %5557 = vmatprep.subr.msk.bf16.mxu1 %vm87_vm1, %v5542_v63  ;;  %v5535_v63 = vcombine.low %v602_v52, %v610_v53  ;;  %v6543_v52 = vld [vmem:[#allocation2 + $0xe0] sm:$0xff]  }
 0x3c0   :  { %v6544_v53 = vld [vmem:[#allocation2 + $0x20] sm:$0xff]  }
 0x3c2   :  { %994 = vmatpush1.bf16.msra.mxu1 %v942_v5  ;;  %v587_v5 = vld [vmem:[%s7768_s4 + $0x30] sm:$0xff] }
 0x457   :  { %v240_v11 = vpop.f32.mrb[4].mxu1 }
 0x458   :  { %v6401_v12 = vpop.f32.mrb[5].mxu1 }
 0x459   :  { %v243_v13 = vpop.f32.mrb[6].mxu1  ;;  %v592_v12 = vld [vmem:[%s7768_s4 + $0x58] sm:$0xff] }
 0x45a   :  { %v6402_v14 = vpop.f32.mrb[7].mxu1  ;;  %v6887_v13 = vmov 0  }
 0x45b   :  { %1021 = vmatprep.mubr.bf16.mxu1 %v6887_v13  ;;  %v5515_v14 = vcombine.low %v584_v9, %v592_v12 }
 0x45f   :  { %v351_v15 = vpop.f32.mrb[8].mxu1 }
 0x460   :  { %468 = vrot.lane.b32.xlu0 %v351_v15, %s6885_s28  ;;  %v6413_v16 = vpop.f32.mrb[9].mxu1  ;;  %v5516_v15 = vcombine.high %v584_v9, %v592_v12 }
 0x461   :  { %v354_v17 = vpop.f32.mrb[10].mxu1 }
 0x462   :  { %v6414_v18 = vpop.f32.mrb[11].mxu1 }
 0x48c   :  { %v461_v21 = vpop.f32.mrb[12].mxu1 }
 0x48d   :  { %472 = vrot.lane.b32.xlu1 %v461_v21, %s6886_s30  ;;  %v6425_v22 = vpop.f32.mrb[13].mxu1 }
 0x48e   :  { %v464_v23 = vpop.f32.mrb[14].mxu1  ;;  %v5507_v22 = vld [vmem:[%s7771_s7 + $0x3] ss:$0 sm:$0xff] }
 0x48f   :  { %v6426_v24 = vpop.f32.mrb[15].mxu1 }
 0x490   :  { %v599_v24 = vld [vmem:[%s7768_s4 + $0x90] sm:$0xff] }
 0x4d2   :  { %v469_v25 = vpop.permute.xlu0 %468 }
 0x4d3   :  { %v475_v26 = vsel %vm137_vm3, %v240_v11, %v469_v25  ;;  %v5514_v11 = vcombine.high %v583_v7, %v591_v8  ;;  %v607_v25 = vld [vmem:[%s7768_s4 + $0xd0] sm:$0xff]  ;;  %v588_v7 = vld [vmem:[%s7768_s4 + $0x38] sm:$0xff] }
 0x4d4   :  { %v596_v8 = vld [vmem:[%s7768_s4 + $0x78] sm:$0xff] }
 0x4d5   :  { %1071 = vmatprep.subr.bf16.mxu1 %v5514_v11  ;;  %v5524_v12 = vcombine.high %v588_v7, %v596_v8 }
 0x4ff   :  { %v473_v27 = vpop.permute.xlu1 %472 }
 0x500   :  { %v477_v28 = vsel %vm476_vm6, %v475_v26, %v473_v27  ;;  %v600_v26 = vld [vmem:[%s7768_s4 + $0x98] sm:$0xff] }
 0x501   :  { %v478_v29 = vpack.c.bf16 %v477_v28, %v477_v28  ;;  %v608_v27 = vld [vmem:[%s7768_s4 + $0xd8] sm:$0xff] }
 0x503   :  { %6434 = vmatmul.mubr.msk.bf16.vlgmr.msra.gmra.mrb[12].mxu0 %vm83_vm2, %v478_v29 }
 0x504   :  { %1031 = vmatpush1.bf16.msra.mxu0 %v5511_v50  ;;  %1062 = vmatprep.mubr.bf16.mxu0 %v6887_v13  ;;  %v601_v50 = vld [vmem:[%s7768_s4 + $0xa0] sm:$0xff] }
 0x505   :  { %1032 = vmatprep.subr.bf16.mxu0 %v5528_v59  ;;  %v5534_v56 = vcombine.high %v601_v50, %v609_v51  ;;  %v625_v59 = vld [vmem:[%s7768_s4 + $0x160] sm:$0x11]  ;;  %v5533_v62 = vcombine.low %v601_v50, %v609_v51  ;;  %v6540_v50 = vld [vmem:[#allocation2 + $0x18] sm:$0xff]  }
 0x506   :  { %v6542_v51 = vld [vmem:[#allocation2 + $0x60] sm:$0xff]  }
 0x508   :  { %1033 = vmatpush1.bf16.msra.mxu0 %v5527_v58  ;;  %v617_v58 = vld [vmem:[%s7768_s4 + $0x120] sm:$0xff] }
 0x509   :  { %5559 = vmatprep.subr.msk.bf16.mxu0 %vm87_vm1, %v5544_v3  ;;  %v5550_v1 = vcombine.high %v617_v58, %v625_v59  ;;  %v5549_v3 = vcombine.low %v617_v58, %v625_v59  ;;  %v6549_v58 = vld [vmem:[#allocation2 + $0xa8] sm:$0xff]   ;;  %v6550_v59 = vld [vmem:[#allocation2 + $0x70] sm:$0xff]  }
 0x50b   :  { %v966_v9 = vsel %vm87_vm1, %v5549_v3, 0  ;;  %v6557_v3 = vld [vmem:[#allocation2 + $0xb8] sm:$0xff]  }
 0x50c   :  { %1035 = vmatpush1.bf16.msra.mxu0 %v948_v6  ;;  %v595_v6 = vld [vmem:[%s7768_s4 + $0x70] sm:$0xff] }
 0x50d   :  { %1112 = vmatprep.subr.bf16.mxu0 %v5516_v15  ;;  %v5522_v11 = vcombine.high %v587_v5, %v595_v6  ;;  %v611_v15 = vld [vmem:[%s7768_s4 + $0xf0] sm:$0xff] }
 0x5d6   :  { %v547_v31 = vpop.f32.mrb[12].mxu0 }
 0x5d7   :  { %v548_v32 = vadd.f32 %v5501_v30, %v547_v31  ;;  %v6435_v33 = vpop.f32.mrb[13].mxu0  ;;  %v5530_v30 = vcombine.high %v599_v24, %v607_v25  ;;  %v5532_v31 = vcombine.high %v600_v26, %v608_v27 }
 0x5d8   :  { %v550_v34 = vpop.f32.mrb[14].mxu0  ;;  %v623_v33 = vld [vmem:[%s7768_s4 + $0x150] sm:$0x11] }
 0x5d9   :  { %v6436_v35 = vpop.f32.mrb[15].mxu0  ;;  %v553_v37 = vadd.f32 %v6823_v36, %v548_v32  ;;  %v615_v32 = vld [vmem:[%s7768_s4 + $0x110] sm:$0xff]  ;;  %v616_v34 = vld [vmem:[%s7768_s4 + $0x118] sm:$0xff]  ;;  %v5529_v36 = vcombine.low %v599_v24, %v607_v25 }
 0x5da   :  { %v624_v35 = vld [vmem:[%s7768_s4 + $0x158] sm:$0x11] }
 0x5db   :  { %v556_v38 = vsel %vm83_vm2, %v553_v37, 0.0  ;;  %v620_v24 = vld [vmem:[%s7768_s4 + $0x138] sm:$0xff] }
 0x5dc   :  { %557 = vadd.xlane.f32.xlu0 %v556_v38  ;;  %v5546_v38 = vcombine.high %v615_v32, %v623_v33  ;;  %v628_v25 = vld [vmem:[%s7768_s4 + $0x178] sm:$0x11] }
 0x669   :  { %v558_v39 = vpop.xlane.xlu0 %557 }
 0x66a   :  { %v560_v40 = vmul.f32 0.023809524, %v558_v39  ;;  %v5548_v39 = vcombine.high %v616_v34, %v624_v35 }
 0x66c   :  { %v561_v41 = vsub.f32 %v553_v37, %v560_v40  ;;  %v5531_v37 = vcombine.low %v600_v26, %v608_v27  ;;  %v5545_v40 = vcombine.low %v615_v32, %v623_v33  ;;  %v5555_v33 = vcombine.low %v620_v24, %v628_v25 }
 0x66e   :  { %v562_v42 = vmul.f32 %v561_v41, %v561_v41  ;;  %v954_v46 = vsel %vm87_vm1, %v5545_v40, 0  ;;  %v6530_v40 = vld [vmem:[#allocation2 + $0x48] sm:$0xff]  }
 0x670   :  { %v563_v43 = vsel %vm83_vm2, %v562_v42, 0.0  ;;  %v585_v42 = vld [vmem:[%s7768_s4 + $0x20] sm:$0xff] }
 0x671   :  { %564 = vadd.xlane.f32.xlu1 %v563_v43  ;;  %v593_v43 = vld [vmem:[%s7768_s4 + $0x60] sm:$0xff] }
 0x672   :  { %v5518_v48 = vcombine.high %v585_v42, %v593_v43  ;;  %v5517_v54 = vcombine.low %v585_v42, %v593_v43  ;;  %v6532_v42 = vld [vmem:[#allocation2 + $0x8] sm:$0xff]  }
 0x673   :  { %v6533_v43 = vld [vmem:[#allocation2 + $0x88] sm:$0xff]  }
 0x6fe   :  { %v565_v16 = vpop.xlane.xlu1 %564 }
 0x6ff   :  { %v566_v17 = vmul.f32 0.023809524, %v565_v16  ;;  %v604_v16 = vld [vmem:[%s7768_s4 + $0xb8] sm:$0xff] }
 0x701   :  { %v567_v18 = vadd.f32 1e-05, %v566_v17  ;;  %v612_v17 = vld [vmem:[%s7768_s4 + $0xf8] sm:$0xff] }
 0x702   :  { %v5539_v27 = vcombine.low %v604_v16, %v612_v17 }
 0x703   :  { %6803 = vrsqrt.f32 %v567_v18  ;;  %v5521_v18 = vcombine.low %v587_v5, %v595_v6  ;;  %v6559_v5 = vld [vmem:[#allocation2 + $0x1c0] sm:$0xff]   ;;  %v634_v6 = vlaneseq }
 0x70d   :  { %v6804_v19 = vpop.eup %6803 }
 0x70e   :  { %v569_v21 = vmul.f32 %v6804_v19, %v561_v41  ;;  %v5547_v41 = vcombine.low %v616_v34, %v624_v35  ;;  %v5523_v19 = vcombine.low %v588_v7, %v596_v8  ;;  %v984_v35 = vsel %vm87_vm1, %v5555_v33, 0 }
 0x70f   :  { %v7254_v7 = vshrl.u32 %v634_v6, 7  ;;  %v6572_v6 = vld [vmem:[#allocation2 + $0x118] sm:$0xff]  }
 0x710   :  { %v574_v23 = vmul.f32 %v5506_v20, %v569_v21  ;;  %v960_v47 = vsel %vm87_vm1, %v5547_v41, 0  ;;  %v5540_v21 = vcombine.high %v604_v16, %v612_v17  ;;  %v6531_v41 = vld [vmem:[#allocation2 + $0xc8] sm:$0xff]  }
 0x711   :  { %v7257_v8 = vsub.s32 0, %v7254_v7 }
 0x712   :  { %v7130_v28 = vadd.f32 %v5507_v22, %v574_v23  ;;  %v619_v22 = vld [vmem:[%s7768_s4 + $0x130] sm:$0xff] }
 0x713   :  { %v627_v23 = vld [vmem:[%s7768_s4 + $0x170] sm:$0x11] }
 0x714   :  { %v7134_v29 = vpack.c.bf16 %v7130_v28, %v7130_v28  ;;  %v5553_v32 = vcombine.low %v619_v22, %v627_v23 }
 0x716   :  { %5558 = vmatmul.mubr.msk.bf16.vlgmr.msra.gmra.mrb[16].mxu1 %vm83_vm2, %v7134_v29  ;;  %5560 = vmatmul.mubr.msk.bf16.vlgmr.msra.gmra.mrb[16].mxu0 %vm83_vm2, %v7134_v29  ;;  %v978_v34 = vsel %vm87_vm1, %v5553_v32, 0 }
 0x717   :  { %1072 = vmatpush1.bf16.msra.mxu1 %v5513_v10  ;;  %1113 = vmatpush1.bf16.msra.mxu0 %v5515_v14  ;;  %v972_v10 = vsel %vm87_vm1, %v5551_v4, 0  ;;  %v603_v14 = vld [vmem:[%s7768_s4 + $0xb0] sm:$0xff]  ;;  %v6558_v4 = vld [vmem:[#allocation2 + $0x140] sm:$0xff]  }
 0x718   :  { %1073 = vmatprep.subr.bf16.mxu1 %v5530_v30  ;;  %1114 = vmatprep.subr.bf16.mxu0 %v5532_v31  ;;  %v5538_v20 = vcombine.high %v603_v14, %v611_v15  ;;  %v5537_v26 = vcombine.low %v603_v14, %v611_v15  ;;  %v5554_v30 = vcombine.high %v619_v22, %v627_v23 }
 0x719   :  { %1103 = vmatprep.mubr.bf16.mxu1 %v6887_v13  ;;  %1144 = vmatprep.mubr.bf16.mxu0 %v6887_v13  ;;  %v5556_v31 = vcombine.high %v620_v24, %v628_v25 }
 0x71b   :  { %1074 = vmatpush1.bf16.msra.mxu1 %v5529_v36  ;;  %1115 = vmatpush1.bf16.msra.mxu0 %v5531_v37  ;;  %v6526_v36 = vld [vmem:[#allocation2 + $0x40] sm:$0xff]  }
 0x71c   :  { %5561 = vmatprep.subr.msk.bf16.mxu1 %vm87_vm1, %v5546_v38  ;;  %5563 = vmatprep.subr.msk.bf16.mxu0 %vm87_vm1, %v5548_v39  ;;  %v6527_v37 = vld [vmem:[#allocation2 + $0xc0] sm:$0xff]  }
 0x71d   :  { %v6528_v38 = vld [vmem:[#allocation2] sm:$0xff]  }
 0x71e   :  { %v6529_v39 = vld [vmem:[#allocation2 + $0x80] sm:$0xff]  }
 0x71f   :  { %1076 = vmatpush1.bf16.msra.mxu1 %v954_v46  ;;  %1117 = vmatpush1.bf16.msra.mxu0 %v960_v47  ;;  %v6536_v46 = vld [vmem:[#allocation2 + $0x10] sm:$0xff]  }
 0x720   :  { %1153 = vmatprep.subr.bf16.mxu1 %v5518_v48  ;;  %1194 = vmatprep.subr.bf16.mxu0 %v5520_v49  ;;  %v6537_v47 = vld [vmem:[#allocation2 + $0x90] sm:$0xff]   ;;  %v6538_v48 = vld [vmem:[#allocation2 + $0x58] sm:$0xff]  }
 0x721   :  { %v6539_v49 = vld [vmem:[#allocation2 + $0xd8] sm:$0xff]  }
 0x722   :  { %5562 = vmatmul.mubr.msk.bf16.vlgmr.msra.gmra.mrb[20].mxu1 %vm83_vm2, %v7134_v29  ;;  %5564 = vmatmul.mubr.msk.bf16.vlgmr.msra.gmra.mrb[20].mxu0 %vm83_vm2, %v7134_v29 }
 0x723   :  { %1154 = vmatpush1.bf16.msra.mxu1 %v5517_v54  ;;  %1195 = vmatpush1.bf16.msra.mxu0 %v5519_v55  ;;  %v6545_v54 = vld [vmem:[#allocation2 + $0xa0] sm:$0xff]   ;;  %v6546_v55 = vld [vmem:[#allocation2 + $0x68] sm:$0xff]  }
 0x724   :  { %1155 = vmatprep.subr.bf16.mxu1 %v5534_v56  ;;  %1196 = vmatprep.subr.bf16.mxu0 %v5536_v57  ;;  %v6547_v56 = vld [vmem:[#allocation2 + $0xe8] sm:$0xff]  }
 0x725   :  { %1185 = vmatprep.mubr.bf16.mxu1 %v6887_v13  ;;  %1226 = vmatprep.mubr.bf16.mxu0 %v6887_v13  ;;  %v6548_v57 = vld [vmem:[#allocation2 + $0x28] sm:$0xff]  }
 0x727   :  { %1156 = vmatpush1.bf16.msra.mxu1 %v5533_v62  ;;  %1197 = vmatpush1.bf16.msra.mxu0 %v5535_v63  ;;  %v6553_v62 = vld [vmem:[#allocation2 + $0xb0] sm:$0xff]   ;;  %v6554_v63 = vld [vmem:[#allocation2 + $0x78] sm:$0xff]  }
 0x728   :  { %5565 = vmatprep.subr.msk.bf16.mxu1 %vm87_vm1, %v5550_v1  ;;  %5567 = vmatprep.subr.msk.bf16.mxu0 %vm87_vm1, %v5552_v2  ;;  %v6555_v1 = vld [vmem:[#allocation2 + $0xf8] sm:$0xff]  }
 0x729   :  { %v6556_v2 = vld [vmem:[#allocation2 + $0x38] sm:$0xff]  }
 0x72b   :  { %1158 = vmatpush1.bf16.msra.mxu1 %v966_v9  ;;  %1199 = vmatpush1.bf16.msra.mxu0 %v972_v10  ;;  %v7260_v9 = vsub.s32 2, %v7254_v7  ;;  %v7265_v10 = vld [vmem:[%s7770_s6] ss:$2 sm:$0xff] }
 0x72c   :  { %1235 = vmatprep.subr.bf16.mxu1 %v5522_v11  ;;  %1276 = vmatprep.subr.bf16.mxu0 %v5524_v12  ;;  %v7268_v11 = vsub.s32 1, %v7254_v7  ;;  %v7271_v12 = vsub.s32 3, %v7254_v7  ;;  %v637_v14 = vrot.slane %v7265_v10, %v7257_v8 }
 0x72d   :  { %v645_v15 = vrot.slane %v7265_v10, %v7260_v9 }
 0x72e   :  { %5566 = vmatmul.mubr.msk.bf16.vlgmr.msra.gmra.mrb[24].mxu1 %vm83_vm2, %v7134_v29  ;;  %5568 = vmatmul.mubr.msk.bf16.vlgmr.msra.gmra.mrb[24].mxu0 %vm83_vm2, %v7134_v29  ;;  %v641_v16 = vrot.slane %v7265_v10, %v7268_v11  ;;  %v649_v17 = vrot.slane %v7265_v10, %v7271_v12 }
 0x72f   :  { %1236 = vmatpush1.bf16.msra.mxu1 %v5521_v18  ;;  %1277 = vmatpush1.bf16.msra.mxu0 %v5523_v19 }
 0x730   :  { %1237 = vmatprep.subr.bf16.mxu1 %v5538_v20  ;;  %1278 = vmatprep.subr.bf16.mxu0 %v5540_v21 }
 0x731   :  { %1267 = vmatprep.mubr.bf16.mxu1 %v6887_v13  ;;  %1308 = vmatprep.mubr.bf16.mxu0 %v6887_v13 }
 0x733   :  { %1238 = vmatpush1.bf16.msra.mxu1 %v5537_v26  ;;  %1279 = vmatpush1.bf16.msra.mxu0 %v5539_v27 }
 0x734   :  { %5569 = vmatprep.subr.msk.bf16.mxu1 %vm87_vm1, %v5554_v30  ;;  %5571 = vmatprep.subr.msk.bf16.mxu0 %vm87_vm1, %v5556_v31 }
 0x737   :  { %1240 = vmatpush1.bf16.msra.mxu1 %v978_v34  ;;  %1281 = vmatpush1.bf16.msra.mxu0 %v984_v35 }
 0x738   :  { %6005 = vmatprep.subr.bf16.mxu1 %v6526_v36  ;;  %6027 = vmatprep.subr.bf16.mxu0 %v6527_v37 }
 0x73a   :  { %5570 = vmatmul.mubr.msk.bf16.vlgmr.msra.gmra.mrb[28].mxu1 %vm83_vm2, %v7134_v29  ;;  %5572 = vmatmul.mubr.msk.bf16.vlgmr.msra.gmra.mrb[28].mxu0 %vm83_vm2, %v7134_v29  ;;  %v6541_v29 = vld [vmem:[#allocation2 + $0x98] sm:$0xff]  }
 0x73b   :  { %6006 = vmatpush3.bf16.msra.mxu1 %v6528_v38  ;;  %6028 = vmatpush3.bf16.msra.mxu0 %v6529_v39  ;;  %v6560_v38 = vld [vmem:[#allocation2 + $0x100] sm:$0xff]  }
 0x73c   :  { %6007 = vmatprep.subr.bf16.mxu1 %v6530_v40  ;;  %6029 = vmatprep.subr.bf16.mxu0 %v6531_v41  ;;  %v6561_v39 = vld [vmem:[#allocation2 + $0x180] sm:$0xff]   ;;  %v7282_v40 = vsub.s32 5, %v7254_v7  ;;  %v7285_v41 = vsub.s32 7, %v7254_v7 }
 0x73f   :  { %6008 = vmatpush3.bf16.msra.mxu1 %v6532_v42  ;;  %6030 = vmatpush3.bf16.msra.mxu0 %v6533_v43 }
 0x740   :  { %6009 = vmatprep.subr.bf16.mxu1 %v6534_v44  ;;  %6031 = vmatprep.subr.bf16.mxu0 %v6535_v45  ;;  %v6562_v44 = vld [vmem:[#allocation2 + $0x148] sm:$0xff]  }
 0x741   :  { %v6563_v45 = vld [vmem:[#allocation2 + $0x1c8] sm:$0xff]  }
 0x743   :  { %6010 = vmatpush3.bf16.msra.mxu1 %v6536_v46  ;;  %6032 = vmatpush3.bf16.msra.mxu0 %v6537_v47  ;;  %v657_v46 = vrot.slane %v7265_v10, %v7282_v40  ;;  %v665_v47 = vrot.slane %v7265_v10, %v7285_v41 }
 0x744   :  { %6011 = vmatprep.subr.bf16.mxu1 %v6538_v48  ;;  %6033 = vmatprep.subr.bf16.mxu0 %v6539_v49  ;;  %v6564_v48 = vld [vmem:[#allocation2 + $0x108] sm:$0xff]  }
 0x745   :  { %v6565_v49 = vld [vmem:[#allocation2 + $0x188] sm:$0xff]  }
 0x747   :  { %6012 = vmatpush3.bf16.msra.mxu1 %v6540_v50  ;;  %6034 = vmatpush3.bf16.msra.mxu0 %v6541_v29  ;;  %v6566_v50 = vld [vmem:[#allocation2 + $0x150] sm:$0xff]  }
 0x748   :  { %6013 = vmatprep.subr.bf16.mxu1 %v6542_v51  ;;  %6035 = vmatprep.subr.bf16.mxu0 %v6543_v52  ;;  %v6567_v29 = vld [vmem:[#allocation2 + $0x1d0] sm:$0xff]  }
 0x74b   :  { %6014 = vmatpush3.bf16.msra.mxu1 %v6544_v53  ;;  %6036 = vmatpush3.bf16.msra.mxu0 %v6545_v54 }
 0x74c   :  { %6015 = vmatprep.subr.bf16.mxu1 %v6546_v55  ;;  %6037 = vmatprep.subr.bf16.mxu0 %v6547_v56 }
 0x74f   :  { %6016 = vmatpush3.bf16.msra.mxu1 %v6548_v57  ;;  %6038 = vmatpush3.bf16.msra.mxu0 %v6549_v58 }
 0x750   :  { %6017 = vmatprep.subr.bf16.mxu1 %v6550_v59  ;;  %6039 = vmatprep.subr.bf16.mxu0 %v6551_v60  ;;  %v6568_v59 = vld [vmem:[#allocation2 + $0x110] sm:$0xff]  }
 0x751   :  { %v6569_v60 = vld [vmem:[#allocation2 + $0x190] sm:$0xff]  }
 0x753   :  { %6018 = vmatpush3.bf16.msra.mxu1 %v6552_v61  ;;  %6040 = vmatpush3.bf16.msra.mxu0 %v6553_v62 }
 0x754   :  { %6019 = vmatprep.subr.bf16.mxu1 %v6554_v63  ;;  %6041 = vmatprep.subr.bf16.mxu0 %v6555_v1  ;;  %v6570_v63 = vld [vmem:[#allocation2 + $0x158] sm:$0xff]  }
 0x755   :  { %v6571_v1 = vld [vmem:[#allocation2 + $0x1d8] sm:$0xff]  }
 0x757   :  { %6020 = vmatpush3.bf16.msra.mxu1 %v6556_v2  ;;  %6042 = vmatpush3.bf16.msra.mxu0 %v6557_v3 }
 0x758   :  { %6049 = vmatprep.subr.bf16.mxu1 %v6558_v4  ;;  %6071 = vmatprep.subr.bf16.mxu0 %v6559_v5 }
 0x7e9   :  { %v1023_v18 = vpop.f32.mrb[16].mxu1  ;;  %v1064_v19 = vpop.f32.mrb[16].mxu0 }
 0x7ea   :  { %v1024_v20 = vadd.f32 %v1023_v18, %v637_v14  ;;  %v1065_v21 = vadd.f32 %v1064_v19, %v645_v15  ;;  %v1025_v22 = vpop.f32.mrb[17].mxu1  ;;  %v1066_v23 = vpop.f32.mrb[17].mxu0  ;;  %v6573_v14 = vld [vmem:[#allocation2 + $0x198] sm:$0xff]   ;;  %v6574_v15 = vld [vmem:[#allocation2 + $0x160] sm:$0xff]   ;;  %v7296_v19 = vsub.s32 4, %v7254_v7 }
 0x7eb   :  { %v1026_v24 = vadd.f32 %v1025_v22, %v641_v16  ;;  %v1067_v25 = vadd.f32 %v1066_v23, %v649_v17  ;;  %v1027_v26 = vpop.f32.mrb[18].mxu1  ;;  %v1068_v27 = vpop.f32.mrb[18].mxu0  ;;  %v6575_v16 = vld [vmem:[#allocation2 + $0x1e0] sm:$0xff]   ;;  %v6579_v22 = vld [vmem:[#allocation2 + $0x1e8] sm:$0xff]  }
 0x7ec   :  { %v1317_v30 = vmax.f32 %v1024_v20, 0.0  ;;  %v1319_v31 = vmax.f32 %v1065_v21, 0.0  ;;  %v1028_v32 = vpop.f32.mrb[19].mxu1  ;;  %v1069_v33 = vpop.f32.mrb[19].mxu0  ;;  %v6576_v17 = vld [vmem:[#allocation2 + $0x120] sm:$0xff]   ;;  %v7299_v20 = vsub.s32 6, %v7254_v7 }
 0x7ed   :  { %v1318_v34 = vmax.f32 %v1026_v24, 0.0  ;;  %v1320_v35 = vmax.f32 %v1067_v25, 0.0  ;;  %v6577_v18 = vld [vmem:[#allocation2 + $0x1a0] sm:$0xff]   ;;  %v6578_v21 = vld [vmem:[#allocation2 + $0x168] sm:$0xff]   ;;  %v7308_v25 = vld [vmem:[%s7770_s6 + $0x10] ss:$2 sm:$0xff]  ;;  %v653_v33 = vrot.slane %v7265_v10, %v7296_v19 }
 0x7ee   :  { %v1333_v42 = vpack.c.bf16 %v1317_v30, %v1317_v30  ;;  %v1335_v43 = vpack.c.bf16 %v1319_v31, %v1319_v31  ;;  %v6580_v7 = vld [vmem:[#allocation2 + $0x128] sm:$0xff]  }
 0x7ef   :  { %v1334_v36 = vpack.c.bf16 %v1318_v34, %v1318_v34  ;;  %v1336_v37 = vpack.c.bf16 %v1320_v35, %v1320_v35  ;;  %v6581_v32 = vld [vmem:[#allocation2 + $0x1a8] sm:$0xff]   ;;  %v661_v34 = vrot.slane %v7265_v10, %v7299_v20 }
 0x7f1   :  { %2405 = vmatprep.mubr.bf16.mxu1 %v1334_v36  ;;  %2445 = vmatprep.mubr.bf16.mxu0 %v1336_v37  ;;  %v6582_v37 = vld [vmem:[#allocation2 + $0x170] sm:$0xff]  }
 0x7f2   :  { %2406 = vmatmul.mubr.bf16.vlgmr.msra.gmra.mrb[32].mxu1 %v1333_v42  ;;  %2446 = vmatmul.mubr.bf16.vlgmr.msra.gmra.mrb[32].mxu0 %v1335_v43  ;;  %v681_v42 = vrot.slane %v7308_v25, %v7271_v12  ;;  %v6584_v43 = vld [vmem:[#allocation2 + $0x130] sm:$0xff]  }
 0x7f3   :  { %6050 = vmatpush3.bf16.msra.mxu1 %v6560_v38  ;;  %6072 = vmatpush3.bf16.msra.mxu0 %v6561_v39  ;;  %v6583_v38 = vld [vmem:[#allocation2 + $0x1f0] sm:$0xff]   ;;  %v673_v39 = vrot.slane %v7308_v25, %v7268_v11 }
 0x7f4   :  { %6051 = vmatprep.subr.bf16.mxu1 %v6562_v44  ;;  %6073 = vmatprep.subr.bf16.mxu0 %v6563_v45  ;;  %v6585_v44 = vld [vmem:[#allocation2 + $0x1b0] sm:$0xff]  }
 0x7f5   :  { %v7291_v51 = vpop.f32.mrb[20].mxu1  ;;  %v7293_v52 = vpop.f32.mrb[20].mxu0 }
 0x7f6   :  { %v1107_v53 = vpop.f32.mrb[21].mxu1  ;;  %v1148_v54 = vpop.f32.mrb[21].mxu0  ;;  %v1106_v45 = vadd.f32 %v7291_v51, %v653_v33  ;;  %v1147_v10 = vadd.f32 %v7293_v52, %v661_v34  ;;  %v6590_v51 = vld [vmem:[#allocation2 + $0x240] sm:$0xff]   ;;  %v6604_v33 = vld [vmem:[#allocation2 + $0x218] sm:$0xff]  }
 0x7f7   :  { %v1108_v55 = vadd.f32 %v1107_v53, %v657_v46  ;;  %v1149_v56 = vadd.f32 %v1148_v54, %v665_v47  ;;  %v1109_v57 = vpop.f32.mrb[22].mxu1  ;;  %v1150_v58 = vpop.f32.mrb[22].mxu0  ;;  %6052 = vmatpush3.bf16.msra.mxu1 %v6564_v48  ;;  %6074 = vmatpush3.bf16.msra.mxu0 %v6565_v49  ;;  %v6586_v46 = vld [vmem:[#allocation2 + $0x178] sm:$0xff]  }
 0x7f8   :  { %v1110_v61 = vpop.f32.mrb[23].mxu1  ;;  %v1151_v62 = vpop.f32.mrb[23].mxu0  ;;  %6053 = vmatprep.subr.bf16.mxu1 %v6566_v50  ;;  %6075 = vmatprep.subr.bf16.mxu0 %v6567_v29  ;;  %v6587_v47 = vld [vmem:[#allocation2 + $0x1f8] sm:$0xff]   ;;  %v693_v50 = vrot.slane %v7308_v25, %v7299_v20  ;;  %v1321_v54 = vmax.f32 %v1106_v45, 0.0  ;;  %v6613_v45 = vld [vmem:[#allocation2 + $0x2a8] sm:$0xff]  }
 0x7f9   :  { %v1322_v2 = vmax.f32 %v1108_v55, 0.0  ;;  %v1324_v3 = vmax.f32 %v1149_v56, 0.0  ;;  %v6588_v29 = vld [vmem:[#allocation2 + $0x138] sm:$0xff]   ;;  %v1323_v55 = vmax.f32 %v1147_v10, 0.0  ;;  %v6591_v56 = vld [vmem:[#allocation2 + $0x2c0] sm:$0xff]   ;;  %v6614_v10 = vld [vmem:[#allocation2 + $0x270] sm:$0xff]  }
 0x7fa   :  { %v6589_v53 = vld [vmem:[#allocation2 + $0x1b8] sm:$0xff]  }
 0x7fb   :  { %v1338_v4 = vpack.c.bf16 %v1322_v2, %v1322_v2  ;;  %v1340_v5 = vpack.c.bf16 %v1324_v3, %v1324_v3  ;;  %6054 = vmatpush3.bf16.msra.mxu1 %v6568_v59  ;;  %6076 = vmatpush3.bf16.msra.mxu0 %v6569_v60  ;;  %v6592_v2 = vld [vmem:[#allocation2 + $0x200] sm:$0xff]   ;;  %v1337_v3 = vpack.c.bf16 %v1321_v54, %v1321_v54  ;;  %v6605_v34 = vld [vmem:[#allocation2 + $0x298] sm:$0xff]  }
 0x7fc   :  { %6055 = vmatprep.subr.bf16.mxu1 %v6570_v63  ;;  %6077 = vmatprep.subr.bf16.mxu0 %v6571_v1  ;;  %v6618_v54 = vld [vmem:[#allocation2 + $0x278] sm:$0xff]  }
 0x7fd   :  { %2485 = vmatprep.mubr.bf16.mxu1 %v1338_v4  ;;  %2525 = vmatprep.mubr.bf16.mxu0 %v1340_v5  ;;  %v1339_v4 = vpack.c.bf16 %v1323_v55, %v1323_v55 }
 0x7ff   :  { %6056 = vmatpush3.bf16.msra.mxu1 %v6572_v6  ;;  %6078 = vmatpush3.bf16.msra.mxu0 %v6573_v14  ;;  %v6593_v14 = vld [vmem:[#allocation2 + $0x280] sm:$0xff]  }
 0x800   :  { %6057 = vmatprep.subr.bf16.mxu1 %v6574_v15  ;;  %6079 = vmatprep.subr.bf16.mxu0 %v6575_v16  ;;  %v6594_v16 = vld [vmem:[#allocation2 + $0x248] sm:$0xff]  }
 0x801   :  { %v7301_v23 = vpop.f32.mrb[24].mxu1  ;;  %v7303_v24 = vpop.f32.mrb[24].mxu0 }
 0x802   :  { %v1189_v26 = vpop.f32.mrb[25].mxu1  ;;  %v1230_v27 = vpop.f32.mrb[25].mxu0 }
 0x803   :  { %v1191_v30 = vpop.f32.mrb[26].mxu1  ;;  %v1232_v31 = vpop.f32.mrb[26].mxu0  ;;  %6058 = vmatpush3.bf16.msra.mxu1 %v6576_v17  ;;  %6080 = vmatpush3.bf16.msra.mxu0 %v6577_v18  ;;  %v1190_v48 = vadd.f32 %v1189_v26, %v673_v39  ;;  %v1231_v49 = vadd.f32 %v1230_v27, %v681_v42  ;;  %v6595_v17 = vld [vmem:[#allocation2 + $0x2c8] sm:$0xff]   ;;  %v6598_v26 = vld [vmem:[#allocation2 + $0x250] sm:$0xff]  }
 0x804   :  { %v1192_v35 = vpop.f32.mrb[27].mxu1  ;;  %v1233_v36 = vpop.f32.mrb[27].mxu0  ;;  %6059 = vmatprep.subr.bf16.mxu1 %v6578_v21  ;;  %6081 = vmatprep.subr.bf16.mxu0 %v6579_v22  ;;  %v6596_v21 = vld [vmem:[#allocation2 + $0x208] sm:$0xff]   ;;  %v6599_v27 = vld [vmem:[#allocation2 + $0x2d0] sm:$0xff]  }
 0x805   :  { %v1326_v52 = vmax.f32 %v1190_v48, 0.0  ;;  %v1328_v59 = vmax.f32 %v1231_v49, 0.0  ;;  %v6597_v22 = vld [vmem:[#allocation2 + $0x288] sm:$0xff]   ;;  %v6600_v30 = vld [vmem:[#allocation2 + $0x210] sm:$0xff]   ;;  %v6606_v35 = vld [vmem:[#allocation2 + $0x260] sm:$0xff]   ;;  %v689_v48 = vrot.slane %v7308_v25, %v7282_v40  ;;  %v697_v49 = vrot.slane %v7308_v25, %v7285_v41 }
 0x806   :  { %v6601_v31 = vld [vmem:[#allocation2 + $0x290] sm:$0xff]   ;;  %v6607_v36 = vld [vmem:[#allocation2 + $0x2e0] sm:$0xff]   ;;  %v6610_v39 = vld [vmem:[#allocation2 + $0x268] sm:$0xff]  }
 0x807   :  { %6060 = vmatpush3.bf16.msra.mxu1 %v6580_v7  ;;  %6082 = vmatpush3.bf16.msra.mxu0 %v6581_v32  ;;  %v1342_v15 = vpack.c.bf16 %v1326_v52, %v1326_v52  ;;  %v1344_v18 = vpack.c.bf16 %v1328_v59, %v1328_v59  ;;  %v6602_v7 = vld [vmem:[#allocation2 + $0x258] sm:$0xff]   ;;  %v6611_v42 = vld [vmem:[#allocation2 + $0x2e8] sm:$0xff]  }
 0x808   :  { %6061 = vmatprep.subr.bf16.mxu1 %v6582_v37  ;;  %6083 = vmatprep.subr.bf16.mxu0 %v6583_v38  ;;  %v6603_v32 = vld [vmem:[#allocation2 + $0x2d8] sm:$0xff]   ;;  %v6608_v37 = vld [vmem:[#allocation2 + $0x220] sm:$0xff]  }
 0x809   :  { %v6609_v38 = vld [vmem:[#allocation2 + $0x2a0] sm:$0xff]  }
 0x80b   :  { %6062 = vmatpush3.bf16.msra.mxu1 %v6584_v43  ;;  %6084 = vmatpush3.bf16.msra.mxu0 %v6585_v44  ;;  %v6612_v43 = vld [vmem:[#allocation2 + $0x228] sm:$0xff]   ;;  %v669_v44 = vrot.slane %v7308_v25, %v7257_v8 }
 0x80c   :  { %6063 = vmatprep.subr.bf16.mxu1 %v6586_v46  ;;  %6085 = vmatprep.subr.bf16.mxu0 %v6587_v47  ;;  %v677_v46 = vrot.slane %v7308_v25, %v7260_v9  ;;  %v6615_v47 = vld [vmem:[#allocation2 + $0x2f0] sm:$0xff]  }
 0x80d   :  { %v7322_v57 = vpop.f32.mrb[28].mxu1  ;;  %v1310_v58 = vpop.f32.mrb[28].mxu0 }
 0x80e   :  { %v7324_v60 = vadd.f32 %v1310_v58, %v693_v50  ;;  %v7326_v61 = vpop.f32.mrb[29].mxu1  ;;  %v7328_v62 = vpop.f32.mrb[29].mxu0  ;;  %v6616_v50 = vld [vmem:[#allocation2 + $0x230] sm:$0xff]   ;;  %v1229_v55 = vadd.f32 %v7303_v24, %v677_v46  ;;  %v6620_v58 = vld [vmem:[#allocation2 + $0x238] sm:$0xff]   ;;  %v6624_v24 = vld [vmem:[#allocation2 + $0x300] sm:$0xff]  }
 0x80f   :  { %v1273_v63 = vpop.f32.mrb[30].mxu1  ;;  %v1314_v1 = vpop.f32.mrb[30].mxu0  ;;  %6064 = vmatpush3.bf16.msra.mxu1 %v6588_v29  ;;  %6086 = vmatpush3.bf16.msra.mxu0 %v6589_v53  ;;  %v1188_v29 = vadd.f32 %v7301_v23, %v669_v44  ;;  %v6617_v53 = vld [vmem:[#allocation2 + $0x2b0] sm:$0xff]   ;;  %v1313_v52 = vadd.f32 %v7328_v62, %v697_v49  ;;  %v6626_v62 = vld [vmem:[#allocation2 + $0x348] sm:$0xff]   ;;  %v6651_v49 = vld [vmem:[#allocation2 + $0x3f8] sm:$0xff]  }
 0x810   :  { %v1274_v5 = vpop.f32.mrb[31].mxu1  ;;  %v1315_v6 = vpop.f32.mrb[31].mxu0  ;;  %6093 = vmatprep.subr.bf16.mxu1 %v6590_v51  ;;  %6115 = vmatprep.subr.bf16.mxu0 %v6591_v56  ;;  %v6619_v51 = vld [vmem:[#allocation2 + $0x2f8] sm:$0xff]   ;;  %v1272_v56 = vadd.f32 %v7326_v61, %v689_v48  ;;  %v6622_v1 = vld [vmem:[#allocation2 + $0x340] sm:$0xff]   ;;  %v1327_v23 = vmax.f32 %v1229_v55, 0.0  ;;  %v6646_v44 = vld [vmem:[#allocation2 + $0x370] sm:$0xff]  }
 0x811   :  { %v1325_v59 = vmax.f32 %v1188_v29, 0.0  ;;  %v6621_v63 = vld [vmem:[#allocation2 + $0x2b8] sm:$0xff]   ;;  %v6625_v61 = vld [vmem:[#allocation2 + $0x380] sm:$0xff]  }
 0x812   :  { %2486 = vmatmul.mubr.bf16.vlgmr.msra.gmra.mrb[36].mxu1 %v1337_v3  ;;  %2526 = vmatmul.mubr.bf16.vlgmr.msra.gmra.mrb[36].mxu0 %v1339_v4  ;;  %v1330_v3 = vmax.f32 %v1272_v56, 0.0  ;;  %v1332_v4 = vmax.f32 %v1313_v52, 0.0  ;;  %v1343_v6 = vpack.c.bf16 %v1327_v23, %v1327_v23  ;;  %v6650_v48 = vld [vmem:[#allocation2 + $0x378] sm:$0xff]  }
 0x813   :  { %6094 = vmatpush3.bf16.msra.mxu1 %v6592_v2  ;;  %2565 = vmatprep.mubr.bf16.mxu1 %v1342_v15  ;;  %v6623_v2 = vld [vmem:[#allocation2 + $0x3c0] sm:$0xff]   ;;  %v1341_v5 = vpack.c.bf16 %v1325_v59, %v1325_v59  ;;  %v6627_v15 = vld [vmem:[#allocation2 + $0x3c8] sm:$0xff]  }
 0x814   :  { %6116 = vmatpush3.bf16.msra.mxu0 %v6593_v14  ;;  %2605 = vmatprep.mubr.bf16.mxu0 %v1344_v18  ;;  %v1346_v14 = vpack.c.bf16 %v1330_v3, %v1330_v3  ;;  %v6629_v18 = vld [vmem:[#allocation2 + $0x388] sm:$0xff]  }
 0x815   :  { %6095 = vmatprep.subr.bf16.mxu1 %v6594_v16  ;;  %6117 = vmatprep.subr.bf16.mxu0 %v6595_v17  ;;  %v1348_v16 = vpack.c.bf16 %v1332_v4, %v1332_v4  ;;  %v6628_v17 = vld [vmem:[#allocation2 + $0x308] sm:$0xff]  }
 0x817   :  { %6096 = vmatpush3.bf16.msra.mxu1 %v6596_v21  ;;  %v6630_v21 = vld [vmem:[#allocation2 + $0x350] sm:$0xff]  }
 0x818   :  { %6118 = vmatpush3.bf16.msra.mxu0 %v6597_v22  ;;  %6097 = vmatprep.subr.bf16.mxu1 %v6598_v26  ;;  %v6631_v22 = vld [vmem:[#allocation2 + $0x3d0] sm:$0xff]  }
 0x819   :  { %6119 = vmatprep.subr.bf16.mxu0 %v6599_v27  ;;  %v6632_v26 = vld [vmem:[#allocation2 + $0x310] sm:$0xff]  }
 0x81a   :  { %v6633_v27 = vld [vmem:[#allocation2 + $0x390] sm:$0xff]  }
 0x81b   :  { %6098 = vmatpush3.bf16.msra.mxu1 %v6600_v30  ;;  %v6634_v30 = vld [vmem:[#allocation2 + $0x358] sm:$0xff]  }
 0x81c   :  { %6120 = vmatpush3.bf16.msra.mxu0 %v6601_v31  ;;  %6099 = vmatprep.subr.bf16.mxu1 %v6602_v7  ;;  %v6635_v31 = vld [vmem:[#allocation2 + $0x3d8] sm:$0xff]  }
 0x81d   :  { %6121 = vmatprep.subr.bf16.mxu0 %v6603_v32  ;;  %v6636_v7 = vld [vmem:[#allocation2 + $0x318] sm:$0xff]  }
 0x81e   :  { %v6637_v32 = vld [vmem:[#allocation2 + $0x398] sm:$0xff]  }
 0x81f   :  { %6100 = vmatpush3.bf16.msra.mxu1 %v6604_v33  ;;  %v6638_v33 = vld [vmem:[#allocation2 + $0x360] sm:$0xff]  }
 0x820   :  { %6122 = vmatpush3.bf16.msra.mxu0 %v6605_v34  ;;  %6101 = vmatprep.subr.bf16.mxu1 %v6606_v35  ;;  %v6639_v34 = vld [vmem:[#allocation2 + $0x3e0] sm:$0xff]  }
 0x821   :  { %6123 = vmatprep.subr.bf16.mxu0 %v6607_v36  ;;  %v6640_v35 = vld [vmem:[#allocation2 + $0x320] sm:$0xff]  }
 0x822   :  { %v6641_v36 = vld [vmem:[#allocation2 + $0x3a0] sm:$0xff]  }
 0x823   :  { %6102 = vmatpush3.bf16.msra.mxu1 %v6608_v37  ;;  %v6642_v37 = vld [vmem:[#allocation2 + $0x368] sm:$0xff]  }
 0x824   :  { %6124 = vmatpush3.bf16.msra.mxu0 %v6609_v38  ;;  %6103 = vmatprep.subr.bf16.mxu1 %v6610_v39  ;;  %v6643_v38 = vld [vmem:[#allocation2 + $0x3e8] sm:$0xff]  }
 0x825   :  { %6125 = vmatprep.subr.bf16.mxu0 %v6611_v42  ;;  %v6644_v39 = vld [vmem:[#allocation2 + $0x328] sm:$0xff]   ;;  %v685_v42 = vrot.slane %v7308_v25, %v7296_v19  ;;  %v6653_v25 = vld [vmem:[#allocation2 + $0x3b8] sm:$0xff]  }
 0x827   :  { %6104 = vmatpush3.bf16.msra.mxu1 %v6612_v43  ;;  %v6645_v43 = vld [vmem:[#allocation2 + $0x3a8] sm:$0xff]   ;;  %v1270_v46 = vadd.f32 %v7322_v57, %v685_v42 }
 0x828   :  { %6126 = vmatpush3.bf16.msra.mxu0 %v6613_v45  ;;  %6105 = vmatprep.subr.bf16.mxu1 %v6614_v10  ;;  %v6647_v45 = vld [vmem:[#allocation2 + $0x3f0] sm:$0xff]  }
 0x829   :  { %6127 = vmatprep.subr.bf16.mxu0 %v6615_v47  ;;  %v6648_v10 = vld [vmem:[#allocation2 + $0x330] sm:$0xff]   ;;  %v1329_v29 = vmax.f32 %v1270_v46, 0.0 }
 0x82a   :  { %v6649_v47 = vld [vmem:[#allocation2 + $0x3b0] sm:$0xff]  }
 0x82b   :  { %6106 = vmatpush3.bf16.msra.mxu1 %v6616_v50  ;;  %v6652_v50 = vld [vmem:[#allocation2 + $0x338] sm:$0xff]  }
 0x82c   :  { %6128 = vmatpush3.bf16.msra.mxu0 %v6617_v53  ;;  %6107 = vmatprep.subr.bf16.mxu1 %v6618_v54  ;;  %v1331_v53 = vmax.f32 %v7324_v60, 0.0  ;;  %v1345_v54 = vpack.c.bf16 %v1329_v29, %v1329_v29 }
 0x82d   :  { %6129 = vmatprep.subr.bf16.mxu0 %v6619_v51 }
 0x82e   :  { %v1347_v57 = vpack.c.bf16 %v1331_v53, %v1331_v53 }
 0x82f   :  { %6108 = vmatpush3.bf16.msra.mxu1 %v6620_v58 }
 0x830   :  { %6130 = vmatpush3.bf16.msra.mxu0 %v6621_v63  ;;  %6137 = vmatprep.subr.bf16.mxu1 %v6622_v1 }
 0x831   :  { %6159 = vmatprep.subr.bf16.mxu0 %v6623_v2 }
 0x832   :  { %2566 = vmatmul.mubr.bf16.vlgmr.msra.gmra.mrb[40].mxu1 %v1341_v5 }
 0x833   :  { %2606 = vmatmul.mubr.bf16.vlgmr.msra.gmra.mrb[40].mxu0 %v1343_v6  ;;  %6138 = vmatpush3.bf16.msra.mxu1 %v6624_v24 }
 0x834   :  { %2645 = vmatprep.mubr.bf16.mxu1 %v1346_v14  ;;  %6160 = vmatpush3.bf16.msra.mxu0 %v6625_v61 }
 0x835   :  { %2685 = vmatprep.mubr.bf16.mxu0 %v1348_v16  ;;  %6139 = vmatprep.subr.bf16.mxu1 %v6626_v62 }
 0x836   :  { %6161 = vmatprep.subr.bf16.mxu0 %v6627_v15 }
 0x837   :  { %6140 = vmatpush3.bf16.msra.mxu1 %v6628_v17 }
 0x838   :  { %6162 = vmatpush3.bf16.msra.mxu0 %v6629_v18  ;;  %6141 = vmatprep.subr.bf16.mxu1 %v6630_v21 }
 0x839   :  { %6163 = vmatprep.subr.bf16.mxu0 %v6631_v22 }
 0x83b   :  { %6142 = vmatpush3.bf16.msra.mxu1 %v6632_v26 }
 0x83c   :  { %6164 = vmatpush3.bf16.msra.mxu0 %v6633_v27  ;;  %6143 = vmatprep.subr.bf16.mxu1 %v6634_v30 }
 0x83d   :  { %6165 = vmatprep.subr.bf16.mxu0 %v6635_v31 }
 0x83f   :  { %6144 = vmatpush3.bf16.msra.mxu1 %v6636_v7 }
 0x840   :  { %6166 = vmatpush3.bf16.msra.mxu0 %v6637_v32  ;;  %6145 = vmatprep.subr.bf16.mxu1 %v6638_v33 }
 0x841   :  { %6167 = vmatprep.subr.bf16.mxu0 %v6639_v34 }
 0x843   :  { %6146 = vmatpush3.bf16.msra.mxu1 %v6640_v35 }
 0x844   :  { %6168 = vmatpush3.bf16.msra.mxu0 %v6641_v36  ;;  %6147 = vmatprep.subr.bf16.mxu1 %v6642_v37 }
 0x845   :  { %6169 = vmatprep.subr.bf16.mxu0 %v6643_v38 }
 0x847   :  { %6148 = vmatpush3.bf16.msra.mxu1 %v6644_v39 }
 0x848   :  { %6170 = vmatpush3.bf16.msra.mxu0 %v6645_v43  ;;  %6149 = vmatprep.subr.bf16.mxu1 %v6646_v44 }
 0x849   :  { %6171 = vmatprep.subr.bf16.mxu0 %v6647_v45 }
 0x84b   :  { %6150 = vmatpush3.bf16.msra.mxu1 %v6648_v10 }
 0x84c   :  { %6172 = vmatpush3.bf16.msra.mxu0 %v6649_v47  ;;  %6151 = vmatprep.subr.bf16.mxu1 %v6650_v48 }
 0x84d   :  { %6173 = vmatprep.subr.bf16.mxu0 %v6651_v49  ;;  %v5701_v49 = vld [vmem:[%s7771_s7 + $0x1] ss:$0 sm:$0xff] }
 0x84f   :  { %6152 = vmatpush3.bf16.msra.mxu1 %v6652_v50 }
 0x850   :  { %6174 = vmatpush3.bf16.msra.mxu0 %v6653_v25  ;;  %6437 = vmatprep.subr.bf16.mxu1 %v6875_v0 }
 0x851   :  { %6447 = vmatprep.subr.bf16.mxu0 %v6875_v0 }
 0x852   :  { %2646 = vmatmul.mubr.bf16.vlgmr.msra.gmra.mrb[44].mxu1 %v1345_v54 }
 0x853   :  { %2686 = vmatmul.mubr.bf16.vlgmr.msra.gmra.mrb[44].mxu0 %v1347_v57  ;;  %6443 = vmatprep.mubr.msk.bf16.mxu1 %vm6876_vm0, %v6875_v0 }
 0x854   :  { %6449 = vmatprep.mubr.msk.bf16.mxu0 %vm6876_vm0, %v6875_v0 }
 0x8c5   :  { %v6021_v55 = vpop.f32.mrb[32].mxu1  ;;  %v6043_v51 = vpop.f32.mrb[32].mxu0 }
 0x8c6   :  { %v6022_v60 = vpop.f32.mrb[33].mxu1  ;;  %v6044_v56 = vpop.f32.mrb[33].mxu0 }
 0x8c7   :  { %v6023_v52 = vadd.f32 %v6022_v60, %v6021_v55  ;;  %v6045_v58 = vadd.f32 %v6044_v56, %v6043_v51  ;;  %v6024_v59 = vpop.f32.mrb[34].mxu1  ;;  %v6046_v63 = vpop.f32.mrb[34].mxu0  ;;  %v6654_v56 = vld [vmem:[%s7765_s1 + $0x18] sm:$0xff]  }
 0x8c8   :  { %v6025_v1 = vpop.f32.mrb[35].mxu1  ;;  %v6047_v23 = vpop.f32.mrb[35].mxu0  ;;  %6438 = vmatpush3.bf16.msra.mxu1 %v6654_v56 }
 0x8c9   :  { %v2448_v2 = vadd.f32 %v6045_v58, %v6023_v52  ;;  %6439 = vmatprep.subr.bf16.mxu1 %v6875_v0  ;;  %v6656_v52 = vld [vmem:[%s7765_s1 + $0x28] sm:$0x1f]  }
 0x8ca   :  { %v2762_v58 = vsel %vm87_vm1, %v6656_v52, 0 }
 0x8e5   :  { %v6065_v3 = vpop.f32.mrb[36].mxu1  ;;  %v6087_v4 = vpop.f32.mrb[36].mxu0 }
 0x8e6   :  { %v6066_v24 = vpop.f32.mrb[37].mxu1  ;;  %v6088_v5 = vpop.f32.mrb[37].mxu0 }
 0x8e7   :  { %v6067_v61 = vadd.f32 %v6066_v24, %v6065_v3  ;;  %v6089_v6 = vadd.f32 %v6088_v5, %v6087_v4  ;;  %v6068_v62 = vpop.f32.mrb[38].mxu1  ;;  %v6090_v14 = vpop.f32.mrb[38].mxu0  ;;  %v5703_v4 = vld [vmem:[%s7771_s7 + $0x5] ss:$0 sm:$0xff] }
 0x8e8   :  { %v6069_v15 = vpop.f32.mrb[39].mxu1  ;;  %v6091_v16 = vpop.f32.mrb[39].mxu0 }
 0x8e9   :  { %v2488_v17 = vadd.f32 %v6067_v61, %v2448_v2  ;;  %v5702_v2 = vld [vmem:[%s7771_s7 + $0x4] ss:$0 sm:$0xff] }
 0x8eb   :  { %v2528_v18 = vadd.f32 %v6089_v6, %v2488_v17  ;;  %v5711_v6 = vld [vmem:[%s7766_s2 + $0x1] ss:$0 sm:$0xff]  ;;  %s6846_s2 = scalar_lea.vmem %s5482_s11, 128 }
 0x8ec   :  { %p6847_p8 = scmp.ne.s32.totalorder %s5482_s11, %s6846_s2  ;;  %p6852_p10 = scmp.lt.s32.totalorder %s6846_s2, %s6846_s2 }
 0x8ee   :  { %p6853_p11 = por %p6852_p10, %p6851_p9 }
 0x8f0   :  { %p6854_p12 = pnand %p6853_p11, %p6847_p8 }
 0x905   :  { %v6109_v21 = vpop.f32.mrb[40].mxu1 }
 0x906   :  { %v6131_v22 = vpop.f32.mrb[40].mxu0  ;;  %v6110_v26 = vpop.f32.mrb[41].mxu1 }
 0x907   :  { %v6111_v27 = vadd.f32 %v6110_v26, %v6109_v21  ;;  %v6132_v30 = vpop.f32.mrb[41].mxu0  ;;  %v6112_v31 = vpop.f32.mrb[42].mxu1 }
 0x908   :  { %v6133_v7 = vadd.f32 %v6132_v30, %v6131_v22  ;;  %v6134_v32 = vpop.f32.mrb[42].mxu0  ;;  %v6113_v33 = vpop.f32.mrb[43].mxu1 }
 0x909   :  { %v2568_v34 = vadd.f32 %v6111_v27, %v2528_v18  ;;  %v6135_v35 = vpop.f32.mrb[43].mxu0 }
 0x90b   :  { %v2608_v36 = vadd.f32 %v6133_v7, %v2568_v34 }
 0x925   :  { %v6153_v37 = vpop.f32.mrb[44].mxu1 }
 0x926   :  { %v6175_v38 = vpop.f32.mrb[44].mxu0  ;;  %v6154_v39 = vpop.f32.mrb[45].mxu1 }
 0x927   :  { %v6155_v42 = vadd.f32 %v6154_v39, %v6153_v37  ;;  %v6176_v43 = vpop.f32.mrb[45].mxu0  ;;  %v6156_v44 = vpop.f32.mrb[46].mxu1 }
 0x928   :  { %v6177_v45 = vadd.f32 %v6176_v43, %v6175_v38  ;;  %v6178_v10 = vpop.f32.mrb[46].mxu0  ;;  %v6157_v46 = vpop.f32.mrb[47].mxu1 }
 0x929   :  { %v2648_v47 = vadd.f32 %v6155_v42, %v2608_v36  ;;  %v6179_v48 = vpop.f32.mrb[47].mxu0 }
 0x92b   :  { %v2688_v50 = vadd.f32 %v6177_v45, %v2648_v47 }
 0x92d   :  { %v2698_v29 = vadd.f32 %v5701_v49, %v2688_v50 }
 0x92f   :  { %v2699_v25 = vadd.f32 %v2698_v29, %v7130_v28  ;;  %v6655_v28 = vld [vmem:[%s7765_s1 + $0x20] sm:$0xff]  }
 0x930   :  { %6440 = vmatpush3.bf16.msra.mxu1 %v6655_v28 }
 0x931   :  { %v2702_v53 = vsel %vm83_vm2, %v2699_v25, 0.0  ;;  %6441 = vmatprep.subr.bf16.mxu1 %v6875_v0 }
 0x932   :  { %2703 = vadd.xlane.f32.xlu0 %v2702_v53 }
 0x934   :  { %6442 = vmatpush3.bf16.msra.mxu1 %v2762_v58 }
 0x935   :  { %6453 = vmatprep.subr.bf16.mxu1 %v6875_v0 }
 0x9bf   :  { %v2704_v54 = vpop.xlane.xlu0 %2703 }
 0x9c0   :  { %v2705_v57 = vmul.f32 0.023809524, %v2704_v54 }
 0x9c2   :  { %v2706_v55 = vsub.f32 %v2699_v25, %v2705_v57 }
 0x9c4   :  { %v2707_v51 = vmul.f32 %v2706_v55, %v2706_v55 }
 0x9c6   :  { %v2708_v60 = vsel %vm83_vm2, %v2707_v51, 0.0 }
 0x9c7   :  { %2709 = vadd.xlane.f32.xlu0 %v2708_v60 }
 0xa54   :  { %v2710_v59 = vpop.xlane.xlu0 %2709 }
 0xa55   :  { %v2711_v63 = vmul.f32 0.023809524, %v2710_v59 }
 0xa57   :  { %v2712_v1 = vadd.f32 1e-05, %v2711_v63 }
 0xa59   :  { %6805 = vrsqrt.f32 %v2712_v1 }
 0xa63   :  { %v6806_v23 = vpop.eup %6805 }
 0xa64   :  { %v2714_v3 = vmul.f32 %v6806_v23, %v2706_v55 }
 0xa66   :  { %v2719_v24 = vmul.f32 %v5702_v2, %v2714_v3 }
 0xa68   :  { %v7377_v5 = vadd.f32 %v5703_v4, %v2719_v24 }
 0xa6a   :  { %v2725_v61 = vpack.c.bf16 %v7377_v5, %v7377_v5 }
 0xa6c   :  { %6444 = vmatmul.mubr.msk.bf16.vlgmr.msra.gmra.mrb[48].mxu1 %vm83_vm2, %v2725_v61 }
 0xa6d   :  { %6455 = vmatprep.mubr.msk.bf16.mxu1 %vm6876_vm0, %v6875_v0 }
 0xb3f   :  { %v2798_v62 = vpop.f32.mrb[48].mxu1 }
 0xb40   :  { %v2799_v14 = vadd.f32 %v5711_v6, %v2798_v62  ;;  %v6445_v15 = vpop.f32.mrb[49].mxu1 }
 0xb41   :  { %v2801_v16 = vpop.f32.mrb[50].mxu1 }
 0xb42   :  { %v2804_v17 = vmul.f32 0.26726124, %v2799_v14  ;;  %v7387_v18 = vpack.c.bf16 %v2799_v14, %v2799_v14  ;;  %v6446_v21 = vpop.f32.mrb[51].mxu1 }
 0xb44   :  { %2919 = vrot.lane.b32.xlu0 %v7387_v18, %s6879_s18  ;;  %2808 = vrot.lane.b32.xlu1 %v7387_v18, %s6877_s16  ;;  %v2805_v22 = vpack.c.bf16 %v2804_v17, %v2804_v17 }
 0xb48   :  { %3027 = vrot.lane.b32.xlu0 %v2805_v22, %s6881_s20  ;;  %2917 = vrot.lane.b32.xlu1 %v2805_v22, %s6878_s17 }
 0xb4c   :  { %3029 = vrot.lane.b32.xlu1 %v7387_v18, %s6880_s19 }
 0xbb6   :  { %v2809_v26 = vpop.permute.xlu1 %2808  ;;  %v2920_v30 = vpop.permute.xlu0 %2919 }
 0xbb7   :  { %v2814_v27 = vsel %vm137_vm3, %v2809_v26, 0  ;;  %v2925_v7 = vsel %vm137_vm3, %v2920_v30, 0 }
 0xbb8   :  { %6448 = vmatpush3.bf16.xpose.msra.mxu0 %v2814_v27 }
 0xbb9   :  { %6459 = vmatprep.subr.bf16.mxu0 %v6875_v0 }
 0xbba   :  { %v2918_v31 = vpop.permute.xlu1 %2917  ;;  %v3028_v34 = vpop.permute.xlu0 %3027 }
 0xbbe   :  { %v3030_v32 = vpop.permute.xlu1 %3029 }
 0xbbf   :  { %6450 = vmatmul.mubr.msk.bf16.vlgmr.msra.gmra.mrb[48].mxu0 %vm137_vm3, %v2805_v22  ;;  %v3035_v33 = vsel %vm137_vm3, %v3030_v32, 0 }
 0xbc0   :  { %6460 = vmatpush3.bf16.xpose.msra.mxu0 %v2925_v7  ;;  %6461 = vmatprep.mubr.msk.bf16.mxu0 %vm6876_vm0, %v6875_v0  ;;  %v6658_v7 = vld [vmem:[%s7767_s3 + $0x20] sm:$0xff]  }
 0xbc1   :  { %6471 = vmatprep.subr.bf16.mxu0 %v6875_v0 }
 0xbc7   :  { %6462 = vmatmul.mubr.msk.bf16.vlgmr.msra.gmra.mrb[52].mxu0 %vm137_vm3, %v2918_v31  ;;  %v6657_v31 = vld [vmem:[%s7767_s3 + $0x18] sm:$0xff]  }
 0xbc8   :  { %6472 = vmatpush3.bf16.xpose.msra.mxu0 %v3035_v33  ;;  %6473 = vmatprep.mubr.msk.bf16.mxu0 %vm6876_vm0, %v6875_v0 }
 0xbc9   :  { %6483 = vmatprep.subr.bf16.mxu0 %v6875_v0 }
 0xbcf   :  { %6474 = vmatmul.mubr.msk.bf16.vlgmr.msra.gmra.mrb[56].mxu0 %vm137_vm3, %v3028_v34 }
 0xbd0   :  { %6489 = vmatprep.mubr.msk.bf16.mxu0 %vm6876_vm0, %v6875_v0  ;;  %6484 = vmatpush3.bf16.msra.mxu0 %v6657_v31  ;;  %v5776_v31 = vld [vmem:[%s7768_s4 + $0x2c8] sm:$0x11] }
 0xbd1   :  { %6485 = vmatprep.subr.bf16.mxu0 %v6875_v0 }
 0xbd4   :  { %6486 = vmatpush3.bf16.msra.mxu0 %v6658_v7 }
 0xbd5   :  { %6487 = vmatprep.subr.bf16.mxu0 %v6875_v0 }
 0xc92   :  { %v2850_v35 = vpop.f32.mrb[48].mxu0 }
 0xc93   :  { %v6451_v36 = vpop.f32.mrb[49].mxu0  ;;  %v2856_v37 = vsel %vm184_vm4, %v2850_v35, -inf }
 0xc94   :  { %2857 = vmax.xlane.f32.xlu1 %v2856_v37  ;;  %v2853_v38 = vpop.f32.mrb[50].mxu0 }
 0xc95   :  { %v6452_v39 = vpop.f32.mrb[51].mxu0 }
 0xc9a   :  { %v2961_v42 = vpop.f32.mrb[52].mxu0 }
 0xc9b   :  { %v6463_v43 = vpop.f32.mrb[53].mxu0  ;;  %v2967_v44 = vsel %vm184_vm4, %v2961_v42, -inf }
 0xc9c   :  { %2968 = vmax.xlane.f32.xlu0 %v2967_v44  ;;  %v2964_v45 = vpop.f32.mrb[54].mxu0 }
 0xc9d   :  { %v6464_v10 = vpop.f32.mrb[55].mxu0 }
 0xca2   :  { %v3071_v46 = vpop.f32.mrb[56].mxu0 }
 0xca3   :  { %v6475_v47 = vpop.f32.mrb[57].mxu0  ;;  %v3077_v48 = vsel %vm184_vm4, %v3071_v46, -inf }
 0xca4   :  { %3078 = vmax.xlane.f32.xlu0 %v3077_v48  ;;  %v3074_v49 = vpop.f32.mrb[58].mxu0 }
 0xca5   :  { %v6476_v50 = vpop.f32.mrb[59].mxu0 }
 0xd21   :  { %v2858_v29 = vpop.xlane.xlu1 %2857 }
 0xd22   :  { %v2859_v25 = vsub.f32 %v2850_v35, %v2858_v29 }
 0xd24   :  { %v2860_v53 = vmul.f32 1.442695, %v2859_v25  ;;  %v5728_v25 = vld [vmem:[%s7771_s7 + $0x6] ss:$0 sm:$0xff] }
 0xd26   :  { %6807 = vpow2.f32 %v2860_v53 }
 0xd29   :  { %v2969_v54 = vpop.xlane.xlu0 %2968 }
 0xd2a   :  { %v2970_v57 = vsub.f32 %v2961_v42, %v2969_v54  ;;  %v6659_v42 = vld [vmem:[%s7767_s3 + $0x28] sm:$0x1f]  }
 0xd2b   :  { %v3181_v43 = vsel %vm87_vm1, %v6659_v42, 0 }
 0xd2c   :  { %v2971_v55 = vmul.f32 1.442695, %v2970_v57  ;;  %6488 = vmatpush3.bf16.msra.mxu0 %v3181_v43  ;;  %v5746_v43 = vld [vmem:[%s7768_s4 + $0x1d8] sm:$0xff] }
 0xd2e   :  { %6809 = vpow2.f32 %v2971_v55 }
 0xd30   :  { %v6808_v51 = vpop.eup %6807 }
 0xd31   :  { %v2862_v60 = vsel %vm184_vm4, %v6808_v51, 0.0  ;;  %v3079_v52 = vpop.xlane.xlu0 %3078 }
 0xd32   :  { %2863 = vadd.xlane.f32.xlu1 %v2862_v60  ;;  %v3080_v58 = vsub.f32 %v3071_v46, %v3079_v52 }
 0xd34   :  { %v3081_v59 = vmul.f32 1.442695, %v3080_v58 }
 0xd36   :  { %6811 = vpow2.f32 %v3081_v59 }
 0xd38   :  { %v6810_v56 = vpop.eup %6809 }
 0xd39   :  { %v2973_v28 = vsel %vm184_vm4, %v6810_v56, 0.0 }
 0xd3a   :  { %2974 = vadd.xlane.f32.xlu0 %v2973_v28 }
 0xd40   :  { %v6812_v63 = vpop.eup %6811 }
 0xd41   :  { %v3083_v1 = vsel %vm184_vm4, %v6812_v63, 0.0 }
 0xd43   :  { %2979 = vrot.lane.b32.xlu1 %v7387_v18, %s6882_s21 }
 0xd50   :  { %2868 = vrot.lane.b32.xlu0 %v7387_v18, %s6883_s22 }
 0xd67   :  { %3084 = vadd.xlane.f32.xlu1 %v3083_v1  ;;  %v5735_v1 = vld [vmem:[%s7768_s4 + $0x180] sm:$0xff] }
 0xd78   :  { %3089 = vrot.lane.b32.xlu1 %v7387_v18, %s6884_s23 }
 0xdbf   :  { %v2864_v23 = vpop.xlane.xlu1 %2863 }
 0xdc0   :  { %6813 = vrcp.f32 %v2864_v23  ;;  %v5743_v23 = vld [vmem:[%s7768_s4 + $0x1c0] sm:$0xff] }
 0xdc3   :  { %v2980_v6 = vpop.permute.xlu1 %2979 }
 0xdc4   :  { %v2985_v14 = vsel %vm202_vm5, %v2980_v6, 0  ;;  %v5751_v6 = vld [vmem:[%s7768_s4 + $0x200] sm:$0xff] }
 0xdc7   :  { %v2975_v2 = vpop.xlane.xlu0 %2974 }
 0xdc8   :  { %6815 = vrcp.f32 %v2975_v2  ;;  %v5786_v2 = vcombine.high %v5735_v1, %v5743_v23 }
 0xdca   :  { %v6814_v3 = vpop.eup %6813 }
 0xdcb   :  { %v2866_v4 = vmul.f32 %v6814_v3, %v6808_v51  ;;  %v2869_v24 = vpop.permute.xlu0 %2868  ;;  %v5744_v3 = vld [vmem:[%s7768_s4 + $0x1c8] sm:$0xff] }
 0xdcc   :  { %v2874_v61 = vsel %vm202_vm5, %v2869_v24, 0 }
 0xdcd   :  { %6454 = vmatpush3.bf16.msra.mxu1 %v2874_v61  ;;  %v2867_v62 = vpack.c.bf16 %v2866_v4, %v2866_v4  ;;  %v5785_v4 = vcombine.low %v5735_v1, %v5743_v23 }
 0xdce   :  { %6465 = vmatprep.subr.bf16.mxu1 %v6875_v0 }
 0xdd0   :  { %6456 = vmatmul.mubr.msk.bf16.vlgmr.msra.gmra.mrb[52].mxu1 %vm184_vm4, %v2867_v62  ;;  %v5759_v62 = vld [vmem:[%s7768_s4 + $0x240] sm:$0xff] }
 0xdd1   :  { %6466 = vmatpush3.bf16.msra.mxu1 %v2985_v14  ;;  %6467 = vmatprep.mubr.msk.bf16.mxu1 %vm6876_vm0, %v6875_v0  ;;  %v5752_v14 = vld [vmem:[%s7768_s4 + $0x208] sm:$0xff] }
 0xdd2   :  { %v6816_v15 = vpop.eup %6815  ;;  %6477 = vmatprep.subr.bf16.mxu1 %v6875_v0 }
 0xdd3   :  { %v2977_v16 = vmul.f32 %v6816_v15, %v6810_v56  ;;  %v5802_v15 = vcombine.high %v5751_v6, %v5759_v62 }
 0xdd5   :  { %v2978_v17 = vpack.c.bf16 %v2977_v16, %v2977_v16  ;;  %v5760_v16 = vld [vmem:[%s7768_s4 + $0x248] sm:$0xff] }
 0xdd8   :  { %6468 = vmatmul.mubr.msk.bf16.vlgmr.msra.gmra.mrb[56].mxu1 %vm184_vm4, %v2978_v17  ;;  %v5801_v17 = vcombine.low %v5751_v6, %v5759_v62  ;;  %v5740_v6 = vld [vmem:[%s7768_s4 + $0x1a8] sm:$0xff] }
 0xdd9   :  { %6479 = vmatprep.mubr.msk.bf16.mxu1 %vm6876_vm0, %v6875_v0  ;;  %v5748_v62 = vld [vmem:[%s7768_s4 + $0x1e8] sm:$0xff] }
 0xdf4   :  { %v3085_v18 = vpop.xlane.xlu1 %3084 }
 0xdf5   :  { %6817 = vrcp.f32 %v3085_v18  ;;  %v5803_v18 = vcombine.low %v5752_v14, %v5760_v16 }
 0xdf8   :  { %v3090_v21 = vpop.permute.xlu1 %3089 }
 0xdf9   :  { %v3095_v22 = vsel %vm202_vm5, %v3090_v21, 0  ;;  %v5804_v21 = vcombine.high %v5752_v14, %v5760_v16 }
 0xdfa   :  { %6478 = vmatpush3.bf16.msra.mxu1 %v3095_v22  ;;  %v5767_v22 = vld [vmem:[%s7768_s4 + $0x280] sm:$0xff] }
 0xdfb   :  { %3660 = vmatprep.subr.bf16.mxu1 %v5786_v2 }
 0xdff   :  { %v6818_v26 = vpop.eup %6817 }
 0xe00   :  { %v3087_v27 = vmul.f32 %v6818_v26, %v6812_v63  ;;  %v5775_v26 = vld [vmem:[%s7768_s4 + $0x2c0] sm:$0x11] }
 0xe01   :  { %v5817_v7 = vcombine.low %v5767_v22, %v5775_v26 }
 0xe02   :  { %v3088_v30 = vpack.c.bf16 %v3087_v27, %v3087_v27  ;;  %v5768_v27 = vld [vmem:[%s7768_s4 + $0x288] sm:$0xff] }
 0xe04   :  { %6480 = vmatmul.mubr.msk.bf16.vlgmr.msra.gmra.mrb[60].mxu1 %vm184_vm4, %v3088_v30  ;;  %v5818_v30 = vcombine.high %v5767_v22, %v5775_v26  ;;  %v5756_v22 = vld [vmem:[%s7768_s4 + $0x228] sm:$0xff] }
 0xe05   :  { %3692 = vmatprep.mubr.bf16.mxu1 %v6887_v13  ;;  %3661 = vmatpush1.bf16.msra.mxu1 %v5785_v4  ;;  %v5764_v26 = vld [vmem:[%s7768_s4 + $0x268] sm:$0xff] }
 0xe06   :  { %3662 = vmatprep.subr.bf16.mxu1 %v5802_v15 }
 0xe09   :  { %3663 = vmatpush1.bf16.msra.mxu1 %v5801_v17  ;;  %v5796_v17 = vcombine.high %v5740_v6, %v5748_v62 }
 0xe0a   :  { %5833 = vmatprep.subr.msk.bf16.mxu1 %vm87_vm1, %v5818_v30  ;;  %v5795_v30 = vcombine.low %v5740_v6, %v5748_v62  ;;  %v6660_v6 = vld [vmem:[#allocation2 + $0x440] sm:$0xff]  }
 0xe0b   :  { %v6661_v62 = vld [vmem:[#allocation2 + $0x4c0] sm:$0xff]  }
 0xea3   :  { %v2910_v32 = vpop.f32.mrb[52].mxu1 }
 0xea4   :  { %v6457_v33 = vpop.f32.mrb[53].mxu1 }
 0xea5   :  { %v2913_v34 = vpop.f32.mrb[54].mxu1  ;;  %v5819_v33 = vcombine.low %v5768_v27, %v5776_v31 }
 0xea6   :  { %v6458_v35 = vpop.f32.mrb[55].mxu1  ;;  %v3613_v34 = vsel %vm87_vm1, %v5817_v7, 0  ;;  %v5812_v7 = vcombine.high %v5756_v22, %v5764_v26 }
 0xea7   :  { %3665 = vmatpush1.bf16.msra.mxu1 %v3613_v34  ;;  %v3619_v35 = vsel %vm87_vm1, %v5819_v33, 0  ;;  %v5779_v33 = vld [vmem:[%s7768_s4 + $0x2e0] sm:$0x11]  ;;  %v5772_v34 = vld [vmem:[%s7768_s4 + $0x2a8] sm:$0xff] }
 0xeab   :  { %v3021_v36 = vpop.f32.mrb[56].mxu1 }
 0xeac   :  { %3138 = vrot.lane.b32.xlu0 %v3021_v36, %s6885_s28  ;;  %v6469_v37 = vpop.f32.mrb[57].mxu1  ;;  %v5737_v36 = vld [vmem:[%s7768_s4 + $0x190] sm:$0xff] }
 0xead   :  { %v3024_v38 = vpop.f32.mrb[58].mxu1  ;;  %v5745_v37 = vld [vmem:[%s7768_s4 + $0x1d0] sm:$0xff] }
 0xeae   :  { %v6470_v39 = vpop.f32.mrb[59].mxu1  ;;  %v5738_v38 = vld [vmem:[%s7768_s4 + $0x198] sm:$0xff]  ;;  %v5790_v42 = vcombine.high %v5737_v36, %v5745_v37 }
 0xeaf   :  { %v5789_v39 = vcombine.low %v5737_v36, %v5745_v37  ;;  %v5811_v37 = vcombine.low %v5756_v22, %v5764_v26  ;;  %v6669_v22 = vld [vmem:[#allocation2 + $0x4d0] sm:$0xff]  }
 0xeb0   :  { %3742 = vmatprep.subr.bf16.mxu1 %v5790_v42  ;;  %v6670_v26 = vld [vmem:[#allocation2 + $0x410] sm:$0xff]  }
 0xed7   :  { %v3131_v44 = vpop.f32.mrb[60].mxu1 }
 0xed8   :  { %3142 = vrot.lane.b32.xlu1 %v3131_v44, %s6886_s30  ;;  %v6481_v45 = vpop.f32.mrb[61].mxu1  ;;  %v5791_v44 = vcombine.low %v5738_v38, %v5746_v43 }
 0xed9   :  { %v3134_v10 = vpop.f32.mrb[62].mxu1  ;;  %v5792_v45 = vcombine.high %v5738_v38, %v5746_v43 }
 0xeda   :  { %v6482_v46 = vpop.f32.mrb[63].mxu1 }
 0xf1e   :  { %v3139_v47 = vpop.permute.xlu0 %3138 }
 0xf1f   :  { %v3145_v48 = vsel %vm137_vm3, %v2910_v32, %v3139_v47  ;;  %v5820_v32 = vcombine.high %v5768_v27, %v5776_v31 }
 0xf4a   :  { %v3143_v49 = vpop.permute.xlu1 %3142 }
 0xf4b   :  { %v3146_v50 = vsel %vm476_vm6, %v3145_v48, %v3143_v49  ;;  %v5733_v49 = vld [vmem:[%s7771_s7 + $0x8] ss:$0 sm:$0xff] }
 0xf4c   :  { %v3147_v29 = vpack.c.bf16 %v3146_v50, %v3146_v50 }
 0xf4e   :  { %6490 = vmatmul.mubr.msk.bf16.vlgmr.msra.gmra.mrb[60].mxu0 %vm83_vm2, %v3147_v29  ;;  %v5734_v29 = vld [vmem:[%s7771_s7 + $0x9] ss:$0 sm:$0xff] }
 0xf4f   :  { %3733 = vmatprep.mubr.bf16.mxu0 %v6887_v13 }
0x1021   :  { %v3217_v53 = vpop.f32.mrb[60].mxu0 }
0x1022   :  { %v3218_v54 = vadd.f32 %v5728_v25, %v3217_v53  ;;  %v6491_v57 = vpop.f32.mrb[61].mxu0  ;;  %v5753_v53 = vld [vmem:[%s7768_s4 + $0x210] sm:$0xff] }
0x1023   :  { %v3220_v55 = vpop.f32.mrb[62].mxu0  ;;  %v5754_v57 = vld [vmem:[%s7768_s4 + $0x218] sm:$0xff] }
0x1024   :  { %v6492_v51 = vpop.f32.mrb[63].mxu0  ;;  %v3223_v60 = vadd.f32 %v3218_v54, %v7377_v5  ;;  %v5736_v5 = vld [vmem:[%s7768_s4 + $0x188] sm:$0xff]  ;;  %v5761_v54 = vld [vmem:[%s7768_s4 + $0x250] sm:$0xff]  ;;  %v5762_v55 = vld [vmem:[%s7768_s4 + $0x258] sm:$0xff] }
0x1025   :  { %v5787_v24 = vcombine.low %v5736_v5, %v5744_v3  ;;  %v5788_v61 = vcombine.high %v5736_v5, %v5744_v3  ;;  %v5805_v1 = vcombine.low %v5753_v53, %v5761_v54  ;;  %v5807_v23 = vcombine.low %v5754_v57, %v5762_v55 }
0x1026   :  { %v3226_v56 = vsel %vm83_vm2, %v3223_v60, 0.0 }
0x1027   :  { %3227 = vadd.xlane.f32.xlu0 %v3226_v56  ;;  %3701 = vmatprep.subr.bf16.mxu0 %v5788_v61  ;;  %v5806_v56 = vcombine.high %v5753_v53, %v5761_v54  ;;  %v5747_v61 = vld [vmem:[%s7768_s4 + $0x1e0] sm:$0xff]  ;;  %v5758_v53 = vld [vmem:[%s7768_s4 + $0x238] sm:$0xff] }
0x1028   :  { %3702 = vmatpush1.bf16.msra.mxu0 %v5787_v24  ;;  %v5739_v24 = vld [vmem:[%s7768_s4 + $0x1a0] sm:$0xff]  ;;  %v5766_v54 = vld [vmem:[%s7768_s4 + $0x278] sm:$0xff] }
0x1029   :  { %3703 = vmatprep.subr.bf16.mxu0 %v5804_v21  ;;  %v5794_v16 = vcombine.high %v5739_v24, %v5747_v61  ;;  %v5763_v21 = vld [vmem:[%s7768_s4 + $0x260] sm:$0xff]  ;;  %v5793_v27 = vcombine.low %v5739_v24, %v5747_v61 }
0x102c   :  { %3704 = vmatpush1.bf16.msra.mxu0 %v5803_v18  ;;  %v5755_v18 = vld [vmem:[%s7768_s4 + $0x220] sm:$0xff] }
0x102d   :  { %5835 = vmatprep.subr.msk.bf16.mxu0 %vm87_vm1, %v5820_v32  ;;  %v5810_v31 = vcombine.high %v5755_v18, %v5763_v21  ;;  %v5771_v32 = vld [vmem:[%s7768_s4 + $0x2a0] sm:$0xff]  ;;  %v5809_v36 = vcombine.low %v5755_v18, %v5763_v21  ;;  %v6667_v18 = vld [vmem:[#allocation2 + $0x488] sm:$0xff]   ;;  %v6668_v21 = vld [vmem:[#allocation2 + $0x450] sm:$0xff]  }
0x102e   :  { %v5826_v38 = vcombine.high %v5771_v32, %v5779_v33  ;;  %v5825_v42 = vcombine.low %v5771_v32, %v5779_v33  ;;  %v6676_v32 = vld [vmem:[#allocation2 + $0x460] sm:$0xff]  }
0x102f   :  { %v6677_v33 = vld [vmem:[#allocation2 + $0x4e0] sm:$0xff]  }
0x1030   :  { %3706 = vmatpush1.bf16.msra.mxu0 %v3619_v35  ;;  %v5780_v35 = vld [vmem:[%s7768_s4 + $0x2e8] sm:$0x11] }
0x1031   :  { %3783 = vmatprep.subr.bf16.mxu0 %v5792_v45  ;;  %v5827_v43 = vcombine.low %v5772_v34, %v5780_v35  ;;  %v5749_v45 = vld [vmem:[%s7768_s4 + $0x1f0] sm:$0xff] }
0x10b4   :  { %v3228_v28 = vpop.xlane.xlu0 %3227 }
0x10b5   :  { %v3229_v52 = vmul.f32 0.023809524, %v3228_v28  ;;  %v5808_v28 = vcombine.high %v5754_v57, %v5762_v55 }
0x10b7   :  { %v3230_v58 = vsub.f32 %v3223_v60, %v3229_v52  ;;  %v5769_v52 = vld [vmem:[%s7768_s4 + $0x290] sm:$0xff] }
0x10b9   :  { %v3231_v59 = vmul.f32 %v3230_v58, %v3230_v58 }
0x10bb   :  { %v3232_v63 = vsel %vm83_vm2, %v3231_v59, 0.0  ;;  %v5770_v59 = vld [vmem:[%s7768_s4 + $0x298] sm:$0xff] }
0x10bc   :  { %3233 = vadd.xlane.f32.xlu1 %v3232_v63  ;;  %v5778_v63 = vld [vmem:[%s7768_s4 + $0x2d8] sm:$0x11] }
0x10bd   :  { %v5824_v2 = vcombine.high %v5770_v59, %v5778_v63  ;;  %v5823_v4 = vcombine.low %v5770_v59, %v5778_v63  ;;  %v5774_v59 = vld [vmem:[%s7768_s4 + $0x2b8] sm:$0xff] }
0x10be   :  { %v5782_v63 = vld [vmem:[%s7768_s4 + $0x2f8] sm:$0x11] }
0x10bf   :  { %v3631_v15 = vsel %vm87_vm1, %v5823_v4, 0  ;;  %v5831_v4 = vcombine.low %v5774_v59, %v5782_v63 }
0x10c1   :  { %v3655_v61 = vsel %vm87_vm1, %v5831_v4, 0 }
0x1149   :  { %v3234_v10 = vpop.xlane.xlu1 %3233 }
0x114a   :  { %v3235_v46 = vmul.f32 0.023809524, %v3234_v10  ;;  %v5742_v10 = vld [vmem:[%s7768_s4 + $0x1b8] sm:$0xff] }
0x114c   :  { %v3236_v47 = vadd.f32 1e-05, %v3235_v46  ;;  %v5750_v46 = vld [vmem:[%s7768_s4 + $0x1f8] sm:$0xff] }
0x114d   :  { %v5799_v55 = vcombine.low %v5742_v10, %v5750_v46 }
0x114e   :  { %6819 = vrsqrt.f32 %v3236_v47  ;;  %v3637_v47 = vsel %vm87_vm1, %v5825_v42, 0  ;;  %v6684_v42 = vld [vmem:[#allocation2 + $0x470] sm:$0xff]  }
0x1158   :  { %v6820_v48 = vpop.eup %6819 }
0x1159   :  { %v3238_v50 = vmul.f32 %v6820_v48, %v3230_v58  ;;  %v5777_v58 = vld [vmem:[%s7768_s4 + $0x2d0] sm:$0x11]  ;;  %v3643_v48 = vsel %vm87_vm1, %v5827_v43, 0 }
0x115a   :  { %v5822_v5 = vcombine.high %v5769_v52, %v5777_v58  ;;  %v5821_v3 = vcombine.low %v5769_v52, %v5777_v58  ;;  %v5773_v52 = vld [vmem:[%s7768_s4 + $0x2b0] sm:$0xff] }
0x115b   :  { %v3243_v25 = vmul.f32 %v5733_v49, %v3238_v50  ;;  %v5800_v50 = vcombine.high %v5742_v10, %v5750_v46  ;;  %v5781_v58 = vld [vmem:[%s7768_s4 + $0x2f0] sm:$0x11]  ;;  %v6688_v10 = vld [vmem:[#allocation2 + $0x478] sm:$0xff]  }
0x115c   :  { %v3625_v14 = vsel %vm87_vm1, %v5821_v3, 0  ;;  %v5829_v3 = vcombine.low %v5773_v52, %v5781_v58  ;;  %v6685_v43 = vld [vmem:[#allocation2 + $0x4f0] sm:$0xff]   ;;  %v6689_v46 = vld [vmem:[#allocation2 + $0x4f8] sm:$0xff]  }
0x115d   :  { %v7531_v51 = vadd.f32 %v5734_v29, %v3243_v25  ;;  %v5757_v29 = vld [vmem:[%s7768_s4 + $0x230] sm:$0xff] }
0x115e   :  { %v5765_v25 = vld [vmem:[%s7768_s4 + $0x270] sm:$0xff]  ;;  %v3649_v24 = vsel %vm87_vm1, %v5829_v3, 0 }
0x115f   :  { %v7535_v60 = vpack.c.bf16 %v7531_v51, %v7531_v51 }
0x1161   :  { %5834 = vmatmul.mubr.msk.bf16.vlgmr.msra.gmra.mrb[64].mxu1 %vm83_vm2, %v7535_v60  ;;  %5836 = vmatmul.mubr.msk.bf16.vlgmr.msra.gmra.mrb[64].mxu0 %vm83_vm2, %v7535_v60 }
0x1162   :  { %3743 = vmatpush1.bf16.msra.mxu1 %v5789_v39  ;;  %3784 = vmatpush1.bf16.msra.mxu0 %v5791_v44  ;;  %v5828_v39 = vcombine.high %v5772_v34, %v5780_v35  ;;  %v5741_v44 = vld [vmem:[%s7768_s4 + $0x1b0] sm:$0xff]  ;;  %v6678_v34 = vld [vmem:[#allocation2 + $0x420] sm:$0xff]  }
0x1163   :  { %3744 = vmatprep.subr.bf16.mxu1 %v5806_v56  ;;  %3785 = vmatprep.subr.bf16.mxu0 %v5808_v28  ;;  %v5798_v49 = vcombine.high %v5741_v44, %v5749_v45  ;;  %v5797_v57 = vcombine.low %v5741_v44, %v5749_v45  ;;  %v5814_v56 = vcombine.high %v5757_v29, %v5765_v25  ;;  %v6679_v35 = vld [vmem:[#allocation2 + $0x4a0] sm:$0xff]   ;;  %v6686_v44 = vld [vmem:[#allocation2 + $0x430] sm:$0xff]  }
0x1164   :  { %3774 = vmatprep.mubr.bf16.mxu1 %v6887_v13  ;;  %3815 = vmatprep.mubr.bf16.mxu0 %v6887_v13  ;;  %v5816_v28 = vcombine.high %v5758_v53, %v5766_v54  ;;  %v6687_v45 = vld [vmem:[#allocation2 + $0x4b0] sm:$0xff]  }
0x1166   :  { %3745 = vmatpush1.bf16.msra.mxu1 %v5805_v1  ;;  %3786 = vmatpush1.bf16.msra.mxu0 %v5807_v23  ;;  %v5813_v1 = vcombine.low %v5757_v29, %v5765_v25  ;;  %v5815_v23 = vcombine.low %v5758_v53, %v5766_v54  ;;  %v7658_v29 = vld [vmem:[%s7770_s6 + $0x1] ss:$2 sm:$0xff] }
0x1167   :  { %5837 = vmatprep.subr.msk.bf16.mxu1 %vm87_vm1, %v5822_v5  ;;  %5839 = vmatprep.subr.msk.bf16.mxu0 %vm87_vm1, %v5824_v2  ;;  %v5830_v5 = vcombine.high %v5773_v52, %v5781_v58  ;;  %v5832_v2 = vcombine.high %v5774_v59, %v5782_v63  ;;  %v3308_v25 = vrot.slane %v7658_v29, %v7257_v8 }
0x1168   :  { %v3316_v53 = vrot.slane %v7658_v29, %v7260_v9  ;;  %v3312_v54 = vrot.slane %v7658_v29, %v7268_v11 }
0x116a   :  { %3747 = vmatpush1.bf16.msra.mxu1 %v3625_v14  ;;  %3788 = vmatpush1.bf16.msra.mxu0 %v3631_v15  ;;  %v6662_v14 = vld [vmem:[#allocation2 + $0x400] sm:$0xff]  }
0x116b   :  { %3824 = vmatprep.subr.bf16.mxu1 %v5794_v16  ;;  %3865 = vmatprep.subr.bf16.mxu0 %v5796_v17  ;;  %v6663_v15 = vld [vmem:[#allocation2 + $0x480] sm:$0xff]   ;;  %v6664_v16 = vld [vmem:[#allocation2 + $0x448] sm:$0xff]  }
0x116c   :  { %v6666_v17 = vld [vmem:[#allocation2 + $0x408] sm:$0xff]  }
0x116d   :  { %5838 = vmatmul.mubr.msk.bf16.vlgmr.msra.gmra.mrb[68].mxu1 %vm83_vm2, %v7535_v60  ;;  %5840 = vmatmul.mubr.msk.bf16.vlgmr.msra.gmra.mrb[68].mxu0 %vm83_vm2, %v7535_v60 }
0x116e   :  { %3825 = vmatpush1.bf16.msra.mxu1 %v5793_v27  ;;  %3866 = vmatpush1.bf16.msra.mxu0 %v5795_v30  ;;  %v6671_v27 = vld [vmem:[#allocation2 + $0x490] sm:$0xff]   ;;  %v6672_v30 = vld [vmem:[#allocation2 + $0x458] sm:$0xff]  }
0x116f   :  { %3826 = vmatprep.subr.bf16.mxu1 %v5810_v31  ;;  %3867 = vmatprep.subr.bf16.mxu0 %v5812_v7  ;;  %v6673_v31 = vld [vmem:[#allocation2 + $0x4d8] sm:$0xff]  }
0x1170   :  { %3856 = vmatprep.mubr.bf16.mxu1 %v6887_v13  ;;  %3897 = vmatprep.mubr.bf16.mxu0 %v6887_v13  ;;  %v6674_v7 = vld [vmem:[#allocation2 + $0x418] sm:$0xff]  }
0x1172   :  { %3827 = vmatpush1.bf16.msra.mxu1 %v5809_v36  ;;  %3868 = vmatpush1.bf16.msra.mxu0 %v5811_v37  ;;  %v6680_v36 = vld [vmem:[#allocation2 + $0x468] sm:$0xff]  }
0x1173   :  { %5841 = vmatprep.subr.msk.bf16.mxu1 %vm87_vm1, %v5826_v38  ;;  %5843 = vmatprep.subr.msk.bf16.mxu0 %vm87_vm1, %v5828_v39  ;;  %v6681_v37 = vld [vmem:[#allocation2 + $0x4e8] sm:$0xff]  }
0x1174   :  { %v6682_v38 = vld [vmem:[#allocation2 + $0x428] sm:$0xff]  }
0x1175   :  { %v6683_v39 = vld [vmem:[#allocation2 + $0x4a8] sm:$0xff]  }
0x1176   :  { %3829 = vmatpush1.bf16.msra.mxu1 %v3637_v47  ;;  %3870 = vmatpush1.bf16.msra.mxu0 %v3643_v48  ;;  %v6690_v47 = vld [vmem:[#allocation2 + $0x438] sm:$0xff]  }
0x1177   :  { %3906 = vmatprep.subr.bf16.mxu1 %v5798_v49  ;;  %3947 = vmatprep.subr.bf16.mxu0 %v5800_v50  ;;  %v6691_v48 = vld [vmem:[#allocation2 + $0x4b8] sm:$0xff]   ;;  %v6692_v49 = vld [vmem:[#allocation2 + $0x540] sm:$0xff]  }
0x1178   :  { %v6693_v50 = vld [vmem:[#allocation2 + $0x5c0] sm:$0xff]  }
0x1179   :  { %5842 = vmatmul.mubr.msk.bf16.vlgmr.msra.gmra.mrb[72].mxu1 %vm83_vm2, %v7535_v60  ;;  %5844 = vmatmul.mubr.msk.bf16.vlgmr.msra.gmra.mrb[72].mxu0 %vm83_vm2, %v7535_v60 }
0x117a   :  { %3907 = vmatpush1.bf16.msra.mxu1 %v5797_v57  ;;  %3948 = vmatpush1.bf16.msra.mxu0 %v5799_v55  ;;  %v3320_v57 = vrot.slane %v7658_v29, %v7271_v12 }
0x117b   :  { %3908 = vmatprep.subr.bf16.mxu1 %v5814_v56  ;;  %3949 = vmatprep.subr.bf16.mxu0 %v5816_v28 }
0x117c   :  { %3938 = vmatprep.mubr.bf16.mxu1 %v6887_v13  ;;  %3979 = vmatprep.mubr.bf16.mxu0 %v6887_v13  ;;  %v6665_v13 = vld [vmem:[#allocation2 + $0x4c8] sm:$0xff]  }
0x117e   :  { %3909 = vmatpush1.bf16.msra.mxu1 %v5813_v1  ;;  %3950 = vmatpush1.bf16.msra.mxu0 %v5815_v23 }
0x117f   :  { %5845 = vmatprep.subr.msk.bf16.mxu1 %vm87_vm1, %v5830_v5  ;;  %5847 = vmatprep.subr.msk.bf16.mxu0 %vm87_vm1, %v5832_v2 }
0x1182   :  { %3911 = vmatpush1.bf16.msra.mxu1 %v3649_v24  ;;  %3952 = vmatpush1.bf16.msra.mxu0 %v3655_v61 }
0x1183   :  { %6201 = vmatprep.subr.bf16.mxu1 %v6660_v6  ;;  %6223 = vmatprep.subr.bf16.mxu0 %v6661_v62 }
0x1185   :  { %5846 = vmatmul.mubr.msk.bf16.vlgmr.msra.gmra.mrb[76].mxu1 %vm83_vm2, %v7535_v60  ;;  %5848 = vmatmul.mubr.msk.bf16.vlgmr.msra.gmra.mrb[76].mxu0 %vm83_vm2, %v7535_v60  ;;  %v6675_v60 = vld [vmem:[#allocation2 + $0x498] sm:$0xff]  }
0x1186   :  { %6202 = vmatpush3.bf16.msra.mxu1 %v6662_v14  ;;  %6224 = vmatpush3.bf16.msra.mxu0 %v6663_v15  ;;  %v6694_v15 = vld [vmem:[#allocation2 + $0x500] sm:$0xff]  }
0x1187   :  { %6203 = vmatprep.subr.bf16.mxu1 %v6664_v16  ;;  %6225 = vmatprep.subr.bf16.mxu0 %v6665_v13  ;;  %v6695_v16 = vld [vmem:[#allocation2 + $0x580] sm:$0xff]  }
0x118a   :  { %6204 = vmatpush3.bf16.msra.mxu1 %v6666_v17  ;;  %6226 = vmatpush3.bf16.msra.mxu0 %v6667_v18  ;;  %v6696_v18 = vld [vmem:[#allocation2 + $0x548] sm:$0xff]  }
0x118b   :  { %6205 = vmatprep.subr.bf16.mxu1 %v6668_v21  ;;  %6227 = vmatprep.subr.bf16.mxu0 %v6669_v22  ;;  %v6697_v21 = vld [vmem:[#allocation2 + $0x5c8] sm:$0xff]   ;;  %v3328_v22 = vrot.slane %v7658_v29, %v7282_v40 }
0x118e   :  { %6206 = vmatpush3.bf16.msra.mxu1 %v6670_v26  ;;  %6228 = vmatpush3.bf16.msra.mxu0 %v6671_v27  ;;  %v3336_v26 = vrot.slane %v7658_v29, %v7285_v41  ;;  %v6698_v27 = vld [vmem:[#allocation2 + $0x508] sm:$0xff]  }
0x118f   :  { %6207 = vmatprep.subr.bf16.mxu1 %v6672_v30  ;;  %6229 = vmatprep.subr.bf16.mxu0 %v6673_v31  ;;  %v6699_v30 = vld [vmem:[#allocation2 + $0x588] sm:$0xff]   ;;  %v6700_v31 = vld [vmem:[#allocation2 + $0x550] sm:$0xff]  }
0x1192   :  { %6208 = vmatpush3.bf16.msra.mxu1 %v6674_v7  ;;  %6230 = vmatpush3.bf16.msra.mxu0 %v6675_v60  ;;  %v6701_v7 = vld [vmem:[#allocation2 + $0x5d0] sm:$0xff]  }
0x1193   :  { %6209 = vmatprep.subr.bf16.mxu1 %v6676_v32  ;;  %6231 = vmatprep.subr.bf16.mxu0 %v6677_v33 }
0x1196   :  { %6210 = vmatpush3.bf16.msra.mxu1 %v6678_v34  ;;  %6232 = vmatpush3.bf16.msra.mxu0 %v6679_v35 }
0x1197   :  { %6211 = vmatprep.subr.bf16.mxu1 %v6680_v36  ;;  %6233 = vmatprep.subr.bf16.mxu0 %v6681_v37 }
0x119a   :  { %6212 = vmatpush3.bf16.msra.mxu1 %v6682_v38  ;;  %6234 = vmatpush3.bf16.msra.mxu0 %v6683_v39  ;;  %v6702_v39 = vld [vmem:[#allocation2 + $0x510] sm:$0xff]  }
0x119b   :  { %6213 = vmatprep.subr.bf16.mxu1 %v6684_v42  ;;  %6235 = vmatprep.subr.bf16.mxu0 %v6685_v43  ;;  %v6703_v42 = vld [vmem:[#allocation2 + $0x590] sm:$0xff]  }
0x119e   :  { %6214 = vmatpush3.bf16.msra.mxu1 %v6686_v44  ;;  %6236 = vmatpush3.bf16.msra.mxu0 %v6687_v45  ;;  %v6704_v45 = vld [vmem:[#allocation2 + $0x558] sm:$0xff]  }
0x119f   :  { %6215 = vmatprep.subr.bf16.mxu1 %v6688_v10  ;;  %6237 = vmatprep.subr.bf16.mxu0 %v6689_v46  ;;  %v6705_v10 = vld [vmem:[#allocation2 + $0x5d8] sm:$0xff]  }
0x11a2   :  { %6216 = vmatpush3.bf16.msra.mxu1 %v6690_v47  ;;  %6238 = vmatpush3.bf16.msra.mxu0 %v6691_v48 }
0x11a3   :  { %6245 = vmatprep.subr.bf16.mxu1 %v6692_v49  ;;  %6267 = vmatprep.subr.bf16.mxu0 %v6693_v50  ;;  %v6706_v50 = vld [vmem:[#allocation2 + $0x518] sm:$0xff]  }
0x1234   :  { %v3694_v55 = vpop.f32.mrb[64].mxu1  ;;  %v3735_v56 = vpop.f32.mrb[64].mxu0 }
0x1235   :  { %v3695_v28 = vadd.f32 %v3694_v55, %v3308_v25  ;;  %v3736_v52 = vadd.f32 %v3735_v56, %v3316_v53  ;;  %v3696_v58 = vpop.f32.mrb[65].mxu1  ;;  %v3737_v59 = vpop.f32.mrb[65].mxu0  ;;  %v6707_v25 = vld [vmem:[#allocation2 + $0x598] sm:$0xff]   ;;  %v6708_v53 = vld [vmem:[#allocation2 + $0x560] sm:$0xff]   ;;  %v6712_v56 = vld [vmem:[#allocation2 + $0x568] sm:$0xff]  }
0x1236   :  { %v3697_v63 = vadd.f32 %v3696_v58, %v3312_v54  ;;  %v3738_v1 = vadd.f32 %v3737_v59, %v3320_v57  ;;  %v3698_v23 = vpop.f32.mrb[66].mxu1  ;;  %v3739_v5 = vpop.f32.mrb[66].mxu0  ;;  %v6709_v54 = vld [vmem:[#allocation2 + $0x5e0] sm:$0xff]   ;;  %v7683_v59 = vld [vmem:[%s7770_s6 + $0x11] ss:$2 sm:$0xff] }
0x1237   :  { %v3988_v2 = vmax.f32 %v3695_v28, 0.0  ;;  %v3990_v3 = vmax.f32 %v3736_v52, 0.0  ;;  %v3699_v4 = vpop.f32.mrb[67].mxu1  ;;  %v3740_v24 = vpop.f32.mrb[67].mxu0  ;;  %v6710_v57 = vld [vmem:[#allocation2 + $0x520] sm:$0xff]   ;;  %v6713_v28 = vld [vmem:[#allocation2 + $0x5e8] sm:$0xff]  }
0x1238   :  { %v3989_v61 = vmax.f32 %v3697_v63, 0.0  ;;  %v3991_v6 = vmax.f32 %v3738_v1, 0.0  ;;  %v6711_v55 = vld [vmem:[#allocation2 + $0x5a0] sm:$0xff]   ;;  %v3324_v4 = vrot.slane %v7658_v29, %v7296_v19  ;;  %v3332_v24 = vrot.slane %v7658_v29, %v7299_v20 }
0x1239   :  { %v4004_v13 = vpack.c.bf16 %v3988_v2, %v3988_v2  ;;  %v4006_v17 = vpack.c.bf16 %v3990_v3, %v3990_v3  ;;  %v6714_v2 = vld [vmem:[#allocation2 + $0x528] sm:$0xff]  }
0x123a   :  { %v4005_v62 = vpack.c.bf16 %v3989_v61, %v3989_v61  ;;  %v4007_v14 = vpack.c.bf16 %v3991_v6, %v3991_v6  ;;  %v6715_v3 = vld [vmem:[#allocation2 + $0x5a8] sm:$0xff]  }
0x123c   :  { %5077 = vmatprep.mubr.bf16.mxu1 %v4005_v62  ;;  %5117 = vmatprep.mubr.bf16.mxu0 %v4007_v14  ;;  %v6716_v62 = vld [vmem:[#allocation2 + $0x570] sm:$0xff]  }
0x123d   :  { %5078 = vmatmul.mubr.bf16.vlgmr.msra.gmra.mrb[80].mxu1 %v4004_v13  ;;  %5118 = vmatmul.mubr.bf16.vlgmr.msra.gmra.mrb[80].mxu0 %v4006_v17  ;;  %v6717_v14 = vld [vmem:[#allocation2 + $0x5f0] sm:$0xff]  }
0x123e   :  { %6246 = vmatpush3.bf16.msra.mxu1 %v6694_v15  ;;  %6268 = vmatpush3.bf16.msra.mxu0 %v6695_v16  ;;  %v3344_v15 = vrot.slane %v7683_v59, %v7268_v11  ;;  %v3352_v16 = vrot.slane %v7683_v59, %v7271_v12  ;;  %v6718_v13 = vld [vmem:[#allocation2 + $0x530] sm:$0xff]   ;;  %v3364_v11 = vrot.slane %v7683_v59, %v7299_v20  ;;  %v6722_v12 = vld [vmem:[#allocation2 + $0x538] sm:$0xff]  }
0x123f   :  { %6247 = vmatprep.subr.bf16.mxu1 %v6696_v18  ;;  %6269 = vmatprep.subr.bf16.mxu0 %v6697_v21  ;;  %v6719_v17 = vld [vmem:[#allocation2 + $0x5b0] sm:$0xff]   ;;  %v6720_v21 = vld [vmem:[#allocation2 + $0x578] sm:$0xff]  }
0x1240   :  { %v7672_v60 = vpop.f32.mrb[68].mxu1  ;;  %v7674_v32 = vpop.f32.mrb[68].mxu0 }
0x1241   :  { %v3778_v33 = vpop.f32.mrb[69].mxu1  ;;  %v3819_v34 = vpop.f32.mrb[69].mxu0  ;;  %v3777_v18 = vadd.f32 %v7672_v60, %v3324_v4  ;;  %v3818_v29 = vadd.f32 %v7674_v32, %v3332_v24  ;;  %v6724_v60 = vld [vmem:[#allocation2 + $0x640] sm:$0xff]  }
0x1242   :  { %v3779_v35 = vadd.f32 %v3778_v33, %v3328_v22  ;;  %v3820_v36 = vadd.f32 %v3819_v34, %v3336_v26  ;;  %v3780_v37 = vpop.f32.mrb[70].mxu1  ;;  %v3821_v38 = vpop.f32.mrb[70].mxu0  ;;  %6248 = vmatpush3.bf16.msra.mxu1 %v6698_v27  ;;  %6270 = vmatpush3.bf16.msra.mxu0 %v6699_v30  ;;  %v6721_v22 = vld [vmem:[#allocation2 + $0x5f8] sm:$0xff]   ;;  %v6725_v33 = vld [vmem:[#allocation2 + $0x6c0] sm:$0xff]  }
0x1243   :  { %v3781_v43 = vpop.f32.mrb[71].mxu1  ;;  %v3822_v44 = vpop.f32.mrb[71].mxu0  ;;  %6249 = vmatprep.subr.bf16.mxu1 %v6700_v31  ;;  %6271 = vmatprep.subr.bf16.mxu0 %v6701_v7  ;;  %v6723_v30 = vld [vmem:[#allocation2 + $0x5b8] sm:$0xff]   ;;  %v3992_v31 = vmax.f32 %v3777_v18, 0.0  ;;  %v3994_v7 = vmax.f32 %v3818_v29, 0.0  ;;  %v6742_v4 = vld [vmem:[#allocation2 + $0x620] sm:$0xff]   ;;  %v3360_v18 = vrot.slane %v7683_v59, %v7282_v40  ;;  %v3368_v29 = vrot.slane %v7683_v59, %v7285_v41 }
0x1244   :  { %v3993_v46 = vmax.f32 %v3779_v35, 0.0  ;;  %v3995_v47 = vmax.f32 %v3820_v36, 0.0  ;;  %v6726_v43 = vld [vmem:[#allocation2 + $0x600] sm:$0xff]   ;;  %v6754_v40 = vld [vmem:[#allocation2 + $0x638] sm:$0xff]  }
0x1245   :  { %v4008_v44 = vpack.c.bf16 %v3992_v31, %v3992_v31  ;;  %v6743_v24 = vld [vmem:[#allocation2 + $0x6a0] sm:$0xff]   ;;  %v6755_v41 = vld [vmem:[#allocation2 + $0x6b8] sm:$0xff]  }
0x1246   :  { %v4009_v48 = vpack.c.bf16 %v3993_v46, %v3993_v46  ;;  %v4011_v49 = vpack.c.bf16 %v3995_v47, %v3995_v47  ;;  %6250 = vmatpush3.bf16.msra.mxu1 %v6702_v39  ;;  %6272 = vmatpush3.bf16.msra.mxu0 %v6703_v42  ;;  %v6727_v47 = vld [vmem:[#allocation2 + $0x680] sm:$0xff]  }
0x1247   :  { %6251 = vmatprep.subr.bf16.mxu1 %v6704_v45  ;;  %6273 = vmatprep.subr.bf16.mxu0 %v6705_v10  ;;  %v4010_v45 = vpack.c.bf16 %v3994_v7, %v3994_v7  ;;  %v6756_v31 = vld [vmem:[#allocation2 + $0x740] sm:$0xff]  }
0x1248   :  { %5157 = vmatprep.mubr.bf16.mxu1 %v4009_v48  ;;  %5197 = vmatprep.mubr.bf16.mxu0 %v4011_v49  ;;  %v6728_v49 = vld [vmem:[#allocation2 + $0x648] sm:$0xff]   ;;  %v6757_v7 = vld [vmem:[#allocation2 + $0x7c0] sm:$0xff]  }
0x124a   :  { %6252 = vmatpush3.bf16.msra.mxu1 %v6706_v50  ;;  %6274 = vmatpush3.bf16.msra.mxu0 %v6707_v25  ;;  %v6729_v50 = vld [vmem:[#allocation2 + $0x6c8] sm:$0xff]  }
0x124b   :  { %6253 = vmatprep.subr.bf16.mxu1 %v6708_v53  ;;  %6275 = vmatprep.subr.bf16.mxu0 %v6709_v54  ;;  %v6730_v53 = vld [vmem:[#allocation2 + $0x608] sm:$0xff]  }
0x124c   :  { %v7676_v52 = vpop.f32.mrb[72].mxu1  ;;  %v7678_v58 = vpop.f32.mrb[72].mxu0  ;;  %v6731_v54 = vld [vmem:[#allocation2 + $0x688] sm:$0xff]  }
0x124d   :  { %v3860_v63 = vpop.f32.mrb[73].mxu1  ;;  %v3901_v1 = vpop.f32.mrb[73].mxu0 }
0x124e   :  { %v3862_v23 = vpop.f32.mrb[74].mxu1  ;;  %v3903_v5 = vpop.f32.mrb[74].mxu0  ;;  %6254 = vmatpush3.bf16.msra.mxu1 %v6710_v57  ;;  %6276 = vmatpush3.bf16.msra.mxu0 %v6711_v55  ;;  %v3861_v26 = vadd.f32 %v3860_v63, %v3344_v15  ;;  %v3902_v27 = vadd.f32 %v3901_v1, %v3352_v16  ;;  %v6732_v57 = vld [vmem:[#allocation2 + $0x650] sm:$0xff]   ;;  %v6736_v63 = vld [vmem:[#allocation2 + $0x658] sm:$0xff]   ;;  %v6747_v15 = vld [vmem:[#allocation2 + $0x6a8] sm:$0xff]  }
0x124f   :  { %v3863_v61 = vpop.f32.mrb[75].mxu1  ;;  %v3904_v6 = vpop.f32.mrb[75].mxu0  ;;  %6255 = vmatprep.subr.bf16.mxu1 %v6712_v56  ;;  %6277 = vmatprep.subr.bf16.mxu0 %v6713_v28  ;;  %v6733_v55 = vld [vmem:[#allocation2 + $0x6d0] sm:$0xff]   ;;  %v6737_v1 = vld [vmem:[#allocation2 + $0x6d8] sm:$0xff]  }
0x1250   :  { %v3997_v32 = vmax.f32 %v3861_v26, 0.0  ;;  %v3999_v36 = vmax.f32 %v3902_v27, 0.0  ;;  %v6734_v56 = vld [vmem:[#allocation2 + $0x610] sm:$0xff]   ;;  %v6738_v23 = vld [vmem:[#allocation2 + $0x618] sm:$0xff]   ;;  %v6744_v61 = vld [vmem:[#allocation2 + $0x668] sm:$0xff]  }
0x1251   :  { %v6735_v28 = vld [vmem:[#allocation2 + $0x690] sm:$0xff]   ;;  %v6739_v5 = vld [vmem:[#allocation2 + $0x698] sm:$0xff]   ;;  %v6745_v6 = vld [vmem:[#allocation2 + $0x6e8] sm:$0xff]  }
0x1252   :  { %6256 = vmatpush3.bf16.msra.mxu1 %v6714_v2  ;;  %6278 = vmatpush3.bf16.msra.mxu0 %v6715_v3  ;;  %v4013_v48 = vpack.c.bf16 %v3997_v32, %v3997_v32  ;;  %v4015_v25 = vpack.c.bf16 %v3999_v36, %v3999_v36  ;;  %v6740_v2 = vld [vmem:[#allocation2 + $0x660] sm:$0xff]   ;;  %v6748_v16 = vld [vmem:[#allocation2 + $0x670] sm:$0xff]   ;;  %v6752_v26 = vld [vmem:[#allocation2 + $0x678] sm:$0xff]  }
0x1253   :  { %6257 = vmatprep.subr.bf16.mxu1 %v6716_v62  ;;  %6279 = vmatprep.subr.bf16.mxu0 %v6717_v14  ;;  %v6741_v3 = vld [vmem:[#allocation2 + $0x6e0] sm:$0xff]   ;;  %v6746_v62 = vld [vmem:[#allocation2 + $0x628] sm:$0xff]   ;;  %v3340_v14 = vrot.slane %v7683_v59, %v7257_v8  ;;  %v6751_v8 = vld [vmem:[#allocation2 + $0x6b0] sm:$0xff]  }
0x1256   :  { %6258 = vmatpush3.bf16.msra.mxu1 %v6718_v13  ;;  %6280 = vmatpush3.bf16.msra.mxu0 %v6719_v17  ;;  %v3348_v13 = vrot.slane %v7683_v59, %v7260_v9  ;;  %v6749_v17 = vld [vmem:[#allocation2 + $0x6f0] sm:$0xff]   ;;  %v6753_v9 = vld [vmem:[#allocation2 + $0x6f8] sm:$0xff]  }
0x1257   :  { %6259 = vmatprep.subr.bf16.mxu1 %v6720_v21  ;;  %6281 = vmatprep.subr.bf16.mxu0 %v6721_v22  ;;  %v6750_v21 = vld [vmem:[#allocation2 + $0x630] sm:$0xff]   ;;  %v3859_v22 = vadd.f32 %v7676_v52, %v3340_v14 }
0x1258   :  { %v7697_v34 = vpop.f32.mrb[76].mxu1  ;;  %v3981_v35 = vpop.f32.mrb[76].mxu0  ;;  %v3900_v27 = vadd.f32 %v7678_v58, %v3348_v13  ;;  %v6758_v58 = vld [vmem:[#allocation2 + $0x700] sm:$0xff]  }
0x1259   :  { %v7699_v37 = vadd.f32 %v3981_v35, %v3364_v11  ;;  %v7701_v38 = vpop.f32.mrb[77].mxu1  ;;  %v7703_v20 = vpop.f32.mrb[77].mxu0  ;;  %v6759_v35 = vld [vmem:[#allocation2 + $0x780] sm:$0xff]  }
0x125a   :  { %v3944_v39 = vpop.f32.mrb[78].mxu1  ;;  %v3985_v42 = vpop.f32.mrb[78].mxu0  ;;  %6260 = vmatpush3.bf16.msra.mxu1 %v6722_v12  ;;  %6282 = vmatpush3.bf16.msra.mxu0 %v6723_v30  ;;  %v3943_v11 = vadd.f32 %v7701_v38, %v3360_v18  ;;  %v3984_v12 = vadd.f32 %v7703_v20, %v3368_v29  ;;  %v3996_v30 = vmax.f32 %v3859_v22, 0.0  ;;  %v3998_v52 = vmax.f32 %v3900_v27, 0.0  ;;  %v6760_v38 = vld [vmem:[#allocation2 + $0x748] sm:$0xff]  }
0x125b   :  { %v3945_v10 = vpop.f32.mrb[79].mxu1  ;;  %v3986_v46 = vpop.f32.mrb[79].mxu0  ;;  %6289 = vmatprep.subr.bf16.mxu1 %v6724_v60  ;;  %6311 = vmatprep.subr.bf16.mxu0 %v6725_v33  ;;  %v6761_v39 = vld [vmem:[#allocation2 + $0x7c8] sm:$0xff]  }
0x125c   :  { %v4001_v60 = vmax.f32 %v3943_v11, 0.0  ;;  %v4003_v33 = vmax.f32 %v3984_v12, 0.0  ;;  %v4012_v32 = vpack.c.bf16 %v3996_v30, %v3996_v30  ;;  %v4014_v36 = vpack.c.bf16 %v3998_v52, %v3998_v52  ;;  %v6765_v10 = vld [vmem:[#allocation2 + $0x7d0] sm:$0xff]  }
0x125d   :  { %5158 = vmatmul.mubr.bf16.vlgmr.msra.gmra.mrb[84].mxu1 %v4008_v44  ;;  %5198 = vmatmul.mubr.bf16.vlgmr.msra.gmra.mrb[84].mxu0 %v4010_v45  ;;  %v6763_v44 = vld [vmem:[#allocation2 + $0x788] sm:$0xff]   ;;  %v6764_v45 = vld [vmem:[#allocation2 + $0x750] sm:$0xff]  }
0x125e   :  { %6290 = vmatpush3.bf16.msra.mxu1 %v6726_v43  ;;  %5237 = vmatprep.mubr.bf16.mxu1 %v4013_v48  ;;  %v4017_v20 = vpack.c.bf16 %v4001_v60, %v4001_v60  ;;  %v4019_v42 = vpack.c.bf16 %v4003_v33, %v4003_v33  ;;  %v6762_v43 = vld [vmem:[#allocation2 + $0x708] sm:$0xff]   ;;  %v6766_v46 = vld [vmem:[#allocation2 + $0x710] sm:$0xff]   ;;  %v6768_v48 = vld [vmem:[#allocation2 + $0x758] sm:$0xff]  }
0x125f   :  { %6312 = vmatpush3.bf16.msra.mxu0 %v6727_v47  ;;  %5277 = vmatprep.mubr.bf16.mxu0 %v4015_v25  ;;  %v6767_v47 = vld [vmem:[#allocation2 + $0x790] sm:$0xff]   ;;  %v6771_v25 = vld [vmem:[#allocation2 + $0x798] sm:$0xff]  }
0x1260   :  { %6291 = vmatprep.subr.bf16.mxu1 %v6728_v49  ;;  %6313 = vmatprep.subr.bf16.mxu0 %v6729_v50  ;;  %v6769_v49 = vld [vmem:[#allocation2 + $0x7d8] sm:$0xff]  }
0x1261   :  { %v6770_v50 = vld [vmem:[#allocation2 + $0x718] sm:$0xff]  }
0x1262   :  { %6292 = vmatpush3.bf16.msra.mxu1 %v6730_v53  ;;  %v6772_v53 = vld [vmem:[#allocation2 + $0x760] sm:$0xff]  }
0x1263   :  { %6314 = vmatpush3.bf16.msra.mxu0 %v6731_v54  ;;  %6293 = vmatprep.subr.bf16.mxu1 %v6732_v57  ;;  %v6773_v54 = vld [vmem:[#allocation2 + $0x7e0] sm:$0xff]  }
0x1264   :  { %6315 = vmatprep.subr.bf16.mxu0 %v6733_v55  ;;  %v6774_v57 = vld [vmem:[#allocation2 + $0x720] sm:$0xff]  }
0x1265   :  { %v6775_v55 = vld [vmem:[#allocation2 + $0x7a0] sm:$0xff]  }
0x1266   :  { %6294 = vmatpush3.bf16.msra.mxu1 %v6734_v56  ;;  %v6776_v56 = vld [vmem:[#allocation2 + $0x768] sm:$0xff]  }
0x1267   :  { %6316 = vmatpush3.bf16.msra.mxu0 %v6735_v28  ;;  %6295 = vmatprep.subr.bf16.mxu1 %v6736_v63  ;;  %v6777_v28 = vld [vmem:[#allocation2 + $0x7e8] sm:$0xff]  }
0x1268   :  { %6317 = vmatprep.subr.bf16.mxu0 %v6737_v1  ;;  %v6778_v63 = vld [vmem:[#allocation2 + $0x728] sm:$0xff]   ;;  %v3356_v1 = vrot.slane %v7683_v59, %v7296_v19  ;;  %v6787_v19 = vld [vmem:[#allocation2 + $0x7b8] sm:$0xff]   ;;  %v4002_v59 = vmax.f32 %v7699_v37, 0.0 }
0x126a   :  { %6296 = vmatpush3.bf16.msra.mxu1 %v6738_v23  ;;  %v6779_v23 = vld [vmem:[#allocation2 + $0x7a8] sm:$0xff]  }
0x126b   :  { %6318 = vmatpush3.bf16.msra.mxu0 %v6739_v5  ;;  %6297 = vmatprep.subr.bf16.mxu1 %v6740_v2  ;;  %v6780_v5 = vld [vmem:[#allocation2 + $0x770] sm:$0xff]  }
0x126c   :  { %6319 = vmatprep.subr.bf16.mxu0 %v6741_v3  ;;  %v6781_v2 = vld [vmem:[#allocation2 + $0x7f0] sm:$0xff]  }
0x126d   :  { %v6782_v3 = vld [vmem:[#allocation2 + $0x730] sm:$0xff]  }
0x126e   :  { %6298 = vmatpush3.bf16.msra.mxu1 %v6742_v4  ;;  %v3941_v4 = vadd.f32 %v7697_v34, %v3356_v1  ;;  %v4018_v34 = vpack.c.bf16 %v4002_v59, %v4002_v59 }
0x126f   :  { %6320 = vmatpush3.bf16.msra.mxu0 %v6743_v24  ;;  %6299 = vmatprep.subr.bf16.mxu1 %v6744_v61  ;;  %v6783_v24 = vld [vmem:[#allocation2 + $0x7b0] sm:$0xff]   ;;  %v6784_v61 = vld [vmem:[#allocation2 + $0x778] sm:$0xff]  }
0x1270   :  { %6321 = vmatprep.subr.bf16.mxu0 %v6745_v6  ;;  %v6785_v6 = vld [vmem:[#allocation2 + $0x7f8] sm:$0xff]   ;;  %v4000_v14 = vmax.f32 %v3941_v4, 0.0 }
0x1272   :  { %6300 = vmatpush3.bf16.msra.mxu1 %v6746_v62  ;;  %v6786_v62 = vld [vmem:[#allocation2 + $0x738] sm:$0xff]  }
0x1273   :  { %6322 = vmatpush3.bf16.msra.mxu0 %v6747_v15  ;;  %6301 = vmatprep.subr.bf16.mxu1 %v6748_v16  ;;  %v4016_v15 = vpack.c.bf16 %v4000_v14, %v4000_v14  ;;  %v6790_v14 = vld [vmem:[%s7772_s8 + $0x10] sm:$0x1f]  }
0x1274   :  { %6323 = vmatprep.subr.bf16.mxu0 %v6749_v17 }
0x1276   :  { %6302 = vmatpush3.bf16.msra.mxu1 %v6750_v21 }
0x1277   :  { %6324 = vmatpush3.bf16.msra.mxu0 %v6751_v8  ;;  %6303 = vmatprep.subr.bf16.mxu1 %v6752_v26 }
0x1278   :  { %6325 = vmatprep.subr.bf16.mxu0 %v6753_v9 }
0x127a   :  { %6304 = vmatpush3.bf16.msra.mxu1 %v6754_v40 }
0x127b   :  { %6326 = vmatpush3.bf16.msra.mxu0 %v6755_v41  ;;  %6333 = vmatprep.subr.bf16.mxu1 %v6756_v31 }
0x127c   :  { %6355 = vmatprep.subr.bf16.mxu0 %v6757_v7 }
0x127d   :  { %5238 = vmatmul.mubr.bf16.vlgmr.msra.gmra.mrb[88].mxu1 %v4012_v32 }
0x127e   :  { %5278 = vmatmul.mubr.bf16.vlgmr.msra.gmra.mrb[88].mxu0 %v4014_v36  ;;  %6334 = vmatpush3.bf16.msra.mxu1 %v6758_v58 }
0x127f   :  { %5317 = vmatprep.mubr.bf16.mxu1 %v4017_v20  ;;  %6356 = vmatpush3.bf16.msra.mxu0 %v6759_v35 }
0x1280   :  { %5357 = vmatprep.mubr.bf16.mxu0 %v4019_v42  ;;  %6335 = vmatprep.subr.bf16.mxu1 %v6760_v38 }
0x1281   :  { %6357 = vmatprep.subr.bf16.mxu0 %v6761_v39 }
0x1282   :  { %6336 = vmatpush3.bf16.msra.mxu1 %v6762_v43 }
0x1283   :  { %6358 = vmatpush3.bf16.msra.mxu0 %v6763_v44  ;;  %6337 = vmatprep.subr.bf16.mxu1 %v6764_v45 }
0x1284   :  { %6359 = vmatprep.subr.bf16.mxu0 %v6765_v10 }
0x1286   :  { %6338 = vmatpush3.bf16.msra.mxu1 %v6766_v46 }
0x1287   :  { %6360 = vmatpush3.bf16.msra.mxu0 %v6767_v47  ;;  %6339 = vmatprep.subr.bf16.mxu1 %v6768_v48 }
0x1288   :  { %6361 = vmatprep.subr.bf16.mxu0 %v6769_v49 }
0x128a   :  { %6340 = vmatpush3.bf16.msra.mxu1 %v6770_v50 }
0x128b   :  { %6362 = vmatpush3.bf16.msra.mxu0 %v6771_v25  ;;  %6341 = vmatprep.subr.bf16.mxu1 %v6772_v53 }
0x128c   :  { %6363 = vmatprep.subr.bf16.mxu0 %v6773_v54 }
0x128e   :  { %6342 = vmatpush3.bf16.msra.mxu1 %v6774_v57 }
0x128f   :  { %6364 = vmatpush3.bf16.msra.mxu0 %v6775_v55  ;;  %6343 = vmatprep.subr.bf16.mxu1 %v6776_v56 }
0x1290   :  { %6365 = vmatprep.subr.bf16.mxu0 %v6777_v28 }
0x1292   :  { %6344 = vmatpush3.bf16.msra.mxu1 %v6778_v63  ;;  %v5977_v63 = vld [vmem:[%s7771_s7 + $0x7] ss:$0 sm:$0xff] }
0x1293   :  { %6366 = vmatpush3.bf16.msra.mxu0 %v6779_v23  ;;  %6345 = vmatprep.subr.bf16.mxu1 %v6780_v5 }
0x1294   :  { %6367 = vmatprep.subr.bf16.mxu0 %v6781_v2 }
0x1296   :  { %6346 = vmatpush3.bf16.msra.mxu1 %v6782_v3 }
0x1297   :  { %6368 = vmatpush3.bf16.msra.mxu0 %v6783_v24  ;;  %6347 = vmatprep.subr.bf16.mxu1 %v6784_v61 }
0x1298   :  { %6369 = vmatprep.subr.bf16.mxu0 %v6785_v6 }
0x129a   :  { %6348 = vmatpush3.bf16.msra.mxu1 %v6786_v62  ;;  %v6788_v62 = vld [vmem:[%s7772_s8] sm:$0xff]  }
0x129b   :  { %6370 = vmatpush3.bf16.msra.mxu0 %v6787_v19  ;;  %6493 = vmatprep.subr.bf16.mxu1 %v6875_v0  ;;  %v5432_v19 = vsel %vm87_vm1, %v6790_v14, 0 }
0x129d   :  { %5318 = vmatmul.mubr.bf16.vlgmr.msra.gmra.mrb[92].mxu1 %v4016_v15 }
0x129e   :  { %5358 = vmatmul.mubr.bf16.vlgmr.msra.gmra.mrb[92].mxu0 %v4018_v34  ;;  %6499 = vmatprep.mubr.msk.bf16.mxu1 %vm6876_vm0, %v6875_v0 }
0x129f   :  { %6494 = vmatpush3.bf16.msra.mxu1 %v6788_v62 }
0x12a0   :  { %6495 = vmatprep.subr.bf16.mxu1 %v6875_v0 }
0x1310   :  { %v6217_v16 = vpop.f32.mrb[80].mxu1  ;;  %v6239_v13 = vpop.f32.mrb[80].mxu0 }
0x1311   :  { %v6218_v17 = vpop.f32.mrb[81].mxu1  ;;  %v6240_v18 = vpop.f32.mrb[81].mxu0 }
0x1312   :  { %v6219_v29 = vadd.f32 %v6218_v17, %v6217_v16  ;;  %v6241_v21 = vadd.f32 %v6240_v18, %v6239_v13  ;;  %v6220_v22 = vpop.f32.mrb[82].mxu1  ;;  %v6242_v37 = vpop.f32.mrb[82].mxu0  ;;  %v5978_v13 = vld [vmem:[%s7771_s7 + $0xa] ss:$0 sm:$0xff]  ;;  %v5979_v18 = vld [vmem:[%s7771_s7 + $0xb] ss:$0 sm:$0xff] }
0x1313   :  { %v6221_v8 = vpop.f32.mrb[83].mxu1  ;;  %v6243_v26 = vpop.f32.mrb[83].mxu0  ;;  %v5980_v22 = vld [vmem:[%s7773_s9] ss:$0 sm:$0xff] }
0x1314   :  { %v5120_v27 = vadd.f32 %v6241_v21, %v6219_v29 }
0x1330   :  { %v6261_v9 = vpop.f32.mrb[84].mxu1  ;;  %v6283_v11 = vpop.f32.mrb[84].mxu0 }
0x1331   :  { %v6262_v12 = vpop.f32.mrb[85].mxu1  ;;  %v6284_v40 = vpop.f32.mrb[85].mxu0 }
0x1332   :  { %v6263_v30 = vadd.f32 %v6262_v12, %v6261_v9  ;;  %v6285_v41 = vadd.f32 %v6284_v40, %v6283_v11  ;;  %v6264_v31 = vpop.f32.mrb[86].mxu1  ;;  %v6286_v52 = vpop.f32.mrb[86].mxu0 }
0x1333   :  { %v6265_v7 = vpop.f32.mrb[87].mxu1  ;;  %v6287_v60 = vpop.f32.mrb[87].mxu0 }
0x1334   :  { %v5160_v33 = vadd.f32 %v6263_v30, %v5120_v27 }
0x1336   :  { %v5200_v58 = vadd.f32 %v6285_v41, %v5160_v33 }
0x1350   :  { %v6305_v32 = vpop.f32.mrb[88].mxu1 }
0x1351   :  { %v6327_v35 = vpop.f32.mrb[88].mxu0  ;;  %v6306_v36 = vpop.f32.mrb[89].mxu1 }
0x1352   :  { %v6307_v38 = vadd.f32 %v6306_v36, %v6305_v32  ;;  %v6328_v20 = vpop.f32.mrb[89].mxu0  ;;  %v6308_v39 = vpop.f32.mrb[90].mxu1 }
0x1353   :  { %v6329_v42 = vadd.f32 %v6328_v20, %v6327_v35  ;;  %v6330_v43 = vpop.f32.mrb[90].mxu0  ;;  %v6309_v44 = vpop.f32.mrb[91].mxu1 }
0x1354   :  { %v5240_v45 = vadd.f32 %v6307_v38, %v5200_v58  ;;  %v6331_v10 = vpop.f32.mrb[91].mxu0 }
0x1356   :  { %v5280_v46 = vadd.f32 %v6329_v42, %v5240_v45 }
0x1370   :  { %v6349_v47 = vpop.f32.mrb[92].mxu1 }
0x1371   :  { %v6371_v48 = vpop.f32.mrb[92].mxu0  ;;  %v6350_v49 = vpop.f32.mrb[93].mxu1 }
0x1372   :  { %v6351_v50 = vadd.f32 %v6350_v49, %v6349_v47  ;;  %v6372_v25 = vpop.f32.mrb[93].mxu0  ;;  %v6352_v53 = vpop.f32.mrb[94].mxu1 }
0x1373   :  { %v6373_v54 = vadd.f32 %v6372_v25, %v6371_v48  ;;  %v6374_v57 = vpop.f32.mrb[94].mxu0  ;;  %v6353_v55 = vpop.f32.mrb[95].mxu1 }
0x1374   :  { %v5320_v56 = vadd.f32 %v6351_v50, %v5280_v46  ;;  %v6375_v28 = vpop.f32.mrb[95].mxu0 }
0x1376   :  { %v5360_v1 = vadd.f32 %v6373_v54, %v5320_v56 }
0x1378   :  { %v5370_v23 = vadd.f32 %v5977_v63, %v5360_v1 }
0x137a   :  { %v5371_v5 = vadd.f32 %v5370_v23, %v7531_v51  ;;  %v6789_v51 = vld [vmem:[%s7772_s8 + $0x8] sm:$0xff]  }
0x137b   :  { %6496 = vmatpush3.bf16.msra.mxu1 %v6789_v51 }
0x137c   :  { %v5374_v2 = vsel %vm83_vm2, %v5371_v5, 0.0  ;;  %6497 = vmatprep.subr.bf16.mxu1 %v6875_v0 }
0x137d   :  { %5375 = vadd.xlane.f32.xlu0 %v5374_v2 }
0x137f   :  { %6498 = vmatpush3.bf16.msra.mxu1 %v5432_v19 }
0x140a   :  { %v5376_v3 = vpop.xlane.xlu0 %5375 }
0x140b   :  { %v5377_v4 = vmul.f32 0.023809524, %v5376_v3 }
0x140d   :  { %v5378_v24 = vsub.f32 %v5371_v5, %v5377_v4 }
0x140f   :  { %v5379_v61 = vmul.f32 %v5378_v24, %v5378_v24 }
0x1411   :  { %v5380_v6 = vsel %vm83_vm2, %v5379_v61, 0.0 }
0x1412   :  { %5381 = vadd.xlane.f32.xlu0 %v5380_v6 }
0x149f   :  { %v5382_v59 = vpop.xlane.xlu0 %5381 }
0x14a0   :  { %v5383_v15 = vmul.f32 0.023809524, %v5382_v59 }
0x14a2   :  { %v5384_v34 = vadd.f32 1e-05, %v5383_v15 }
0x14a4   :  { %6821 = vrsqrt.f32 %v5384_v34 }
0x14ae   :  { %v6822_v16 = vpop.eup %6821 }
0x14af   :  { %v5386_v17 = vmul.f32 %v6822_v16, %v5378_v24 }
0x14b1   :  { %v5391_v29 = vmul.f32 %v5978_v13, %v5386_v17 }
0x14b3   :  { %v5396_v21 = vadd.f32 %v5979_v18, %v5391_v29 }
0x14b5   :  { %v5397_v0 = vpack.c.bf16 %v5396_v21, %v5396_v21 }
0x14b7   :  { %6500 = vmatmul.mubr.msk.bf16.vlgmr.msra.gmra.mrb[96].mxu1 %vm83_vm2, %v5397_v0 }
0x158a   :  { %v5468_v37 = vpop.f32.mrb[96].mxu1 }
0x158b   :  { %v5469_v8 = vadd.f32 %v5980_v22, %v5468_v37  ;;  %v6501_v26 = vpop.f32.mrb[97].mxu1 }
0x158c   :  { %v5471_v27 = vpop.f32.mrb[98].mxu1 }
0x158d   :  { %5474 = vst [vmem:[#allocation5] sm:$0xff] %v5469_v8  ;;  %v6502_v9 = vpop.f32.mrb[99].mxu1 }
0x158e   :  { %6857 = shalt.err (!%p6854_p12)
}
0x158f   :  { %s6858_s9 = scalar_lea.hbm %s7774_s10, 128 }
0x1590   :  { %p6859_p13 = scmp.ne.s32.totalorder %s7774_s10, %s6858_s9  ;;  %p6862_p0 = scmp.lt.u32.totalorder %s6858_s9, %s7774_s10 }
0x1592   :  { %p6864_p1 = pnand %p6862_p0, %p6859_p13 }
0x1594   :  { %6867 = shalt.err (!%p6864_p1)
}
0x1595   :  { %5484 = dma.vmem_to_hbm [thread:$0]  %s5482_s11, 128, %s7774_s10, [#allocation4]  }
0x1596   :  { %6870 = dma.done.wait [#allocation4], 128  }
0x1597   :  { %6871 = vsyncadd [#allocation4], 4294967168 }
0x1598   :  { %5488 = vsyncpa [#allocation3], 1 }
0x1599   :  { %5489 = vsyncpa [#allocation4], 1 }

</bundles_post_ra>
